<compile_context>
chip_gen: v7x
topology: tpu7x:2x2x1
jax: 0.10.0
libtpu: 0.0.40
codegen_flags: <defaults>
</compile_context>

<pallas_src>
import math
import functools

import jax
import jax.numpy as jnp
from jax.experimental import pallas as pl
from jax.experimental.pallas import tpu as pltpu


# ----------------------------- in-kernel helpers -----------------------------

def _erf(x):
    # Abramowitz & Stegun 7.1.26 polynomial, max abs error ~1.5e-7 in f32.
    a1, a2, a3, a4, a5 = 0.254829592, -0.284496736, 1.421413741, -1.453152027, 1.061405429
    p = 0.3275911
    s = jnp.where(x >= 0.0, 1.0, -1.0)
    ax = jnp.abs(x)
    t = 1.0 / (1.0 + p * ax)
    poly = ((((a5 * t + a4) * t + a3) * t + a2) * t + a1) * t
    return s * (1.0 - poly * jnp.exp(-ax * ax))


def _gelu_exact(x):
    # Exact (erf) GELU kept for fidelity with F.gelu.  At real shapes the FFN
    # slab is MXU-bound (2*D MACs per element vs ~12 VPU ops + 1 EUP exp here).
    # TODO(synk): on v6e/v7x this epilogue could run in bf16 (halve VALU/vreg
    # pressure); kept f32 so the same kernel is correct on v5e (no bf16 VALU).
    return 0.5 * x * (1.0 + _erf(x * (1.0 / math.sqrt(2.0))))


def _layer_norm(x, g, b, eps=1e-5):
    mu = jnp.mean(x, axis=-1, keepdims=True)
    var = jnp.mean((x - mu) ** 2, axis=-1, keepdims=True)
    return (x - mu) * jax.lax.rsqrt(var + eps) * g + b


# --------------------------------- kernel ------------------------------------

PARAM_ORDER = ("ln1_g", "ln1_b",
               "wqkv", "bqkv", "wo", "bo",
               "ln2_g", "ln2_b",
               "w1", "b1", "w2", "b2")


def decoder_layer_kernel(x_ref, bias_ref,
                         ln1_g_ref, ln1_b_ref,
                         wqkv_ref, bqkv_ref, wo_ref, bo_ref,
                         ln2_g_ref, ln2_b_ref,
                         w1_ref, b1_ref, w2_ref, b2_ref,
                         out_ref, *scratch, num_heads, fold_heads):
    bt, S, D = x_ref.shape
    H = num_heads
    dk = D // H
    scale = 1.0 / math.sqrt(dk)
    M = bt * S

    x = x_ref[...].reshape(M, D)                                  # (M, D) f32

    # ---- LayerNorm 1 (f32; v5e VPU/EUP have no bf16) ----
    xn = _layer_norm(x, ln1_g_ref[0], ln1_b_ref[0]).astype(jnp.bfloat16)

    # ---- fused QKV: one wide (M, 3D) MXU issue, f32 accumulation ----
    qkv = jnp.dot(xn, wqkv_ref[...], preferred_element_type=jnp.float32) + bqkv_ref[0]
    q = qkv[:, 0:D].reshape(bt, S, D)                             # f32
    k = qkv[:, D:2 * D].reshape(bt, S, D)
    v = qkv[:, 2 * D:3 * D].reshape(bt, S, D)

    # additive attention bias (0 = attend, -1e10 = masked), hoisted once.
    abias = bias_ref[...].astype(jnp.float32)                     # (mb, S, S)
    mb = abias.shape[0]                                           # 1 or bt (static)

    if fold_heads:
        # ---- heads folded into the leading batch dim: one relayout per tensor
        # instead of H lane slices, one batched MXU/EUP pass over all heads. ----
        qh = pltpu.einshape("bq(hd)->(bh)qd", q, h=H, d=dk).astype(jnp.bfloat16)
        kh = pltpu.einshape("bq(hd)->(bh)qd", k, h=H, d=dk).astype(jnp.bfloat16)
        vh = pltpu.einshape("bq(hd)->(bh)qd", v, h=H, d=dk).astype(jnp.bfloat16)
        s = jnp.einsum("bqd,bkd->bqk", qh, kh,
                       preferred_element_type=jnp.float32)        # (bt*H, S, S) f32
        if mb == 1:
            s = s * scale + abias[0]
        else:
            s = (s.reshape(bt, H, S, S) * scale + abias[:, None]).reshape(bt * H, S, S)
        m = jnp.max(s, axis=-1, keepdims=True)
        e = jnp.exp(s - m)
        pr = e * pl.reciprocal(jnp.sum(e, axis=-1, keepdims=True), approx=True)
        o = jnp.einsum("bqk,bkd->bqd", pr.astype(jnp.bfloat16), vh,
                       preferred_element_type=jnp.float32)        # (bt*H, S, dk) f32
        attn_in = pltpu.einshape("(bh)qd->bq(hd)", o, b=bt, h=H)
        attn_in = attn_in.reshape(M, D).astype(jnp.bfloat16)
    else:
        # ---- fallback: static per-head loop (each issue still batched over bt) ----
        qb = q.astype(jnp.bfloat16)
        kb = k.astype(jnp.bfloat16)
        vb = v.astype(jnp.bfloat16)
        attn_scr = scratch[0]                                     # (bt, S, D)
        for h in range(H):
            sl = slice(h * dk, (h + 1) * dk)
            s = jnp.einsum("bqd,bkd->bqk", qb[:, :, sl], kb[:, :, sl],
                           preferred_element_type=jnp.float32)
            s = s * scale + abias
            m = jnp.max(s, axis=-1, keepdims=True)
            e = jnp.exp(s - m)
            pr = e * pl.reciprocal(jnp.sum(e, axis=-1, keepdims=True), approx=True)
            o = jnp.einsum("bqk,bkd->bqd", pr.astype(jnp.bfloat16), vb[:, :, sl],
                           preferred_element_type=jnp.float32)
            attn_scr[:, :, sl] = o.astype(attn_scr.dtype)
        attn_in = attn_scr[...].reshape(M, D).astype(jnp.bfloat16)

    # ---- output projection ----
    attn = jnp.dot(attn_in, wo_ref[...], preferred_element_type=jnp.float32) + bo_ref[0]
    residual = attn   # matches the PyTorch module (residual = attention output)

    # ---- LayerNorm 2 + position-wise feed-forward ----
    yn = _layer_norm(attn, ln2_g_ref[0], ln2_b_ref[0]).astype(jnp.bfloat16)
    h1 = jnp.dot(yn, w1_ref[...], preferred_element_type=jnp.float32) + b1_ref[0]
    h1 = _gelu_exact(h1)
    ff = jnp.dot(h1.astype(jnp.bfloat16), w2_ref[...],
                 preferred_element_type=jnp.float32) + b2_ref[0]
    # dropout is identity (eval mode)

    out_ref[...] = (residual + ff).reshape(bt, S, D)


# ----------------------------- feature probes --------------------------------

@functools.lru_cache(maxsize=None)
def _einshape_fold_ok(bt, S, D, H):
    """Probe (compile + numerics) the grouped einshape head fold at real shapes."""
    dk = D // H
    try:
        x = jnp.arange(bt * S * D, dtype=jnp.float32).reshape(bt, S, D)

        def fold_k(x_ref, o_ref):
            o_ref[...] = pltpu.einshape("bq(hd)->(bh)qd", x_ref[...], h=H, d=dk)

        folded = pl.pallas_call(
            fold_k, out_shape=jax.ShapeDtypeStruct((bt * H, S, dk), jnp.float32))(x)
        ref = x.reshape(bt, S, H, dk).transpose(0, 2, 1, 3).reshape(bt * H, S, dk)
        if not bool(jnp.allclose(folded, ref)):
            return False

        def unfold_k(y_ref, o_ref):
            o_ref[...] = pltpu.einshape("(bh)qd->bq(hd)", y_ref[...], b=bt, h=H)

        back = pl.pallas_call(
            unfold_k, out_shape=jax.ShapeDtypeStruct((bt, S, D), jnp.float32))(folded)
        return bool(jnp.allclose(back, x))
    except Exception:
        return False


@functools.lru_cache(maxsize=None)
def _single_buffer_weights_ok():
    """Probe pl.Buffered(1) on a constant-index (weight-style) BlockSpec."""
    try:
        def k(w_ref, x_ref, o_ref):
            o_ref[...] = x_ref[...] + w_ref[...]

        w = jnp.full((8, 128), 3.0, jnp.float32)
        x = jnp.arange(16 * 128, dtype=jnp.float32).reshape(16, 128)
        out = pl.pallas_call(
            k, out_shape=jax.ShapeDtypeStruct((16, 128), jnp.float32),
            grid=(2,),
            in_specs=[pl.BlockSpec((8, 128), lambda i: (0, 0),
                                   pipeline_mode=pl.Buffered(1)),
                      pl.BlockSpec((8, 128), lambda i: (i, 0))],
            out_specs=pl.BlockSpec((8, 128), lambda i: (i, 0)))(w, x)
        return bool(jnp.allclose(out, x + 3.0))
    except Exception:
        return False


# ------------------------------ sizing helpers --------------------------------

def _vmem_capacity():
    try:
        return int(pltpu.get_tpu_info().vmem_capacity_bytes)
    except Exception:
        return 64 << 20     # conservative default (v7x per-core VMEM)


def _pick_batch_tile(B, S, vmem_cap):
    # Fold as many batch elements as possible into the matmul M dimension
    # (fills MXU rows, amortizes ~0.35us/step pipeline overhead).  128 MiB
    # chips (v5e/v6e) take a bigger slab than v7x's 64 MiB.
    max_rows = 2048 if vmem_cap >= (96 << 20) else 512
    divs = [d for d in range(B, 0, -1) if B % d == 0]
    cands = [d for d in divs if d * S <= max_rows] or [1]
    bt = cands[0]
    # Keep >=2 parallel grid steps when possible: v7x has 2 TensorCores that
    # split a "parallel" grid axis; a 1-step grid would idle one of them.
    if B > 1 and B // bt < 2:
        smaller = [d for d in cands if B // d >= 2]
        if smaller:
            bt = smaller[0]
    return bt


def _vmem_limit_bytes(cap, bt, S, D, DFF, H, plist, fold, single_buf):
    M = bt * S
    wbytes = sum(int(p.size) * p.dtype.itemsize for p in plist)
    wbytes *= 1 if single_buf else 2                      # pipeline buffer count
    io = 2 * (M * D * 4) * 2                              # x + out blocks, double buffered
    act = (M * 3 * D * (4 + 2)                            # fused qkv f32 + bf16
           + bt * H * S * S * 4 * 2                       # scores + softmax temporaries
           + M * DFF * (4 + 2)                            # ffn hidden f32 + bf16
           + M * D * 4 * 3)                               # attn out / residual / ffn out
    scr = 0 if fold else M * D * 2
    resident = wbytes + io + act + scr
    return int(min(0.85 * cap, max(resident * 1.3, 32 << 20)))


# --------------------------------- wrapper -----------------------------------

def prepare_decoder_params(params):
    """Fuse QKV and cast matmul weights to bf16 ONCE (not per decoder_layer call)."""
    f32, bf16 = jnp.float32, jnp.bfloat16
    return {
        "ln1_g": params["ln1_g"].astype(f32), "ln1_b": params["ln1_b"].astype(f32),
        "wqkv": jnp.concatenate([params["wq"], params["wk"], params["wv"]],
                                axis=1).astype(bf16),
        "bqkv": jnp.concatenate([params["bq"], params["bk"], params["bv"]],
                                axis=1).astype(f32),
        "wo": params["wo"].astype(bf16), "bo": params["bo"].astype(f32),
        "ln2_g": params["ln2_g"].astype(f32), "ln2_b": params["ln2_b"].astype(f32),
        "w1": params["w1"].astype(bf16), "b1": params["b1"].astype(f32),
        "w2": params["w2"].astype(bf16), "b2": params["b2"].astype(f32),
    }


def decoder_layer(x, mask, prepped, num_heads):
    B, S, D = x.shape
    assert D % num_heads == 0
    H = num_heads
    DFF = prepped["w1"].shape[1]

    cap = _vmem_capacity()
    bt = _pick_batch_tile(B, S, cap)
    grid = (B // bt,)

    # Ship an additive bf16 bias instead of the f32 mask; collapse the batch
    # dim to 1 when the mask is batch-invariant so it is DMA'd once and stays
    # resident (constant index_map).
    mask = mask if mask.ndim == 3 else mask[None]
    assert mask.shape[0] in (1, B)
    bias = ((mask.astype(jnp.float32) - 1.0) * 1e10).astype(jnp.bfloat16)

    plist = [prepped[n] for n in PARAM_ORDER]

    def run(fold, single_buf, scratch_dtype):
        wkw = {"pipeline_mode": pl.Buffered(1)} if single_buf else {}

        def const_spec(p):
            return pl.BlockSpec(p.shape, lambda b: (0,) * p.ndim, **wkw)

        if bias.shape[0] == 1:
            bias_spec = pl.BlockSpec((1, S, S), lambda b: (0, 0, 0), **wkw)
        else:
            bias_spec = pl.BlockSpec((bt, S, S), lambda b: (b, 0, 0))

        in_specs = ([pl.BlockSpec((bt, S, D), lambda b: (b, 0, 0)), bias_spec]
                    + [const_spec(p) for p in plist])
        out_spec = pl.BlockSpec((bt, S, D), lambda b: (b, 0, 0))
        scratch = [] if fold else [pltpu.VMEM((bt, S, D), scratch_dtype)]

        # TODO(synk): for long sequences (S >~ 512 on v7x, >~ 1k on v5e/v6e) add a
        # query-block grid axis with a flash-style online softmax, and stream
        # w1/w2 in DFF chunks (pltpu.emit_pipeline) so the resident set fits
        # v7x's 64 MiB VMEM; unnecessary at these shapes.
        return pl.pallas_call(
            functools.partial(decoder_layer_kernel, num_heads=H, fold_heads=fold),
            out_shape=jax.ShapeDtypeStruct((B, S, D), jnp.float32),
            grid=grid,
            in_specs=in_specs,
            out_specs=out_spec,
            scratch_shapes=scratch,
            compiler_params=pltpu.CompilerParams(
                dimension_semantics=("parallel",),
                vmem_limit_bytes=_vmem_limit_bytes(cap, bt, S, D, DFF, H, plist,
                                                   fold, single_buf)),
        )(x, bias, *plist)

    fold = _einshape_fold_ok(bt, S, D, H)
    single_buf = _single_buffer_weights_ok()

    attempts = [(fold, single_buf, jnp.bfloat16)]
    safe = (False, False, jnp.float32)          # proven baseline structure
    if attempts[0] != safe:
        attempts.append(safe)

    errs = []
    for cfg in attempts:
        try:
            return run(*cfg)
        except Exception as e:                  # graceful degradation, always runs
            errs.append(e)
    raise errs[-1]


# --------------------------- pure-JAX reference -------------------------------

def reference_decoder_layer(x, mask, p, num_heads):
    def ln(x, g, b):
        mu = jnp.mean(x, axis=-1, keepdims=True)
        var = jnp.mean((x - mu) ** 2, axis=-1, keepdims=True)
        return (x - mu) / jnp.sqrt(var + 1e-5) * g[0] + b[0]

    if mask.ndim == 2:
        mask = mask[None]
    B, S, D = x.shape
    dk = D // num_heads
    xn = ln(x, p["ln1_g"], p["ln1_b"])
    q = xn @ p["wq"] + p["bq"][0]
    k = xn @ p["wk"] + p["bk"][0]
    v = xn @ p["wv"] + p["bv"][0]
    qh = q.reshape(B, S, num_heads, dk).transpose(0, 2, 1, 3)
    kh = k.reshape(B, S, num_heads, dk).transpose(0, 2, 1, 3)
    vh = v.reshape(B, S, num_heads, dk).transpose(0, 2, 1, 3)
    s = jnp.einsum("bhqd,bhkd->bhqk", qh, kh) / math.sqrt(dk)
    s = jnp.where(mask[:, None, :, :] == 0, -1e10, s)
    w = jax.nn.softmax(s, axis=-1)
    a = jnp.einsum("bhqk,bhkd->bhqd", w, vh).transpose(0, 2, 1, 3).reshape(B, S, D)
    attn = a @ p["wo"] + p["bo"][0]
    residual = attn
    yn = ln(attn, p["ln2_g"], p["ln2_b"])
    h = jax.nn.gelu(yn @ p["w1"] + p["b1"][0], approximate=False)
    ff = h @ p["w2"] + p["b2"][0]
    return residual + ff


# ----------------------------------- main -------------------------------------

if __name__ == "__main__":
    # Small shapes: correctness check only (far below the (8,128) vreg tile).
    B, S, D, H, DFF = 2, 8, 32, 4, 64

    key = jax.random.PRNGKey(0)
    keys = jax.random.split(key, 13)

    def lin(k, din, dout):
        return jax.random.normal(k, (din, dout), jnp.float32) * 0.05

    params = {
        "ln1_g": jnp.ones((1, D), jnp.float32),
        "ln1_b": jnp.zeros((1, D), jnp.float32),
        "wq": lin(keys[0], D, D), "bq": jax.random.normal(keys[1], (1, D)) * 0.01,
        "wk": lin(keys[2], D, D), "bk": jax.random.normal(keys[3], (1, D)) * 0.01,
        "wv": lin(keys[4], D, D), "bv": jax.random.normal(keys[5], (1, D)) * 0.01,
        "wo": lin(keys[6], D, D), "bo": jax.random.normal(keys[7], (1, D)) * 0.01,
        "ln2_g": jnp.ones((1, D), jnp.float32),
        "ln2_b": jnp.zeros((1, D), jnp.float32),
        "w1": lin(keys[8], D, DFF), "b1": jax.random.normal(keys[9], (1, DFF)) * 0.01,
        "w2": lin(keys[10], DFF, D), "b2": jax.random.normal(keys[11], (1, D)) * 0.01,
    }
    params = {k: v.astype(jnp.float32) for k, v in params.items()}

    x = jax.random.normal(keys[12], (B, S, D), jnp.float32)
    # causal target mask: 1 = attend, 0 = masked (batch-invariant -> (S, S))
    trg_mask = jnp.tril(jnp.ones((S, S), jnp.float32))

    prepped = prepare_decoder_params(params)   # bf16 cast / QKV fuse, done once

    out = decoder_layer(x, trg_mask, prepped, num_heads=H)
    out = jax.block_until_ready(out)

    ref = reference_decoder_layer(x, trg_mask, params, num_heads=H)
    assert out.shape == (B, S, D)
    # bf16 matmul operands (f32 accumulation) + approx softmax reciprocal give
    # ~1e-3 level deviation vs the all-f32 reference; 2e-2 leaves headroom.
    assert jnp.allclose(out, ref, rtol=2e-2, atol=2e-2), \
        f"max abs err {jnp.max(jnp.abs(out - ref))}"

    print("KERNEL_OK")
</pallas_src>

<mosaic_0001>
module attributes {stable_mosaic.version = 11 : i64} {
  func.func @k(%arg0: i32, %arg1: memref<8x128xf32, #tpu.memory_space<vmem>>, %arg2: memref<8x128xf32, #tpu.memory_space<vmem>>, %arg3: memref<8x128xf32, #tpu.memory_space<vmem>>) attributes {dimension_semantics = [#tpu.dimension_semantics<arbitrary>], iteration_bounds = array<i64: 2>, scalar_prefetch = 0 : i64, scratch_operands = 0 : i64, tpu.core_type = #tpu.core_type<tc>, window_params = [{pipeline_mode = #tpu.pipeline_mode<synchronous>, transform_indices = @transform_0, window_bounds = array<i64: 8, 128>}, {transform_indices = @transform_1, window_bounds = array<i64: 8, 128>}, {transform_indices = @transform_2, window_bounds = array<i64: 8, 128>}]} {
    %c0 = arith.constant 0 : index
    %c0_0 = arith.constant 0 : index
    %0 = vector.load %arg2[%c0, %c0_0] : memref<8x128xf32, #tpu.memory_space<vmem>>, vector<8x128xf32>
    %c0_1 = arith.constant 0 : index
    %c0_2 = arith.constant 0 : index
    %1 = vector.load %arg1[%c0_1, %c0_2] : memref<8x128xf32, #tpu.memory_space<vmem>>, vector<8x128xf32>
    %2 = arith.addf %0, %1 : vector<8x128xf32>
    %c0_3 = arith.constant 0 : index
    %c0_4 = arith.constant 0 : index
    %3 = vector.load %arg3[%c0_3, %c0_4] : memref<8x128xf32, #tpu.memory_space<vmem>>, vector<8x128xf32>
    tpu.vector_store %arg3[%c0_3, %c0_4], %2 {strides = array<i32>} : memref<8x128xf32, #tpu.memory_space<vmem>>, vector<8x128xf32>,
    return
  }
  func.func @transform_0(%arg0: i32) -> (i32, i32) {
    %c0_i32 = arith.constant 0 : i32
    %c0_i32_0 = arith.constant 0 : i32
    %c0_i32_1 = arith.constant 0 : i32
    return %c0_i32, %c0_i32_0 : i32, i32
  }
  func.func @transform_1(%arg0: i32) -> (i32, i32) {
    %c0_i32 = arith.constant 0 : i32
    %c0_i32_0 = arith.constant 0 : i32
    return %arg0, %c0_i32 : i32, i32
  }
  func.func @transform_2(%arg0: i32) -> (i32, i32) {
    %c0_i32 = arith.constant 0 : i32
    %c0_i32_0 = arith.constant 0 : i32
    return %arg0, %c0_i32 : i32, i32
  }
}

module attributes {stable_mosaic.version = 11 : i64} {
  func.func @decoder_layer_kernel(%arg0: i32, %arg1: memref<1x8x32xf32, #tpu.memory_space<vmem>>, %arg2: memref<1x8x8xbf16, #tpu.memory_space<vmem>>, %arg3: memref<1x32xf32, #tpu.memory_space<vmem>>, %arg4: memref<1x32xf32, #tpu.memory_space<vmem>>, %arg5: memref<32x96xbf16, #tpu.memory_space<vmem>>, %arg6: memref<1x96xf32, #tpu.memory_space<vmem>>, %arg7: memref<32x32xbf16, #tpu.memory_space<vmem>>, %arg8: memref<1x32xf32, #tpu.memory_space<vmem>>, %arg9: memref<1x32xf32, #tpu.memory_space<vmem>>, %arg10: memref<1x32xf32, #tpu.memory_space<vmem>>, %arg11: memref<32x64xbf16, #tpu.memory_space<vmem>>, %arg12: memref<1x64xf32, #tpu.memory_space<vmem>>, %arg13: memref<64x32xbf16, #tpu.memory_space<vmem>>, %arg14: memref<1x32xf32, #tpu.memory_space<vmem>>, %arg15: memref<1x8x32xf32, #tpu.memory_space<vmem>>, %arg16: memref<1x8x32xbf16, #tpu.memory_space<vmem>>) attributes {dimension_semantics = [#tpu.dimension_semantics<parallel>], iteration_bounds = array<i64: 2>, scalar_prefetch = 0 : i64, scratch_operands = 1 : i64, tpu.core_type = #tpu.core_type<tc>, window_params = [{transform_indices = @transform_0, window_bounds = array<i64: 1, 8, 32>}, {pipeline_mode = #tpu.pipeline_mode<synchronous>, transform_indices = @transform_1, window_bounds = array<i64: 1, 8, 8>}, {pipeline_mode = #tpu.pipeline_mode<synchronous>, transform_indices = @transform_2, window_bounds = array<i64: 1, 32>}, {pipeline_mode = #tpu.pipeline_mode<synchronous>, transform_indices = @transform_3, window_bounds = array<i64: 1, 32>}, {pipeline_mode = #tpu.pipeline_mode<synchronous>, transform_indices = @transform_4, window_bounds = array<i64: 32, 96>}, {pipeline_mode = #tpu.pipeline_mode<synchronous>, transform_indices = @transform_5, window_bounds = array<i64: 1, 96>}, {pipeline_mode = #tpu.pipeline_mode<synchronous>, transform_indices = @transform_6, window_bounds = array<i64: 32, 32>}, {pipeline_mode = #tpu.pipeline_mode<synchronous>, transform_indices = @transform_7, window_bounds = array<i64: 1, 32>}, {pipeline_mode = #tpu.pipeline_mode<synchronous>, transform_indices = @transform_8, window_bounds = array<i64: 1, 32>}, {pipeline_mode = #tpu.pipeline_mode<synchronous>, transform_indices = @transform_9, window_bounds = array<i64: 1, 32>}, {pipeline_mode = #tpu.pipeline_mode<synchronous>, transform_indices = @transform_10, window_bounds = array<i64: 32, 64>}, {pipeline_mode = #tpu.pipeline_mode<synchronous>, transform_indices = @transform_11, window_bounds = array<i64: 1, 64>}, {pipeline_mode = #tpu.pipeline_mode<synchronous>, transform_indices = @transform_12, window_bounds = array<i64: 64, 32>}, {pipeline_mode = #tpu.pipeline_mode<synchronous>, transform_indices = @transform_13, window_bounds = array<i64: 1, 32>}, {transform_indices = @transform_14, window_bounds = array<i64: 1, 8, 32>}]} {
    %c0 = arith.constant 0 : index
    %c0_0 = arith.constant 0 : index
    %c0_1 = arith.constant 0 : index
    %0 = vector.load %arg1[%c0, %c0_0, %c0_1] : memref<1x8x32xf32, #tpu.memory_space<vmem>>, vector<1x8x32xf32>
    %1 = vector.shape_cast %0 : vector<1x8x32xf32> to vector<8x32xf32>
    %c0_2 = arith.constant 0 : index
    %c0_3 = arith.constant 0 : index
    %2 = vector.load %arg3[%c0_2, %c0_3] : memref<1x32xf32, #tpu.memory_space<vmem>>, vector<1x32xf32>
    %3 = vector.shape_cast %2 : vector<1x32xf32> to vector<32xf32>
    %c0_4 = arith.constant 0 : index
    %c0_5 = arith.constant 0 : index
    %4 = vector.load %arg4[%c0_4, %c0_5] : memref<1x32xf32, #tpu.memory_space<vmem>>, vector<1x32xf32>
    %5 = vector.shape_cast %4 : vector<1x32xf32> to vector<32xf32>
    %cst = arith.constant dense<0.000000e+00> : vector<8xf32>
    %6 = vector.multi_reduction <add>, %1, %cst [1] : vector<8x32xf32> to vector<8xf32>
    %7 = vector.shape_cast %6 : vector<8xf32> to vector<8x1xf32>
    %cst_6 = arith.constant 3.200000e+01 : f32
    %8 = vector.broadcast %cst_6 : f32 to vector<8x1xf32>
    %9 = arith.divf %7, %8 : vector<8x1xf32>
    %10 = vector.broadcast %9 : vector<8x1xf32> to vector<8x32xf32>
    %11 = arith.subf %1, %10 : vector<8x32xf32>
    %12 = arith.mulf %11, %11 : vector<8x32xf32>
    %cst_7 = arith.constant dense<0.000000e+00> : vector<8xf32>
    %13 = vector.multi_reduction <add>, %12, %cst_7 [1] : vector<8x32xf32> to vector<8xf32>
    %14 = vector.shape_cast %13 : vector<8xf32> to vector<8x1xf32>
    %cst_8 = arith.constant 3.200000e+01 : f32
    %15 = vector.broadcast %cst_8 : f32 to vector<8x1xf32>
    %16 = arith.divf %14, %15 : vector<8x1xf32>
    %17 = vector.broadcast %9 : vector<8x1xf32> to vector<8x32xf32>
    %18 = arith.subf %1, %17 : vector<8x32xf32>
    %cst_9 = arith.constant 9.99999974E-6 : f32
    %19 = vector.broadcast %cst_9 : f32 to vector<8x1xf32>
    %20 = arith.addf %16, %19 : vector<8x1xf32>
    %21 = math.rsqrt %20 : vector<8x1xf32>
    %22 = vector.broadcast %21 : vector<8x1xf32> to vector<8x32xf32>
    %23 = arith.mulf %18, %22 : vector<8x32xf32>
    %24 = vector.shape_cast %3 : vector<32xf32> to vector<1x32xf32>
    %25 = vector.broadcast %24 : vector<1x32xf32> to vector<8x32xf32>
    %26 = arith.mulf %23, %25 : vector<8x32xf32>
    %27 = vector.shape_cast %5 : vector<32xf32> to vector<1x32xf32>
    %28 = vector.broadcast %27 : vector<1x32xf32> to vector<8x32xf32>
    %29 = arith.addf %26, %28 : vector<8x32xf32>
    %30 = arith.truncf %29 : vector<8x32xf32> to vector<8x32xbf16>
    %c0_10 = arith.constant 0 : index
    %c0_11 = arith.constant 0 : index
    %31 = vector.load %arg5[%c0_10, %c0_11] : memref<32x96xbf16, #tpu.memory_space<vmem>>, vector<32x96xbf16>
    %cst_12 = arith.constant dense<0.000000e+00> : vector<8x96xf32>
    %32 = tpu.matmul %30, %31, %cst_12 {dimension_numbers = #tpu.dot_dimension_numbers<[1], [0], [0], [1], [0, 0, 1, 1], [], []>} : vector<8x32xbf16>, vector<32x96xbf16>, vector<8x96xf32> -> vector<8x96xf32>
    %c0_13 = arith.constant 0 : index
    %c0_14 = arith.constant 0 : index
    %33 = vector.load %arg6[%c0_13, %c0_14] : memref<1x96xf32, #tpu.memory_space<vmem>>, vector<1x96xf32>
    %34 = vector.shape_cast %33 : vector<1x96xf32> to vector<96xf32>
    %35 = vector.shape_cast %34 : vector<96xf32> to vector<1x96xf32>
    %36 = vector.broadcast %35 : vector<1x96xf32> to vector<8x96xf32>
    %37 = arith.addf %32, %36 : vector<8x96xf32>
    %38 = vector.extract_strided_slice %37 {offsets = [0, 0], sizes = [8, 32], strides = [1, 1]} : vector<8x96xf32> to vector<8x32xf32>
    %39 = vector.shape_cast %38 : vector<8x32xf32> to vector<1x8x32xf32>
    %40 = vector.extract_strided_slice %37 {offsets = [0, 32], sizes = [8, 32], strides = [1, 1]} : vector<8x96xf32> to vector<8x32xf32>
    %41 = vector.shape_cast %40 : vector<8x32xf32> to vector<1x8x32xf32>
    %42 = vector.extract_strided_slice %37 {offsets = [0, 64], sizes = [8, 32], strides = [1, 1]} : vector<8x96xf32> to vector<8x32xf32>
    %43 = vector.shape_cast %42 : vector<8x32xf32> to vector<1x8x32xf32>
    %c0_15 = arith.constant 0 : index
    %c0_16 = arith.constant 0 : index
    %c0_17 = arith.constant 0 : index
    %44 = vector.load %arg2[%c0_15, %c0_16, %c0_17] : memref<1x8x8xbf16, #tpu.memory_space<vmem>>, vector<1x8x8xbf16>
    %45 = arith.extf %44 : vector<1x8x8xbf16> to vector<1x8x8xf32>
    %46 = arith.truncf %39 : vector<1x8x32xf32> to vector<1x8x32xbf16>
    %47 = arith.truncf %41 : vector<1x8x32xf32> to vector<1x8x32xbf16>
    %48 = arith.truncf %43 : vector<1x8x32xf32> to vector<1x8x32xbf16>
    %49 = vector.extract_strided_slice %46 {offsets = [0, 0, 0], sizes = [1, 8, 8], strides = [1, 1, 1]} : vector<1x8x32xbf16> to vector<1x8x8xbf16>
    %50 = vector.extract_strided_slice %47 {offsets = [0, 0, 0], sizes = [1, 8, 8], strides = [1, 1, 1]} : vector<1x8x32xbf16> to vector<1x8x8xbf16>
    "tpu.trace_start"() <{level = 10 : i32, message = "bqd,bkd->bqk"}> : () -> ()
    %cst_18 = arith.constant dense<0.000000e+00> : vector<1x8x8xf32>
    %51 = tpu.matmul %49, %50, %cst_18 {dimension_numbers = #tpu.dot_dimension_numbers<[2], [2], [1], [1], [0, 0, 0, 1, 1, 1], [0], [0]>} : vector<1x8x8xbf16>, vector<1x8x8xbf16>, vector<1x8x8xf32> -> vector<1x8x8xf32>
    "tpu.trace_stop"() : () -> ()
    %cst_19 = arith.constant 0.353553385 : f32
    %52 = vector.broadcast %cst_19 : f32 to vector<1x8x8xf32>
    %53 = arith.mulf %51, %52 : vector<1x8x8xf32>
    %54 = arith.addf %53, %45 : vector<1x8x8xf32>
    %cst_20 = arith.constant dense<0xFF800000> : vector<1x8xf32>
    %55 = vector.multi_reduction <maximumf>, %54, %cst_20 [2] : vector<1x8x8xf32> to vector<1x8xf32>
    %56 = vector.shape_cast %55 : vector<1x8xf32> to vector<1x8x1xf32>
    %57 = vector.broadcast %56 : vector<1x8x1xf32> to vector<1x8x8xf32>
    %58 = arith.subf %54, %57 : vector<1x8x8xf32>
    %59 = math.exp %58 : vector<1x8x8xf32>
    %cst_21 = arith.constant dense<0.000000e+00> : vector<1x8xf32>
    %60 = vector.multi_reduction <add>, %59, %cst_21 [2] : vector<1x8x8xf32> to vector<1x8xf32>
    %61 = vector.shape_cast %60 : vector<1x8xf32> to vector<1x8x1xf32>
    %62 = tpu.reciprocal %61 {approx = true} : vector<1x8x1xf32> -> vector<1x8x1xf32>
    %63 = vector.broadcast %62 : vector<1x8x1xf32> to vector<1x8x8xf32>
    %64 = arith.mulf %59, %63 : vector<1x8x8xf32>
    %65 = arith.truncf %64 : vector<1x8x8xf32> to vector<1x8x8xbf16>
    %66 = vector.extract_strided_slice %48 {offsets = [0, 0, 0], sizes = [1, 8, 8], strides = [1, 1, 1]} : vector<1x8x32xbf16> to vector<1x8x8xbf16>
    "tpu.trace_start"() <{level = 10 : i32, message = "bqk,bkd->bqd"}> : () -> ()
    %cst_22 = arith.constant dense<0.000000e+00> : vector<1x8x8xf32>
    %67 = tpu.matmul %65, %66, %cst_22 {dimension_numbers = #tpu.dot_dimension_numbers<[2], [1], [1], [2], [0, 0, 0, 1, 1, 2], [0], [0]>} : vector<1x8x8xbf16>, vector<1x8x8xbf16>, vector<1x8x8xf32> -> vector<1x8x8xf32>
    "tpu.trace_stop"() : () -> ()
    %68 = arith.truncf %67 : vector<1x8x8xf32> to vector<1x8x8xbf16>
    %c0_23 = arith.constant 0 : index
    %c0_24 = arith.constant 0 : index
    %c0_25 = arith.constant 0 : index
    %69 = vector.load %arg16[%c0_23, %c0_24, %c0_25] : memref<1x8x32xbf16, #tpu.memory_space<vmem>>, vector<1x8x8xbf16>
    tpu.vector_store %arg16[%c0_23, %c0_24, %c0_25], %68 {strides = array<i32>} : memref<1x8x32xbf16, #tpu.memory_space<vmem>>, vector<1x8x8xbf16>,
    %70 = vector.extract_strided_slice %46 {offsets = [0, 0, 8], sizes = [1, 8, 8], strides = [1, 1, 1]} : vector<1x8x32xbf16> to vector<1x8x8xbf16>
    %71 = vector.extract_strided_slice %47 {offsets = [0, 0, 8], sizes = [1, 8, 8], strides = [1, 1, 1]} : vector<1x8x32xbf16> to vector<1x8x8xbf16>
    "tpu.trace_start"() <{level = 10 : i32, message = "bqd,bkd->bqk"}> : () -> ()
    %cst_26 = arith.constant dense<0.000000e+00> : vector<1x8x8xf32>
    %72 = tpu.matmul %70, %71, %cst_26 {dimension_numbers = #tpu.dot_dimension_numbers<[2], [2], [1], [1], [0, 0, 0, 1, 1, 1], [0], [0]>} : vector<1x8x8xbf16>, vector<1x8x8xbf16>, vector<1x8x8xf32> -> vector<1x8x8xf32>
    "tpu.trace_stop"() : () -> ()
    %cst_27 = arith.constant 0.353553385 : f32
    %73 = vector.broadcast %cst_27 : f32 to vector<1x8x8xf32>
    %74 = arith.mulf %72, %73 : vector<1x8x8xf32>
    %75 = arith.addf %74, %45 : vector<1x8x8xf32>
    %cst_28 = arith.constant dense<0xFF800000> : vector<1x8xf32>
    %76 = vector.multi_reduction <maximumf>, %75, %cst_28 [2] : vector<1x8x8xf32> to vector<1x8xf32>
    %77 = vector.shape_cast %76 : vector<1x8xf32> to vector<1x8x1xf32>
    %78 = vector.broadcast %77 : vector<1x8x1xf32> to vector<1x8x8xf32>
    %79 = arith.subf %75, %78 : vector<1x8x8xf32>
    %80 = math.exp %79 : vector<1x8x8xf32>
    %cst_29 = arith.constant dense<0.000000e+00> : vector<1x8xf32>
    %81 = vector.multi_reduction <add>, %80, %cst_29 [2] : vector<1x8x8xf32> to vector<1x8xf32>
    %82 = vector.shape_cast %81 : vector<1x8xf32> to vector<1x8x1xf32>
    %83 = tpu.reciprocal %82 {approx = true} : vector<1x8x1xf32> -> vector<1x8x1xf32>
    %84 = vector.broadcast %83 : vector<1x8x1xf32> to vector<1x8x8xf32>
    %85 = arith.mulf %80, %84 : vector<1x8x8xf32>
    %86 = arith.truncf %85 : vector<1x8x8xf32> to vector<1x8x8xbf16>
    %87 = vector.extract_strided_slice %48 {offsets = [0, 0, 8], sizes = [1, 8, 8], strides = [1, 1, 1]} : vector<1x8x32xbf16> to vector<1x8x8xbf16>
    "tpu.trace_start"() <{level = 10 : i32, message = "bqk,bkd->bqd"}> : () -> ()
    %cst_30 = arith.constant dense<0.000000e+00> : vector<1x8x8xf32>
    %88 = tpu.matmul %86, %87, %cst_30 {dimension_numbers = #tpu.dot_dimension_numbers<[2], [1], [1], [2], [0, 0, 0, 1, 1, 2], [0], [0]>} : vector<1x8x8xbf16>, vector<1x8x8xbf16>, vector<1x8x8xf32> -> vector<1x8x8xf32>
    "tpu.trace_stop"() : () -> ()
    %89 = arith.truncf %88 : vector<1x8x8xf32> to vector<1x8x8xbf16>
    %c0_31 = arith.constant 0 : index
    %c0_32 = arith.constant 0 : index
    %c8 = arith.constant 8 : index
    %90 = vector.load %arg16[%c0_31, %c0_32, %c8] : memref<1x8x32xbf16, #tpu.memory_space<vmem>>, vector<1x8x8xbf16>
    tpu.vector_store %arg16[%c0_31, %c0_32, %c8], %89 {strides = array<i32>} : memref<1x8x32xbf16, #tpu.memory_space<vmem>>, vector<1x8x8xbf16>,
    %91 = vector.extract_strided_slice %46 {offsets = [0, 0, 16], sizes = [1, 8, 8], strides = [1, 1, 1]} : vector<1x8x32xbf16> to vector<1x8x8xbf16>
    %92 = vector.extract_strided_slice %47 {offsets = [0, 0, 16], sizes = [1, 8, 8], strides = [1, 1, 1]} : vector<1x8x32xbf16> to vector<1x8x8xbf16>
    "tpu.trace_start"() <{level = 10 : i32, message = "bqd,bkd->bqk"}> : () -> ()
    %cst_33 = arith.constant dense<0.000000e+00> : vector<1x8x8xf32>
    %93 = tpu.matmul %91, %92, %cst_33 {dimension_numbers = #tpu.dot_dimension_numbers<[2], [2], [1], [1], [0, 0, 0, 1, 1, 1], [0], [0]>} : vector<1x8x8xbf16>, vector<1x8x8xbf16>, vector<1x8x8xf32> -> vector<1x8x8xf32>
    "tpu.trace_stop"() : () -> ()
    %cst_34 = arith.constant 0.353553385 : f32
    %94 = vector.broadcast %cst_34 : f32 to vector<1x8x8xf32>
    %95 = arith.mulf %93, %94 : vector<1x8x8xf32>
    %96 = arith.addf %95, %45 : vector<1x8x8xf32>
    %cst_35 = arith.constant dense<0xFF800000> : vector<1x8xf32>
    %97 = vector.multi_reduction <maximumf>, %96, %cst_35 [2] : vector<1x8x8xf32> to vector<1x8xf32>
    %98 = vector.shape_cast %97 : vector<1x8xf32> to vector<1x8x1xf32>
    %99 = vector.broadcast %98 : vector<1x8x1xf32> to vector<1x8x8xf32>
    %100 = arith.subf %96, %99 : vector<1x8x8xf32>
    %101 = math.exp %100 : vector<1x8x8xf32>
    %cst_36 = arith.constant dense<0.000000e+00> : vector<1x8xf32>
    %102 = vector.multi_reduction <add>, %101, %cst_36 [2] : vector<1x8x8xf32> to vector<1x8xf32>
    %103 = vector.shape_cast %102 : vector<1x8xf32> to vector<1x8x1xf32>
    %104 = tpu.reciprocal %103 {approx = true} : vector<1x8x1xf32> -> vector<1x8x1xf32>
    %105 = vector.broadcast %104 : vector<1x8x1xf32> to vector<1x8x8xf32>
    %106 = arith.mulf %101, %105 : vector<1x8x8xf32>
    %107 = arith.truncf %106 : vector<1x8x8xf32> to vector<1x8x8xbf16>
    %108 = vector.extract_strided_slice %48 {offsets = [0, 0, 16], sizes = [1, 8, 8], strides = [1, 1, 1]} : vector<1x8x32xbf16> to vector<1x8x8xbf16>
    "tpu.trace_start"() <{level = 10 : i32, message = "bqk,bkd->bqd"}> : () -> ()
    %cst_37 = arith.constant dense<0.000000e+00> : vector<1x8x8xf32>
    %109 = tpu.matmul %107, %108, %cst_37 {dimension_numbers = #tpu.dot_dimension_numbers<[2], [1], [1], [2], [0, 0, 0, 1, 1, 2], [0], [0]>} : vector<1x8x8xbf16>, vector<1x8x8xbf16>, vector<1x8x8xf32> -> vector<1x8x8xf32>
    "tpu.trace_stop"() : () -> ()
    %110 = arith.truncf %109 : vector<1x8x8xf32> to vector<1x8x8xbf16>
    %c0_38 = arith.constant 0 : index
    %c0_39 = arith.constant 0 : index
    %c16 = arith.constant 16 : index
    %111 = vector.load %arg16[%c0_38, %c0_39, %c16] : memref<1x8x32xbf16, #tpu.memory_space<vmem>>, vector<1x8x8xbf16>
    tpu.vector_store %arg16[%c0_38, %c0_39, %c16], %110 {strides = array<i32>} : memref<1x8x32xbf16, #tpu.memory_space<vmem>>, vector<1x8x8xbf16>,
    %112 = vector.extract_strided_slice %46 {offsets = [0, 0, 24], sizes = [1, 8, 8], strides = [1, 1, 1]} : vector<1x8x32xbf16> to vector<1x8x8xbf16>
    %113 = vector.extract_strided_slice %47 {offsets = [0, 0, 24], sizes = [1, 8, 8], strides = [1, 1, 1]} : vector<1x8x32xbf16> to vector<1x8x8xbf16>
    "tpu.trace_start"() <{level = 10 : i32, message = "bqd,bkd->bqk"}> : () -> ()
    %cst_40 = arith.constant dense<0.000000e+00> : vector<1x8x8xf32>
    %114 = tpu.matmul %112, %113, %cst_40 {dimension_numbers = #tpu.dot_dimension_numbers<[2], [2], [1], [1], [0, 0, 0, 1, 1, 1], [0], [0]>} : vector<1x8x8xbf16>, vector<1x8x8xbf16>, vector<1x8x8xf32> -> vector<1x8x8xf32>
    "tpu.trace_stop"() : () -> ()
    %cst_41 = arith.constant 0.353553385 : f32
    %115 = vector.broadcast %cst_41 : f32 to vector<1x8x8xf32>
    %116 = arith.mulf %114, %115 : vector<1x8x8xf32>
    %117 = arith.addf %116, %45 : vector<1x8x8xf32>
    %cst_42 = arith.constant dense<0xFF800000> : vector<1x8xf32>
    %118 = vector.multi_reduction <maximumf>, %117, %cst_42 [2] : vector<1x8x8xf32> to vector<1x8xf32>
    %119 = vector.shape_cast %118 : vector<1x8xf32> to vector<1x8x1xf32>
    %120 = vector.broadcast %119 : vector<1x8x1xf32> to vector<1x8x8xf32>
    %121 = arith.subf %117, %120 : vector<1x8x8xf32>
    %122 = math.exp %121 : vector<1x8x8xf32>
    %cst_43 = arith.constant dense<0.000000e+00> : vector<1x8xf32>
    %123 = vector.multi_reduction <add>, %122, %cst_43 [2] : vector<1x8x8xf32> to vector<1x8xf32>
    %124 = vector.shape_cast %123 : vector<1x8xf32> to vector<1x8x1xf32>
    %125 = tpu.reciprocal %124 {approx = true} : vector<1x8x1xf32> -> vector<1x8x1xf32>
    %126 = vector.broadcast %125 : vector<1x8x1xf32> to vector<1x8x8xf32>
    %127 = arith.mulf %122, %126 : vector<1x8x8xf32>
    %128 = arith.truncf %127 : vector<1x8x8xf32> to vector<1x8x8xbf16>
    %129 = vector.extract_strided_slice %48 {offsets = [0, 0, 24], sizes = [1, 8, 8], strides = [1, 1, 1]} : vector<1x8x32xbf16> to vector<1x8x8xbf16>
    "tpu.trace_start"() <{level = 10 : i32, message = "bqk,bkd->bqd"}> : () -> ()
    %cst_44 = arith.constant dense<0.000000e+00> : vector<1x8x8xf32>
    %130 = tpu.matmul %128, %129, %cst_44 {dimension_numbers = #tpu.dot_dimension_numbers<[2], [1], [1], [2], [0, 0, 0, 1, 1, 2], [0], [0]>} : vector<1x8x8xbf16>, vector<1x8x8xbf16>, vector<1x8x8xf32> -> vector<1x8x8xf32>
    "tpu.trace_stop"() : () -> ()
    %131 = arith.truncf %130 : vector<1x8x8xf32> to vector<1x8x8xbf16>
    %c0_45 = arith.constant 0 : index
    %c0_46 = arith.constant 0 : index
    %c24 = arith.constant 24 : index
    %132 = vector.load %arg16[%c0_45, %c0_46, %c24] : memref<1x8x32xbf16, #tpu.memory_space<vmem>>, vector<1x8x8xbf16>
    tpu.vector_store %arg16[%c0_45, %c0_46, %c24], %131 {strides = array<i32>} : memref<1x8x32xbf16, #tpu.memory_space<vmem>>, vector<1x8x8xbf16>,
    %c0_47 = arith.constant 0 : index
    %c0_48 = arith.constant 0 : index
    %c0_49 = arith.constant 0 : index
    %133 = vector.load %arg16[%c0_47, %c0_48, %c0_49] : memref<1x8x32xbf16, #tpu.memory_space<vmem>>, vector<1x8x32xbf16>
    %134 = vector.shape_cast %133 : vector<1x8x32xbf16> to vector<8x32xbf16>
    %c0_50 = arith.constant 0 : index
    %c0_51 = arith.constant 0 : index
    %135 = vector.load %arg7[%c0_50, %c0_51] : memref<32x32xbf16, #tpu.memory_space<vmem>>, vector<32x32xbf16>
    %cst_52 = arith.constant dense<0.000000e+00> : vector<8x32xf32>
    %136 = tpu.matmul %134, %135, %cst_52 {dimension_numbers = #tpu.dot_dimension_numbers<[1], [0], [0], [1], [0, 0, 1, 1], [], []>} : vector<8x32xbf16>, vector<32x32xbf16>, vector<8x32xf32> -> vector<8x32xf32>
    %c0_53 = arith.constant 0 : index
    %c0_54 = arith.constant 0 : index
    %137 = vector.load %arg8[%c0_53, %c0_54] : memref<1x32xf32, #tpu.memory_space<vmem>>, vector<1x32xf32>
    %138 = vector.shape_cast %137 : vector<1x32xf32> to vector<32xf32>
    %139 = vector.shape_cast %138 : vector<32xf32> to vector<1x32xf32>
    %140 = vector.broadcast %139 : vector<1x32xf32> to vector<8x32xf32>
    %141 = arith.addf %136, %140 : vector<8x32xf32>
    %c0_55 = arith.constant 0 : index
    %c0_56 = arith.constant 0 : index
    %142 = vector.load %arg9[%c0_55, %c0_56] : memref<1x32xf32, #tpu.memory_space<vmem>>, vector<1x32xf32>
    %143 = vector.shape_cast %142 : vector<1x32xf32> to vector<32xf32>
    %c0_57 = arith.constant 0 : index
    %c0_58 = arith.constant 0 : index
    %144 = vector.load %arg10[%c0_57, %c0_58] : memref<1x32xf32, #tpu.memory_space<vmem>>, vector<1x32xf32>
    %145 = vector.shape_cast %144 : vector<1x32xf32> to vector<32xf32>
    %cst_59 = arith.constant dense<0.000000e+00> : vector<8xf32>
    %146 = vector.multi_reduction <add>, %141, %cst_59 [1] : vector<8x32xf32> to vector<8xf32>
    %147 = vector.shape_cast %146 : vector<8xf32> to vector<8x1xf32>
    %cst_60 = arith.constant 3.200000e+01 : f32
    %148 = vector.broadcast %cst_60 : f32 to vector<8x1xf32>
    %149 = arith.divf %147, %148 : vector<8x1xf32>
    %150 = vector.broadcast %149 : vector<8x1xf32> to vector<8x32xf32>
    %151 = arith.subf %141, %150 : vector<8x32xf32>
    %152 = arith.mulf %151, %151 : vector<8x32xf32>
    %cst_61 = arith.constant dense<0.000000e+00> : vector<8xf32>
    %153 = vector.multi_reduction <add>, %152, %cst_61 [1] : vector<8x32xf32> to vector<8xf32>
    %154 = vector.shape_cast %153 : vector<8xf32> to vector<8x1xf32>
    %cst_62 = arith.constant 3.200000e+01 : f32
    %155 = vector.broadcast %cst_62 : f32 to vector<8x1xf32>
    %156 = arith.divf %154, %155 : vector<8x1xf32>
    %157 = vector.broadcast %149 : vector<8x1xf32> to vector<8x32xf32>
    %158 = arith.subf %141, %157 : vector<8x32xf32>
    %cst_63 = arith.constant 9.99999974E-6 : f32
    %159 = vector.broadcast %cst_63 : f32 to vector<8x1xf32>
    %160 = arith.addf %156, %159 : vector<8x1xf32>
    %161 = math.rsqrt %160 : vector<8x1xf32>
    %162 = vector.broadcast %161 : vector<8x1xf32> to vector<8x32xf32>
    %163 = arith.mulf %158, %162 : vector<8x32xf32>
    %164 = vector.shape_cast %143 : vector<32xf32> to vector<1x32xf32>
    %165 = vector.broadcast %164 : vector<1x32xf32> to vector<8x32xf32>
    %166 = arith.mulf %163, %165 : vector<8x32xf32>
    %167 = vector.shape_cast %145 : vector<32xf32> to vector<1x32xf32>
    %168 = vector.broadcast %167 : vector<1x32xf32> to vector<8x32xf32>
    %169 = arith.addf %166, %168 : vector<8x32xf32>
    %170 = arith.truncf %169 : vector<8x32xf32> to vector<8x32xbf16>
    %c0_64 = arith.constant 0 : index
    %c0_65 = arith.constant 0 : index
    %171 = vector.load %arg11[%c0_64, %c0_65] : memref<32x64xbf16, #tpu.memory_space<vmem>>, vector<32x64xbf16>
    %cst_66 = arith.constant dense<0.000000e+00> : vector<8x64xf32>
    %172 = tpu.matmul %170, %171, %cst_66 {dimension_numbers = #tpu.dot_dimension_numbers<[1], [0], [0], [1], [0, 0, 1, 1], [], []>} : vector<8x32xbf16>, vector<32x64xbf16>, vector<8x64xf32> -> vector<8x64xf32>
    %c0_67 = arith.constant 0 : index
    %c0_68 = arith.constant 0 : index
    %173 = vector.load %arg12[%c0_67, %c0_68] : memref<1x64xf32, #tpu.memory_space<vmem>>, vector<1x64xf32>
    %174 = vector.shape_cast %173 : vector<1x64xf32> to vector<64xf32>
    %175 = vector.shape_cast %174 : vector<64xf32> to vector<1x64xf32>
    %176 = vector.broadcast %175 : vector<1x64xf32> to vector<8x64xf32>
    %177 = arith.addf %172, %176 : vector<8x64xf32>
    %cst_69 = arith.constant 5.000000e-01 : f32
    %178 = vector.broadcast %cst_69 : f32 to vector<8x64xf32>
    %179 = arith.mulf %178, %177 : vector<8x64xf32>
    %cst_70 = arith.constant 0.707106769 : f32
    %180 = vector.broadcast %cst_70 : f32 to vector<8x64xf32>
    %181 = arith.mulf %177, %180 : vector<8x64xf32>
    %cst_71 = arith.constant 0.000000e+00 : f32
    %182 = vector.broadcast %cst_71 : f32 to vector<8x64xf32>
    %183 = arith.cmpf oge, %181, %182 : vector<8x64xf32>
    %cst_72 = arith.constant 1.000000e+00 : f32
    %cst_73 = arith.constant -1.000000e+00 : f32
    %184 = vector.broadcast %cst_72 : f32 to vector<8x64xf32>
    %185 = vector.broadcast %cst_73 : f32 to vector<8x64xf32>
    %186 = arith.select %183, %184, %185 : vector<8x64xi1>, vector<8x64xf32>
    %187 = math.absf %181 : vector<8x64xf32>
    %cst_74 = arith.constant 0.327591091 : f32
    %188 = vector.broadcast %cst_74 : f32 to vector<8x64xf32>
    %189 = arith.mulf %188, %187 : vector<8x64xf32>
    %cst_75 = arith.constant 1.000000e+00 : f32
    %190 = vector.broadcast %cst_75 : f32 to vector<8x64xf32>
    %191 = arith.addf %190, %189 : vector<8x64xf32>
    %cst_76 = arith.constant 1.000000e+00 : f32
    %192 = vector.broadcast %cst_76 : f32 to vector<8x64xf32>
    %193 = arith.divf %192, %191 : vector<8x64xf32>
    %cst_77 = arith.constant 1.06140542 : f32
    %194 = vector.broadcast %cst_77 : f32 to vector<8x64xf32>
    %195 = arith.mulf %194, %193 : vector<8x64xf32>
    %cst_78 = arith.constant -1.45315206 : f32
    %196 = vector.broadcast %cst_78 : f32 to vector<8x64xf32>
    %197 = arith.addf %195, %196 : vector<8x64xf32>
    %198 = arith.mulf %197, %193 : vector<8x64xf32>
    %cst_79 = arith.constant 1.42141378 : f32
    %199 = vector.broadcast %cst_79 : f32 to vector<8x64xf32>
    %200 = arith.addf %198, %199 : vector<8x64xf32>
    %201 = arith.mulf %200, %193 : vector<8x64xf32>
    %cst_80 = arith.constant -0.284496725 : f32
    %202 = vector.broadcast %cst_80 : f32 to vector<8x64xf32>
    %203 = arith.addf %201, %202 : vector<8x64xf32>
    %204 = arith.mulf %203, %193 : vector<8x64xf32>
    %cst_81 = arith.constant 0.254829586 : f32
    %205 = vector.broadcast %cst_81 : f32 to vector<8x64xf32>
    %206 = arith.addf %204, %205 : vector<8x64xf32>
    %207 = arith.mulf %206, %193 : vector<8x64xf32>
    %cst_82 = arith.constant 0.000000e+00 : f32
    %208 = vector.broadcast %cst_82 : f32 to vector<8x64xf32>
    %209 = arith.subf %208, %187 : vector<8x64xf32>
    %210 = arith.mulf %209, %187 : vector<8x64xf32>
    %211 = math.exp %210 : vector<8x64xf32>
    %212 = arith.mulf %207, %211 : vector<8x64xf32>
    %cst_83 = arith.constant 1.000000e+00 : f32
    %213 = vector.broadcast %cst_83 : f32 to vector<8x64xf32>
    %214 = arith.subf %213, %212 : vector<8x64xf32>
    %215 = arith.mulf %186, %214 : vector<8x64xf32>
    %cst_84 = arith.constant 1.000000e+00 : f32
    %216 = vector.broadcast %cst_84 : f32 to vector<8x64xf32>
    %217 = arith.addf %216, %215 : vector<8x64xf32>
    %218 = arith.mulf %179, %217 : vector<8x64xf32>
    %219 = arith.truncf %218 : vector<8x64xf32> to vector<8x64xbf16>
    %c0_85 = arith.constant 0 : index
    %c0_86 = arith.constant 0 : index
    %220 = vector.load %arg13[%c0_85, %c0_86] : memref<64x32xbf16, #tpu.memory_space<vmem>>, vector<64x32xbf16>
    %cst_87 = arith.constant dense<0.000000e+00> : vector<8x32xf32>
    %221 = tpu.matmul %219, %220, %cst_87 {dimension_numbers = #tpu.dot_dimension_numbers<[1], [0], [0], [1], [0, 0, 1, 1], [], []>} : vector<8x64xbf16>, vector<64x32xbf16>, vector<8x32xf32> -> vector<8x32xf32>
    %c0_88 = arith.constant 0 : index
    %c0_89 = arith.constant 0 : index
    %222 = vector.load %arg14[%c0_88, %c0_89] : memref<1x32xf32, #tpu.memory_space<vmem>>, vector<1x32xf32>
    %223 = vector.shape_cast %222 : vector<1x32xf32> to vector<32xf32>
    %224 = vector.shape_cast %223 : vector<32xf32> to vector<1x32xf32>
    %225 = vector.broadcast %224 : vector<1x32xf32> to vector<8x32xf32>
    %226 = arith.addf %221, %225 : vector<8x32xf32>
    %227 = arith.addf %141, %226 : vector<8x32xf32>
    %228 = vector.shape_cast %227 : vector<8x32xf32> to vector<1x8x32xf32>
    %c0_90 = arith.constant 0 : index
    %c0_91 = arith.constant 0 : index
    %c0_92 = arith.constant 0 : index
    %229 = vector.load %arg15[%c0_90, %c0_91, %c0_92] : memref<1x8x32xf32, #tpu.memory_space<vmem>>, vector<1x8x32xf32>
    tpu.vector_store %arg15[%c0_90, %c0_91, %c0_92], %228 {strides = array<i32>} : memref<1x8x32xf32, #tpu.memory_space<vmem>>, vector<1x8x32xf32>,
    return
  }
  func.func @transform_0(%arg0: i32) -> (i32, i32, i32) {
    %c0_i32 = arith.constant 0 : i32
    %c0_i32_0 = arith.constant 0 : i32
    %c0_i32_1 = arith.constant 0 : i32
    return %arg0, %c0_i32, %c0_i32_0 : i32, i32, i32
  }
  func.func @transform_1(%arg0: i32) -> (i32, i32, i32) {
    %c0_i32 = arith.constant 0 : i32
    %c0_i32_0 = arith.constant 0 : i32
    %c0_i32_1 = arith.constant 0 : i32
    %c0_i32_2 = arith.constant 0 : i32
    return %c0_i32, %c0_i32_0, %c0_i32_1 : i32, i32, i32
  }
  func.func @transform_2(%arg0: i32) -> (i32, i32) {
    %c0_i32 = arith.constant 0 : i32
    %c0_i32_0 = arith.constant 0 : i32
    %c0_i32_1 = arith.constant 0 : i32
    return %c0_i32, %c0_i32_0 : i32, i32
  }
  func.func @transform_3(%arg0: i32) -> (i32, i32) {
    %c0_i32 = arith.constant 0 : i32
    %c0_i32_0 = arith.constant 0 : i32
    %c0_i32_1 = arith.constant 0 : i32
    return %c0_i32, %c0_i32_0 : i32, i32
  }
  func.func @transform_4(%arg0: i32) -> (i32, i32) {
    %c0_i32 = arith.constant 0 : i32
    %c0_i32_0 = arith.constant 0 : i32
    %c0_i32_1 = arith.constant 0 : i32
    return %c0_i32, %c0_i32_0 : i32, i32
  }
  func.func @transform_5(%arg0: i32) -> (i32, i32) {
    %c0_i32 = arith.constant 0 : i32
    %c0_i32_0 = arith.constant 0 : i32
    %c0_i32_1 = arith.constant 0 : i32
    return %c0_i32, %c0_i32_0 : i32, i32
  }
  func.func @transform_6(%arg0: i32) -> (i32, i32) {
    %c0_i32 = arith.constant 0 : i32
    %c0_i32_0 = arith.constant 0 : i32
    %c0_i32_1 = arith.constant 0 : i32
    return %c0_i32, %c0_i32_0 : i32, i32
  }
  func.func @transform_7(%arg0: i32) -> (i32, i32) {
    %c0_i32 = arith.constant 0 : i32
    %c0_i32_0 = arith.constant 0 : i32
    %c0_i32_1 = arith.constant 0 : i32
    return %c0_i32, %c0_i32_0 : i32, i32
  }
  func.func @transform_8(%arg0: i32) -> (i32, i32) {
    %c0_i32 = arith.constant 0 : i32
    %c0_i32_0 = arith.constant 0 : i32
    %c0_i32_1 = arith.constant 0 : i32
    return %c0_i32, %c0_i32_0 : i32, i32
  }
  func.func @transform_9(%arg0: i32) -> (i32, i32) {
    %c0_i32 = arith.constant 0 : i32
    %c0_i32_0 = arith.constant 0 : i32
    %c0_i32_1 = arith.constant 0 : i32
    return %c0_i32, %c0_i32_0 : i32, i32
  }
  func.func @transform_10(%arg0: i32) -> (i32, i32) {
    %c0_i32 = arith.constant 0 : i32
    %c0_i32_0 = arith.constant 0 : i32
    %c0_i32_1 = arith.constant 0 : i32
    return %c0_i32, %c0_i32_0 : i32, i32
  }
  func.func @transform_11(%arg0: i32) -> (i32, i32) {
    %c0_i32 = arith.constant 0 : i32
    %c0_i32_0 = arith.constant 0 : i32
    %c0_i32_1 = arith.constant 0 : i32
    return %c0_i32, %c0_i32_0 : i32, i32
  }
  func.func @transform_12(%arg0: i32) -> (i32, i32) {
    %c0_i32 = arith.constant 0 : i32
    %c0_i32_0 = arith.constant 0 : i32
    %c0_i32_1 = arith.constant 0 : i32
    return %c0_i32, %c0_i32_0 : i32, i32
  }
  func.func @transform_13(%arg0: i32) -> (i32, i32) {
    %c0_i32 = arith.constant 0 : i32
    %c0_i32_0 = arith.constant 0 : i32
    %c0_i32_1 = arith.constant 0 : i32
    return %c0_i32, %c0_i32_0 : i32, i32
  }
  func.func @transform_14(%arg0: i32) -> (i32, i32, i32) {
    %c0_i32 = arith.constant 0 : i32
    %c0_i32_0 = arith.constant 0 : i32
    %c0_i32_1 = arith.constant 0 : i32
    return %arg0, %c0_i32, %c0_i32_0 : i32, i32, i32
  }
}

module attributes {stable_mosaic.version = 11 : i64} {
  func.func @decoder_layer_kernel(%arg0: i32, %arg1: memref<1x8x32xf32, #tpu.memory_space<vmem>>, %arg2: memref<1x8x8xbf16, #tpu.memory_space<vmem>>, %arg3: memref<1x32xf32, #tpu.memory_space<vmem>>, %arg4: memref<1x32xf32, #tpu.memory_space<vmem>>, %arg5: memref<32x96xbf16, #tpu.memory_space<vmem>>, %arg6: memref<1x96xf32, #tpu.memory_space<vmem>>, %arg7: memref<32x32xbf16, #tpu.memory_space<vmem>>, %arg8: memref<1x32xf32, #tpu.memory_space<vmem>>, %arg9: memref<1x32xf32, #tpu.memory_space<vmem>>, %arg10: memref<1x32xf32, #tpu.memory_space<vmem>>, %arg11: memref<32x64xbf16, #tpu.memory_space<vmem>>, %arg12: memref<1x64xf32, #tpu.memory_space<vmem>>, %arg13: memref<64x32xbf16, #tpu.memory_space<vmem>>, %arg14: memref<1x32xf32, #tpu.memory_space<vmem>>, %arg15: memref<1x8x32xf32, #tpu.memory_space<vmem>>, %arg16: memref<1x8x32xf32, #tpu.memory_space<vmem>>) attributes {dimension_semantics = [#tpu.dimension_semantics<parallel>], iteration_bounds = array<i64: 2>, scalar_prefetch = 0 : i64, scratch_operands = 1 : i64, tpu.core_type = #tpu.core_type<tc>, window_params = [{transform_indices = @transform_0, window_bounds = array<i64: 1, 8, 32>}, {pipeline_mode = #tpu.pipeline_mode<synchronous>, transform_indices = @transform_1, window_bounds = array<i64: 1, 8, 8>}, {pipeline_mode = #tpu.pipeline_mode<synchronous>, transform_indices = @transform_2, window_bounds = array<i64: 1, 32>}, {pipeline_mode = #tpu.pipeline_mode<synchronous>, transform_indices = @transform_3, window_bounds = array<i64: 1, 32>}, {pipeline_mode = #tpu.pipeline_mode<synchronous>, transform_indices = @transform_4, window_bounds = array<i64: 32, 96>}, {pipeline_mode = #tpu.pipeline_mode<synchronous>, transform_indices = @transform_5, window_bounds = array<i64: 1, 96>}, {pipeline_mode = #tpu.pipeline_mode<synchronous>, transform_indices = @transform_6, window_bounds = array<i64: 32, 32>}, {pipeline_mode = #tpu.pipeline_mode<synchronous>, transform_indices = @transform_7, window_bounds = array<i64: 1, 32>}, {pipeline_mode = #tpu.pipeline_mode<synchronous>, transform_indices = @transform_8, window_bounds = array<i64: 1, 32>}, {pipeline_mode = #tpu.pipeline_mode<synchronous>, transform_indices = @transform_9, window_bounds = array<i64: 1, 32>}, {pipeline_mode = #tpu.pipeline_mode<synchronous>, transform_indices = @transform_10, window_bounds = array<i64: 32, 64>}, {pipeline_mode = #tpu.pipeline_mode<synchronous>, transform_indices = @transform_11, window_bounds = array<i64: 1, 64>}, {pipeline_mode = #tpu.pipeline_mode<synchronous>, transform_indices = @transform_12, window_bounds = array<i64: 64, 32>}, {pipeline_mode = #tpu.pipeline_mode<synchronous>, transform_indices = @transform_13, window_bounds = array<i64: 1, 32>}, {transform_indices = @transform_14, window_bounds = array<i64: 1, 8, 32>}]} {
    %c0 = arith.constant 0 : index
    %c0_0 = arith.constant 0 : index
    %c0_1 = arith.constant 0 : index
    %0 = vector.load %arg1[%c0, %c0_0, %c0_1] : memref<1x8x32xf32, #tpu.memory_space<vmem>>, vector<1x8x32xf32>
    %1 = vector.shape_cast %0 : vector<1x8x32xf32> to vector<8x32xf32>
    %c0_2 = arith.constant 0 : index
    %c0_3 = arith.constant 0 : index
    %2 = vector.load %arg3[%c0_2, %c0_3] : memref<1x32xf32, #tpu.memory_space<vmem>>, vector<1x32xf32>
    %3 = vector.shape_cast %2 : vector<1x32xf32> to vector<32xf32>
    %c0_4 = arith.constant 0 : index
    %c0_5 = arith.constant 0 : index
    %4 = vector.load %arg4[%c0_4, %c0_5] : memref<1x32xf32, #tpu.memory_space<vmem>>, vector<1x32xf32>
    %5 = vector.shape_cast %4 : vector<1x32xf32> to vector<32xf32>
    %cst = arith.constant dense<0.000000e+00> : vector<8xf32>
    %6 = vector.multi_reduction <add>, %1, %cst [1] : vector<8x32xf32> to vector<8xf32>
    %7 = vector.shape_cast %6 : vector<8xf32> to vector<8x1xf32>
    %cst_6 = arith.constant 3.200000e+01 : f32
    %8 = vector.broadcast %cst_6 : f32 to vector<8x1xf32>
    %9 = arith.divf %7, %8 : vector<8x1xf32>
    %10 = vector.broadcast %9 : vector<8x1xf32> to vector<8x32xf32>
    %11 = arith.subf %1, %10 : vector<8x32xf32>
    %12 = arith.mulf %11, %11 : vector<8x32xf32>
    %cst_7 = arith.constant dense<0.000000e+00> : vector<8xf32>
    %13 = vector.multi_reduction <add>, %12, %cst_7 [1] : vector<8x32xf32> to vector<8xf32>
    %14 = vector.shape_cast %13 : vector<8xf32> to vector<8x1xf32>
    %cst_8 = arith.constant 3.200000e+01 : f32
    %15 = vector.broadcast %cst_8 : f32 to vector<8x1xf32>
    %16 = arith.divf %14, %15 : vector<8x1xf32>
    %17 = vector.broadcast %9 : vector<8x1xf32> to vector<8x32xf32>
    %18 = arith.subf %1, %17 : vector<8x32xf32>
    %cst_9 = arith.constant 9.99999974E-6 : f32
    %19 = vector.broadcast %cst_9 : f32 to vector<8x1xf32>
    %20 = arith.addf %16, %19 : vector<8x1xf32>
    %21 = math.rsqrt %20 : vector<8x1xf32>
    %22 = vector.broadcast %21 : vector<8x1xf32> to vector<8x32xf32>
    %23 = arith.mulf %18, %22 : vector<8x32xf32>
    %24 = vector.shape_cast %3 : vector<32xf32> to vector<1x32xf32>
    %25 = vector.broadcast %24 : vector<1x32xf32> to vector<8x32xf32>
    %26 = arith.mulf %23, %25 : vector<8x32xf32>
    %27 = vector.shape_cast %5 : vector<32xf32> to vector<1x32xf32>
    %28 = vector.broadcast %27 : vector<1x32xf32> to vector<8x32xf32>
    %29 = arith.addf %26, %28 : vector<8x32xf32>
    %30 = arith.truncf %29 : vector<8x32xf32> to vector<8x32xbf16>
    %c0_10 = arith.constant 0 : index
    %c0_11 = arith.constant 0 : index
    %31 = vector.load %arg5[%c0_10, %c0_11] : memref<32x96xbf16, #tpu.memory_space<vmem>>, vector<32x96xbf16>
    %cst_12 = arith.constant dense<0.000000e+00> : vector<8x96xf32>
    %32 = tpu.matmul %30, %31, %cst_12 {dimension_numbers = #tpu.dot_dimension_numbers<[1], [0], [0], [1], [0, 0, 1, 1], [], []>} : vector<8x32xbf16>, vector<32x96xbf16>, vector<8x96xf32> -> vector<8x96xf32>
    %c0_13 = arith.constant 0 : index
    %c0_14 = arith.constant 0 : index
    %33 = vector.load %arg6[%c0_13, %c0_14] : memref<1x96xf32, #tpu.memory_space<vmem>>, vector<1x96xf32>
    %34 = vector.shape_cast %33 : vector<1x96xf32> to vector<96xf32>
    %35 = vector.shape_cast %34 : vector<96xf32> to vector<1x96xf32>
    %36 = vector.broadcast %35 : vector<1x96xf32> to vector<8x96xf32>
    %37 = arith.addf %32, %36 : vector<8x96xf32>
    %38 = vector.extract_strided_slice %37 {offsets = [0, 0], sizes = [8, 32], strides = [1, 1]} : vector<8x96xf32> to vector<8x32xf32>
    %39 = vector.shape_cast %38 : vector<8x32xf32> to vector<1x8x32xf32>
    %40 = vector.extract_strided_slice %37 {offsets = [0, 32], sizes = [8, 32], strides = [1, 1]} : vector<8x96xf32> to vector<8x32xf32>
    %41 = vector.shape_cast %40 : vector<8x32xf32> to vector<1x8x32xf32>
    %42 = vector.extract_strided_slice %37 {offsets = [0, 64], sizes = [8, 32], strides = [1, 1]} : vector<8x96xf32> to vector<8x32xf32>
    %43 = vector.shape_cast %42 : vector<8x32xf32> to vector<1x8x32xf32>
    %c0_15 = arith.constant 0 : index
    %c0_16 = arith.constant 0 : index
    %c0_17 = arith.constant 0 : index
    %44 = vector.load %arg2[%c0_15, %c0_16, %c0_17] : memref<1x8x8xbf16, #tpu.memory_space<vmem>>, vector<1x8x8xbf16>
    %45 = arith.extf %44 : vector<1x8x8xbf16> to vector<1x8x8xf32>
    %46 = arith.truncf %39 : vector<1x8x32xf32> to vector<1x8x32xbf16>
    %47 = arith.truncf %41 : vector<1x8x32xf32> to vector<1x8x32xbf16>
    %48 = arith.truncf %43 : vector<1x8x32xf32> to vector<1x8x32xbf16>
    %49 = vector.extract_strided_slice %46 {offsets = [0, 0, 0], sizes = [1, 8, 8], strides = [1, 1, 1]} : vector<1x8x32xbf16> to vector<1x8x8xbf16>
    %50 = vector.extract_strided_slice %47 {offsets = [0, 0, 0], sizes = [1, 8, 8], strides = [1, 1, 1]} : vector<1x8x32xbf16> to vector<1x8x8xbf16>
    "tpu.trace_start"() <{level = 10 : i32, message = "bqd,bkd->bqk"}> : () -> ()
    %cst_18 = arith.constant dense<0.000000e+00> : vector<1x8x8xf32>
    %51 = tpu.matmul %49, %50, %cst_18 {dimension_numbers = #tpu.dot_dimension_numbers<[2], [2], [1], [1], [0, 0, 0, 1, 1, 1], [0], [0]>} : vector<1x8x8xbf16>, vector<1x8x8xbf16>, vector<1x8x8xf32> -> vector<1x8x8xf32>
    "tpu.trace_stop"() : () -> ()
    %cst_19 = arith.constant 0.353553385 : f32
    %52 = vector.broadcast %cst_19 : f32 to vector<1x8x8xf32>
    %53 = arith.mulf %51, %52 : vector<1x8x8xf32>
    %54 = arith.addf %53, %45 : vector<1x8x8xf32>
    %cst_20 = arith.constant dense<0xFF800000> : vector<1x8xf32>
    %55 = vector.multi_reduction <maximumf>, %54, %cst_20 [2] : vector<1x8x8xf32> to vector<1x8xf32>
    %56 = vector.shape_cast %55 : vector<1x8xf32> to vector<1x8x1xf32>
    %57 = vector.broadcast %56 : vector<1x8x1xf32> to vector<1x8x8xf32>
    %58 = arith.subf %54, %57 : vector<1x8x8xf32>
    %59 = math.exp %58 : vector<1x8x8xf32>
    %cst_21 = arith.constant dense<0.000000e+00> : vector<1x8xf32>
    %60 = vector.multi_reduction <add>, %59, %cst_21 [2] : vector<1x8x8xf32> to vector<1x8xf32>
    %61 = vector.shape_cast %60 : vector<1x8xf32> to vector<1x8x1xf32>
    %62 = tpu.reciprocal %61 {approx = true} : vector<1x8x1xf32> -> vector<1x8x1xf32>
    %63 = vector.broadcast %62 : vector<1x8x1xf32> to vector<1x8x8xf32>
    %64 = arith.mulf %59, %63 : vector<1x8x8xf32>
    %65 = arith.truncf %64 : vector<1x8x8xf32> to vector<1x8x8xbf16>
    %66 = vector.extract_strided_slice %48 {offsets = [0, 0, 0], sizes = [1, 8, 8], strides = [1, 1, 1]} : vector<1x8x32xbf16> to vector<1x8x8xbf16>
    "tpu.trace_start"() <{level = 10 : i32, message = "bqk,bkd->bqd"}> : () -> ()
    %cst_22 = arith.constant dense<0.000000e+00> : vector<1x8x8xf32>
    %67 = tpu.matmul %65, %66, %cst_22 {dimension_numbers = #tpu.dot_dimension_numbers<[2], [1], [1], [2], [0, 0, 0, 1, 1, 2], [0], [0]>} : vector<1x8x8xbf16>, vector<1x8x8xbf16>, vector<1x8x8xf32> -> vector<1x8x8xf32>
    "tpu.trace_stop"() : () -> ()
    %c0_23 = arith.constant 0 : index
    %c0_24 = arith.constant 0 : index
    %c0_25 = arith.constant 0 : index
    %68 = vector.load %arg16[%c0_23, %c0_24, %c0_25] : memref<1x8x32xf32, #tpu.memory_space<vmem>>, vector<1x8x8xf32>
    tpu.vector_store %arg16[%c0_23, %c0_24, %c0_25], %67 {strides = array<i32>} : memref<1x8x32xf32, #tpu.memory_space<vmem>>, vector<1x8x8xf32>,
    %69 = vector.extract_strided_slice %46 {offsets = [0, 0, 8], sizes = [1, 8, 8], strides = [1, 1, 1]} : vector<1x8x32xbf16> to vector<1x8x8xbf16>
    %70 = vector.extract_strided_slice %47 {offsets = [0, 0, 8], sizes = [1, 8, 8], strides = [1, 1, 1]} : vector<1x8x32xbf16> to vector<1x8x8xbf16>
    "tpu.trace_start"() <{level = 10 : i32, message = "bqd,bkd->bqk"}> : () -> ()
    %cst_26 = arith.constant dense<0.000000e+00> : vector<1x8x8xf32>
    %71 = tpu.matmul %69, %70, %cst_26 {dimension_numbers = #tpu.dot_dimension_numbers<[2], [2], [1], [1], [0, 0, 0, 1, 1, 1], [0], [0]>} : vector<1x8x8xbf16>, vector<1x8x8xbf16>, vector<1x8x8xf32> -> vector<1x8x8xf32>
    "tpu.trace_stop"() : () -> ()
    %cst_27 = arith.constant 0.353553385 : f32
    %72 = vector.broadcast %cst_27 : f32 to vector<1x8x8xf32>
    %73 = arith.mulf %71, %72 : vector<1x8x8xf32>
    %74 = arith.addf %73, %45 : vector<1x8x8xf32>
    %cst_28 = arith.constant dense<0xFF800000> : vector<1x8xf32>
    %75 = vector.multi_reduction <maximumf>, %74, %cst_28 [2] : vector<1x8x8xf32> to vector<1x8xf32>
    %76 = vector.shape_cast %75 : vector<1x8xf32> to vector<1x8x1xf32>
    %77 = vector.broadcast %76 : vector<1x8x1xf32> to vector<1x8x8xf32>
    %78 = arith.subf %74, %77 : vector<1x8x8xf32>
    %79 = math.exp %78 : vector<1x8x8xf32>
    %cst_29 = arith.constant dense<0.000000e+00> : vector<1x8xf32>
    %80 = vector.multi_reduction <add>, %79, %cst_29 [2] : vector<1x8x8xf32> to vector<1x8xf32>
    %81 = vector.shape_cast %80 : vector<1x8xf32> to vector<1x8x1xf32>
    %82 = tpu.reciprocal %81 {approx = true} : vector<1x8x1xf32> -> vector<1x8x1xf32>
    %83 = vector.broadcast %82 : vector<1x8x1xf32> to vector<1x8x8xf32>
    %84 = arith.mulf %79, %83 : vector<1x8x8xf32>
    %85 = arith.truncf %84 : vector<1x8x8xf32> to vector<1x8x8xbf16>
    %86 = vector.extract_strided_slice %48 {offsets = [0, 0, 8], sizes = [1, 8, 8], strides = [1, 1, 1]} : vector<1x8x32xbf16> to vector<1x8x8xbf16>
    "tpu.trace_start"() <{level = 10 : i32, message = "bqk,bkd->bqd"}> : () -> ()
    %cst_30 = arith.constant dense<0.000000e+00> : vector<1x8x8xf32>
    %87 = tpu.matmul %85, %86, %cst_30 {dimension_numbers = #tpu.dot_dimension_numbers<[2], [1], [1], [2], [0, 0, 0, 1, 1, 2], [0], [0]>} : vector<1x8x8xbf16>, vector<1x8x8xbf16>, vector<1x8x8xf32> -> vector<1x8x8xf32>
    "tpu.trace_stop"() : () -> ()
    %c0_31 = arith.constant 0 : index
    %c0_32 = arith.constant 0 : index
    %c8 = arith.constant 8 : index
    %88 = vector.load %arg16[%c0_31, %c0_32, %c8] : memref<1x8x32xf32, #tpu.memory_space<vmem>>, vector<1x8x8xf32>
    tpu.vector_store %arg16[%c0_31, %c0_32, %c8], %87 {strides = array<i32>} : memref<1x8x32xf32, #tpu.memory_space<vmem>>, vector<1x8x8xf32>,
    %89 = vector.extract_strided_slice %46 {offsets = [0, 0, 16], sizes = [1, 8, 8], strides = [1, 1, 1]} : vector<1x8x32xbf16> to vector<1x8x8xbf16>
    %90 = vector.extract_strided_slice %47 {offsets = [0, 0, 16], sizes = [1, 8, 8], strides = [1, 1, 1]} : vector<1x8x32xbf16> to vector<1x8x8xbf16>
    "tpu.trace_start"() <{level = 10 : i32, message = "bqd,bkd->bqk"}> : () -> ()
    %cst_33 = arith.constant dense<0.000000e+00> : vector<1x8x8xf32>
    %91 = tpu.matmul %89, %90, %cst_33 {dimension_numbers = #tpu.dot_dimension_numbers<[2], [2], [1], [1], [0, 0, 0, 1, 1, 1], [0], [0]>} : vector<1x8x8xbf16>, vector<1x8x8xbf16>, vector<1x8x8xf32> -> vector<1x8x8xf32>
    "tpu.trace_stop"() : () -> ()
    %cst_34 = arith.constant 0.353553385 : f32
    %92 = vector.broadcast %cst_34 : f32 to vector<1x8x8xf32>
    %93 = arith.mulf %91, %92 : vector<1x8x8xf32>
    %94 = arith.addf %93, %45 : vector<1x8x8xf32>
    %cst_35 = arith.constant dense<0xFF800000> : vector<1x8xf32>
    %95 = vector.multi_reduction <maximumf>, %94, %cst_35 [2] : vector<1x8x8xf32> to vector<1x8xf32>
    %96 = vector.shape_cast %95 : vector<1x8xf32> to vector<1x8x1xf32>
    %97 = vector.broadcast %96 : vector<1x8x1xf32> to vector<1x8x8xf32>
    %98 = arith.subf %94, %97 : vector<1x8x8xf32>
    %99 = math.exp %98 : vector<1x8x8xf32>
    %cst_36 = arith.constant dense<0.000000e+00> : vector<1x8xf32>
    %100 = vector.multi_reduction <add>, %99, %cst_36 [2] : vector<1x8x8xf32> to vector<1x8xf32>
    %101 = vector.shape_cast %100 : vector<1x8xf32> to vector<1x8x1xf32>
    %102 = tpu.reciprocal %101 {approx = true} : vector<1x8x1xf32> -> vector<1x8x1xf32>
    %103 = vector.broadcast %102 : vector<1x8x1xf32> to vector<1x8x8xf32>
    %104 = arith.mulf %99, %103 : vector<1x8x8xf32>
    %105 = arith.truncf %104 : vector<1x8x8xf32> to vector<1x8x8xbf16>
    %106 = vector.extract_strided_slice %48 {offsets = [0, 0, 16], sizes = [1, 8, 8], strides = [1, 1, 1]} : vector<1x8x32xbf16> to vector<1x8x8xbf16>
    "tpu.trace_start"() <{level = 10 : i32, message = "bqk,bkd->bqd"}> : () -> ()
    %cst_37 = arith.constant dense<0.000000e+00> : vector<1x8x8xf32>
    %107 = tpu.matmul %105, %106, %cst_37 {dimension_numbers = #tpu.dot_dimension_numbers<[2], [1], [1], [2], [0, 0, 0, 1, 1, 2], [0], [0]>} : vector<1x8x8xbf16>, vector<1x8x8xbf16>, vector<1x8x8xf32> -> vector<1x8x8xf32>
    "tpu.trace_stop"() : () -> ()
    %c0_38 = arith.constant 0 : index
    %c0_39 = arith.constant 0 : index
    %c16 = arith.constant 16 : index
    %108 = vector.load %arg16[%c0_38, %c0_39, %c16] : memref<1x8x32xf32, #tpu.memory_space<vmem>>, vector<1x8x8xf32>
    tpu.vector_store %arg16[%c0_38, %c0_39, %c16], %107 {strides = array<i32>} : memref<1x8x32xf32, #tpu.memory_space<vmem>>, vector<1x8x8xf32>,
    %109 = vector.extract_strided_slice %46 {offsets = [0, 0, 24], sizes = [1, 8, 8], strides = [1, 1, 1]} : vector<1x8x32xbf16> to vector<1x8x8xbf16>
    %110 = vector.extract_strided_slice %47 {offsets = [0, 0, 24], sizes = [1, 8, 8], strides = [1, 1, 1]} : vector<1x8x32xbf16> to vector<1x8x8xbf16>
    "tpu.trace_start"() <{level = 10 : i32, message = "bqd,bkd->bqk"}> : () -> ()
    %cst_40 = arith.constant dense<0.000000e+00> : vector<1x8x8xf32>
    %111 = tpu.matmul %109, %110, %cst_40 {dimension_numbers = #tpu.dot_dimension_numbers<[2], [2], [1], [1], [0, 0, 0, 1, 1, 1], [0], [0]>} : vector<1x8x8xbf16>, vector<1x8x8xbf16>, vector<1x8x8xf32> -> vector<1x8x8xf32>
    "tpu.trace_stop"() : () -> ()
    %cst_41 = arith.constant 0.353553385 : f32
    %112 = vector.broadcast %cst_41 : f32 to vector<1x8x8xf32>
    %113 = arith.mulf %111, %112 : vector<1x8x8xf32>
    %114 = arith.addf %113, %45 : vector<1x8x8xf32>
    %cst_42 = arith.constant dense<0xFF800000> : vector<1x8xf32>
    %115 = vector.multi_reduction <maximumf>, %114, %cst_42 [2] : vector<1x8x8xf32> to vector<1x8xf32>
    %116 = vector.shape_cast %115 : vector<1x8xf32> to vector<1x8x1xf32>
    %117 = vector.broadcast %116 : vector<1x8x1xf32> to vector<1x8x8xf32>
    %118 = arith.subf %114, %117 : vector<1x8x8xf32>
    %119 = math.exp %118 : vector<1x8x8xf32>
    %cst_43 = arith.constant dense<0.000000e+00> : vector<1x8xf32>
    %120 = vector.multi_reduction <add>, %119, %cst_43 [2] : vector<1x8x8xf32> to vector<1x8xf32>
    %121 = vector.shape_cast %120 : vector<1x8xf32> to vector<1x8x1xf32>
    %122 = tpu.reciprocal %121 {approx = true} : vector<1x8x1xf32> -> vector<1x8x1xf32>
    %123 = vector.broadcast %122 : vector<1x8x1xf32> to vector<1x8x8xf32>
    %124 = arith.mulf %119, %123 : vector<1x8x8xf32>
    %125 = arith.truncf %124 : vector<1x8x8xf32> to vector<1x8x8xbf16>
    %126 = vector.extract_strided_slice %48 {offsets = [0, 0, 24], sizes = [1, 8, 8], strides = [1, 1, 1]} : vector<1x8x32xbf16> to vector<1x8x8xbf16>
    "tpu.trace_start"() <{level = 10 : i32, message = "bqk,bkd->bqd"}> : () -> ()
    %cst_44 = arith.constant dense<0.000000e+00> : vector<1x8x8xf32>
    %127 = tpu.matmul %125, %126, %cst_44 {dimension_numbers = #tpu.dot_dimension_numbers<[2], [1], [1], [2], [0, 0, 0, 1, 1, 2], [0], [0]>} : vector<1x8x8xbf16>, vector<1x8x8xbf16>, vector<1x8x8xf32> -> vector<1x8x8xf32>
    "tpu.trace_stop"() : () -> ()
    %c0_45 = arith.constant 0 : index
    %c0_46 = arith.constant 0 : index
    %c24 = arith.constant 24 : index
    %128 = vector.load %arg16[%c0_45, %c0_46, %c24] : memref<1x8x32xf32, #tpu.memory_space<vmem>>, vector<1x8x8xf32>
    tpu.vector_store %arg16[%c0_45, %c0_46, %c24], %127 {strides = array<i32>} : memref<1x8x32xf32, #tpu.memory_space<vmem>>, vector<1x8x8xf32>,
    %c0_47 = arith.constant 0 : index
    %c0_48 = arith.constant 0 : index
    %c0_49 = arith.constant 0 : index
    %129 = vector.load %arg16[%c0_47, %c0_48, %c0_49] : memref<1x8x32xf32, #tpu.memory_space<vmem>>, vector<1x8x32xf32>
    %130 = vector.shape_cast %129 : vector<1x8x32xf32> to vector<8x32xf32>
    %131 = arith.truncf %130 : vector<8x32xf32> to vector<8x32xbf16>
    %c0_50 = arith.constant 0 : index
    %c0_51 = arith.constant 0 : index
    %132 = vector.load %arg7[%c0_50, %c0_51] : memref<32x32xbf16, #tpu.memory_space<vmem>>, vector<32x32xbf16>
    %cst_52 = arith.constant dense<0.000000e+00> : vector<8x32xf32>
    %133 = tpu.matmul %131, %132, %cst_52 {dimension_numbers = #tpu.dot_dimension_numbers<[1], [0], [0], [1], [0, 0, 1, 1], [], []>} : vector<8x32xbf16>, vector<32x32xbf16>, vector<8x32xf32> -> vector<8x32xf32>
    %c0_53 = arith.constant 0 : index
    %c0_54 = arith.constant 0 : index
    %134 = vector.load %arg8[%c0_53, %c0_54] : memref<1x32xf32, #tpu.memory_space<vmem>>, vector<1x32xf32>
    %135 = vector.shape_cast %134 : vector<1x32xf32> to vector<32xf32>
    %136 = vector.shape_cast %135 : vector<32xf32> to vector<1x32xf32>
    %137 = vector.broadcast %136 : vector<1x32xf32> to vector<8x32xf32>
    %138 = arith.addf %133, %137 : vector<8x32xf32>
    %c0_55 = arith.constant 0 : index
    %c0_56 = arith.constant 0 : index
    %139 = vector.load %arg9[%c0_55, %c0_56] : memref<1x32xf32, #tpu.memory_space<vmem>>, vector<1x32xf32>
    %140 = vector.shape_cast %139 : vector<1x32xf32> to vector<32xf32>
    %c0_57 = arith.constant 0 : index
    %c0_58 = arith.constant 0 : index
    %141 = vector.load %arg10[%c0_57, %c0_58] : memref<1x32xf32, #tpu.memory_space<vmem>>, vector<1x32xf32>
    %142 = vector.shape_cast %141 : vector<1x32xf32> to vector<32xf32>
    %cst_59 = arith.constant dense<0.000000e+00> : vector<8xf32>
    %143 = vector.multi_reduction <add>, %138, %cst_59 [1] : vector<8x32xf32> to vector<8xf32>
    %144 = vector.shape_cast %143 : vector<8xf32> to vector<8x1xf32>
    %cst_60 = arith.constant 3.200000e+01 : f32
    %145 = vector.broadcast %cst_60 : f32 to vector<8x1xf32>
    %146 = arith.divf %144, %145 : vector<8x1xf32>
    %147 = vector.broadcast %146 : vector<8x1xf32> to vector<8x32xf32>
    %148 = arith.subf %138, %147 : vector<8x32xf32>
    %149 = arith.mulf %148, %148 : vector<8x32xf32>
    %cst_61 = arith.constant dense<0.000000e+00> : vector<8xf32>
    %150 = vector.multi_reduction <add>, %149, %cst_61 [1] : vector<8x32xf32> to vector<8xf32>
    %151 = vector.shape_cast %150 : vector<8xf32> to vector<8x1xf32>
    %cst_62 = arith.constant 3.200000e+01 : f32
    %152 = vector.broadcast %cst_62 : f32 to vector<8x1xf32>
    %153 = arith.divf %151, %152 : vector<8x1xf32>
    %154 = vector.broadcast %146 : vector<8x1xf32> to vector<8x32xf32>
    %155 = arith.subf %138, %154 : vector<8x32xf32>
    %cst_63 = arith.constant 9.99999974E-6 : f32
    %156 = vector.broadcast %cst_63 : f32 to vector<8x1xf32>
    %157 = arith.addf %153, %156 : vector<8x1xf32>
    %158 = math.rsqrt %157 : vector<8x1xf32>
    %159 = vector.broadcast %158 : vector<8x1xf32> to vector<8x32xf32>
    %160 = arith.mulf %155, %159 : vector<8x32xf32>
    %161 = vector.shape_cast %140 : vector<32xf32> to vector<1x32xf32>
    %162 = vector.broadcast %161 : vector<1x32xf32> to vector<8x32xf32>
    %163 = arith.mulf %160, %162 : vector<8x32xf32>
    %164 = vector.shape_cast %142 : vector<32xf32> to vector<1x32xf32>
    %165 = vector.broadcast %164 : vector<1x32xf32> to vector<8x32xf32>
    %166 = arith.addf %163, %165 : vector<8x32xf32>
    %167 = arith.truncf %166 : vector<8x32xf32> to vector<8x32xbf16>
    %c0_64 = arith.constant 0 : index
    %c0_65 = arith.constant 0 : index
    %168 = vector.load %arg11[%c0_64, %c0_65] : memref<32x64xbf16, #tpu.memory_space<vmem>>, vector<32x64xbf16>
    %cst_66 = arith.constant dense<0.000000e+00> : vector<8x64xf32>
    %169 = tpu.matmul %167, %168, %cst_66 {dimension_numbers = #tpu.dot_dimension_numbers<[1], [0], [0], [1], [0, 0, 1, 1], [], []>} : vector<8x32xbf16>, vector<32x64xbf16>, vector<8x64xf32> -> vector<8x64xf32>
    %c0_67 = arith.constant 0 : index
    %c0_68 = arith.constant 0 : index
    %170 = vector.load %arg12[%c0_67, %c0_68] : memref<1x64xf32, #tpu.memory_space<vmem>>, vector<1x64xf32>
    %171 = vector.shape_cast %170 : vector<1x64xf32> to vector<64xf32>
    %172 = vector.shape_cast %171 : vector<64xf32> to vector<1x64xf32>
    %173 = vector.broadcast %172 : vector<1x64xf32> to vector<8x64xf32>
    %174 = arith.addf %169, %173 : vector<8x64xf32>
    %cst_69 = arith.constant 5.000000e-01 : f32
    %175 = vector.broadcast %cst_69 : f32 to vector<8x64xf32>
    %176 = arith.mulf %175, %174 : vector<8x64xf32>
    %cst_70 = arith.constant 0.707106769 : f32
    %177 = vector.broadcast %cst_70 : f32 to vector<8x64xf32>
    %178 = arith.mulf %174, %177 : vector<8x64xf32>
    %cst_71 = arith.constant 0.000000e+00 : f32
    %179 = vector.broadcast %cst_71 : f32 to vector<8x64xf32>
    %180 = arith.cmpf oge, %178, %179 : vector<8x64xf32>
    %cst_72 = arith.constant 1.000000e+00 : f32
    %cst_73 = arith.constant -1.000000e+00 : f32
    %181 = vector.broadcast %cst_72 : f32 to vector<8x64xf32>
    %182 = vector.broadcast %cst_73 : f32 to vector<8x64xf32>
    %183 = arith.select %180, %181, %182 : vector<8x64xi1>, vector<8x64xf32>
    %184 = math.absf %178 : vector<8x64xf32>
    %cst_74 = arith.constant 0.327591091 : f32
    %185 = vector.broadcast %cst_74 : f32 to vector<8x64xf32>
    %186 = arith.mulf %185, %184 : vector<8x64xf32>
    %cst_75 = arith.constant 1.000000e+00 : f32
    %187 = vector.broadcast %cst_75 : f32 to vector<8x64xf32>
    %188 = arith.addf %187, %186 : vector<8x64xf32>
    %cst_76 = arith.constant 1.000000e+00 : f32
    %189 = vector.broadcast %cst_76 : f32 to vector<8x64xf32>
    %190 = arith.divf %189, %188 : vector<8x64xf32>
    %cst_77 = arith.constant 1.06140542 : f32
    %191 = vector.broadcast %cst_77 : f32 to vector<8x64xf32>
    %192 = arith.mulf %191, %190 : vector<8x64xf32>
    %cst_78 = arith.constant -1.45315206 : f32
    %193 = vector.broadcast %cst_78 : f32 to vector<8x64xf32>
    %194 = arith.addf %192, %193 : vector<8x64xf32>
    %195 = arith.mulf %194, %190 : vector<8x64xf32>
    %cst_79 = arith.constant 1.42141378 : f32
    %196 = vector.broadcast %cst_79 : f32 to vector<8x64xf32>
    %197 = arith.addf %195, %196 : vector<8x64xf32>
    %198 = arith.mulf %197, %190 : vector<8x64xf32>
    %cst_80 = arith.constant -0.284496725 : f32
    %199 = vector.broadcast %cst_80 : f32 to vector<8x64xf32>
    %200 = arith.addf %198, %199 : vector<8x64xf32>
    %201 = arith.mulf %200, %190 : vector<8x64xf32>
    %cst_81 = arith.constant 0.254829586 : f32
    %202 = vector.broadcast %cst_81 : f32 to vector<8x64xf32>
    %203 = arith.addf %201, %202 : vector<8x64xf32>
    %204 = arith.mulf %203, %190 : vector<8x64xf32>
    %cst_82 = arith.constant 0.000000e+00 : f32
    %205 = vector.broadcast %cst_82 : f32 to vector<8x64xf32>
    %206 = arith.subf %205, %184 : vector<8x64xf32>
    %207 = arith.mulf %206, %184 : vector<8x64xf32>
    %208 = math.exp %207 : vector<8x64xf32>
    %209 = arith.mulf %204, %208 : vector<8x64xf32>
    %cst_83 = arith.constant 1.000000e+00 : f32
    %210 = vector.broadcast %cst_83 : f32 to vector<8x64xf32>
    %211 = arith.subf %210, %209 : vector<8x64xf32>
    %212 = arith.mulf %183, %211 : vector<8x64xf32>
    %cst_84 = arith.constant 1.000000e+00 : f32
    %213 = vector.broadcast %cst_84 : f32 to vector<8x64xf32>
    %214 = arith.addf %213, %212 : vector<8x64xf32>
    %215 = arith.mulf %176, %214 : vector<8x64xf32>
    %216 = arith.truncf %215 : vector<8x64xf32> to vector<8x64xbf16>
    %c0_85 = arith.constant 0 : index
    %c0_86 = arith.constant 0 : index
    %217 = vector.load %arg13[%c0_85, %c0_86] : memref<64x32xbf16, #tpu.memory_space<vmem>>, vector<64x32xbf16>
    %cst_87 = arith.constant dense<0.000000e+00> : vector<8x32xf32>
    %218 = tpu.matmul %216, %217, %cst_87 {dimension_numbers = #tpu.dot_dimension_numbers<[1], [0], [0], [1], [0, 0, 1, 1], [], []>} : vector<8x64xbf16>, vector<64x32xbf16>, vector<8x32xf32> -> vector<8x32xf32>
    %c0_88 = arith.constant 0 : index
    %c0_89 = arith.constant 0 : index
    %219 = vector.load %arg14[%c0_88, %c0_89] : memref<1x32xf32, #tpu.memory_space<vmem>>, vector<1x32xf32>
    %220 = vector.shape_cast %219 : vector<1x32xf32> to vector<32xf32>
    %221 = vector.shape_cast %220 : vector<32xf32> to vector<1x32xf32>
    %222 = vector.broadcast %221 : vector<1x32xf32> to vector<8x32xf32>
    %223 = arith.addf %218, %222 : vector<8x32xf32>
    %224 = arith.addf %138, %223 : vector<8x32xf32>
    %225 = vector.shape_cast %224 : vector<8x32xf32> to vector<1x8x32xf32>
    %c0_90 = arith.constant 0 : index
    %c0_91 = arith.constant 0 : index
    %c0_92 = arith.constant 0 : index
    %226 = vector.load %arg15[%c0_90, %c0_91, %c0_92] : memref<1x8x32xf32, #tpu.memory_space<vmem>>, vector<1x8x32xf32>
    tpu.vector_store %arg15[%c0_90, %c0_91, %c0_92], %225 {strides = array<i32>} : memref<1x8x32xf32, #tpu.memory_space<vmem>>, vector<1x8x32xf32>,
    return
  }
  func.func @transform_0(%arg0: i32) -> (i32, i32, i32) {
    %c0_i32 = arith.constant 0 : i32
    %c0_i32_0 = arith.constant 0 : i32
    %c0_i32_1 = arith.constant 0 : i32
    return %arg0, %c0_i32, %c0_i32_0 : i32, i32, i32
  }
  func.func @transform_1(%arg0: i32) -> (i32, i32, i32) {
    %c0_i32 = arith.constant 0 : i32
    %c0_i32_0 = arith.constant 0 : i32
    %c0_i32_1 = arith.constant 0 : i32
    %c0_i32_2 = arith.constant 0 : i32
    return %c0_i32, %c0_i32_0, %c0_i32_1 : i32, i32, i32
  }
  func.func @transform_2(%arg0: i32) -> (i32, i32) {
    %c0_i32 = arith.constant 0 : i32
    %c0_i32_0 = arith.constant 0 : i32
    %c0_i32_1 = arith.constant 0 : i32
    return %c0_i32, %c0_i32_0 : i32, i32
  }
  func.func @transform_3(%arg0: i32) -> (i32, i32) {
    %c0_i32 = arith.constant 0 : i32
    %c0_i32_0 = arith.constant 0 : i32
    %c0_i32_1 = arith.constant 0 : i32
    return %c0_i32, %c0_i32_0 : i32, i32
  }
  func.func @transform_4(%arg0: i32) -> (i32, i32) {
    %c0_i32 = arith.constant 0 : i32
    %c0_i32_0 = arith.constant 0 : i32
    %c0_i32_1 = arith.constant 0 : i32
    return %c0_i32, %c0_i32_0 : i32, i32
  }
  func.func @transform_5(%arg0: i32) -> (i32, i32) {
    %c0_i32 = arith.constant 0 : i32
    %c0_i32_0 = arith.constant 0 : i32
    %c0_i32_1 = arith.constant 0 : i32
    return %c0_i32, %c0_i32_0 : i32, i32
  }
  func.func @transform_6(%arg0: i32) -> (i32, i32) {
    %c0_i32 = arith.constant 0 : i32
    %c0_i32_0 = arith.constant 0 : i32
    %c0_i32_1 = arith.constant 0 : i32
    return %c0_i32, %c0_i32_0 : i32, i32
  }
  func.func @transform_7(%arg0: i32) -> (i32, i32) {
    %c0_i32 = arith.constant 0 : i32
    %c0_i32_0 = arith.constant 0 : i32
    %c0_i32_1 = arith.constant 0 : i32
    return %c0_i32, %c0_i32_0 : i32, i32
  }
  func.func @transform_8(%arg0: i32) -> (i32, i32) {
    %c0_i32 = arith.constant 0 : i32
    %c0_i32_0 = arith.constant 0 : i32
    %c0_i32_1 = arith.constant 0 : i32
    return %c0_i32, %c0_i32_0 : i32, i32
  }
  func.func @transform_9(%arg0: i32) -> (i32, i32) {
    %c0_i32 = arith.constant 0 : i32
    %c0_i32_0 = arith.constant 0 : i32
    %c0_i32_1 = arith.constant 0 : i32
    return %c0_i32, %c0_i32_0 : i32, i32
  }
  func.func @transform_10(%arg0: i32) -> (i32, i32) {
    %c0_i32 = arith.constant 0 : i32
    %c0_i32_0 = arith.constant 0 : i32
    %c0_i32_1 = arith.constant 0 : i32
    return %c0_i32, %c0_i32_0 : i32, i32
  }
  func.func @transform_11(%arg0: i32) -> (i32, i32) {
    %c0_i32 = arith.constant 0 : i32
    %c0_i32_0 = arith.constant 0 : i32
    %c0_i32_1 = arith.constant 0 : i32
    return %c0_i32, %c0_i32_0 : i32, i32
  }
  func.func @transform_12(%arg0: i32) -> (i32, i32) {
    %c0_i32 = arith.constant 0 : i32
    %c0_i32_0 = arith.constant 0 : i32
    %c0_i32_1 = arith.constant 0 : i32
    return %c0_i32, %c0_i32_0 : i32, i32
  }
  func.func @transform_13(%arg0: i32) -> (i32, i32) {
    %c0_i32 = arith.constant 0 : i32
    %c0_i32_0 = arith.constant 0 : i32
    %c0_i32_1 = arith.constant 0 : i32
    return %c0_i32, %c0_i32_0 : i32, i32
  }
  func.func @transform_14(%arg0: i32) -> (i32, i32, i32) {
    %c0_i32 = arith.constant 0 : i32
    %c0_i32_0 = arith.constant 0 : i32
    %c0_i32_1 = arith.constant 0 : i32
    return %arg0, %c0_i32, %c0_i32_0 : i32, i32, i32
  }
}

</mosaic_0001>

<bundles_post_ra>
// kernel: tpu_custom_call.1
= control target key start
LH: loop header
LB: loop body
LE: loop exit
PB: predicated region body
PF: predicated region fallthrough
CT: control target
= control target key end

     0   :  { %7 = vsyncpa [#allocation3], 0  ;;  %s692_s0 = inlined_call_operand.hbm [shape: f32[8,128], index: 0, kind: input, shape index: {}]   ;;  %s693_s1 = inlined_call_operand.hbm [shape: f32[16,128], index: 1, kind: input, shape index: {}]   ;;  %s694_s2 = inlined_call_operand.hbm [shape: f32[16,128], index: 2, kind: output, shape index: {}]  }
   0x1   :  { %8 = vsyncpa [#allocation6], 0 }
   0x2   :  { %10 = vsyncpa [#allocation6 + $0x1], 0 }
   0x3   :  { %11 = vsyncpa [#allocation4], 0 }
   0x4   :  { %13 = vsyncpa [#allocation4 + $0x1], 0  ;;  %s491_s9 = smov 0   ;;  %s493_s10 = smov 0  }
   0x5   :  { %s495_s11 = smov 0   ;;  %s497_s12 = smov 0  }
   0x6 LB: > { %s512_s13 = sadd.s32 4294967295, %s471_s12   ;;  %s272_s14 = sadd.s32 4294967294, %s471_s12   ;;  %s471_s12 = sphi %s497_s12, %s718_s12   ;;  %s467_s11 = sphi %s495_s11, %s717_s11   ;;  %s463_s10 = sphi %s493_s10, %s716_s10   ;;  %s459_s9 = sphi %s491_s9, %s715_s9  }
   0x7   : > { %p60_p0 = scmp.ne.s32.totalorder %s463_s10, %s459_s9  ;;  %p695_p1 = scmp.eq.s32.totalorder %s512_s13, 0 }
   0x8   : > { %p90_p3 = scmp.eq.s32.totalorder %s272_s14, 1  ;;  %p273_p5 = scmp.ge.s32.totalorder %s471_s12, 1 }
   0x9   : > { %p521_p4 = por %p695_p1, %p60_p0  ;;  %p97_p7 = scmp.lt.s32.totalorder %s471_s12, 3 }
   0xa   : > { %p526_p6 = por %p90_p3, %p60_p0  ;;  %s473_s18 = smov [#allocation2]  }
   0xb   : > { %s698_s15 = scalar_select %p521_p4, 1, 0 }
   0xc   : > { %s699_s16 = scalar_select %p526_p6, 1, 0 }
   0xd   : > { %p531_p8 = pnand %p273_p5, %p97_p7  ;;  %s110_s19 = sshll.u32 %s473_s18, 4  ;;  %s111_s19 = int_to_ptr.vmem [resolvable:$true] %s110_s19 }
   0xe   : > { %s539_s20 = sadd.s32 1, %s471_s12   ;;  %s47_s24 = sadd.s32 1, %s467_s11 }
   0xf   : > { %s700_s17 = scalar_select %p531_p8, 1, 0 }
  0x10   : > { %p294_p10 = pneg %p531_p8  ;;  %s44_s22 = ssub.s32 %s471_s12, %s539_s20 }
  0x11   : > { %p549_p12 = scmp.eq.s32.totalorder %s44_s22, 0  ;;  %s343_s27 = scalar_lea.hbm %s692_s0, 128 }
  0x12   : > { %p543_p11 = pnand %p294_p10, %p695_p1  ;;  %p344_p0 = scmp.ne.s32.totalorder %s692_s0, %s343_s27 }
  0x13   : > { %s702_s23 = scalar_select %p549_p12, 1, 0 }
  0x14   : > { %p345_p3 = pneg %p543_p11  ;;  %p350_p10 = scmp.lt.u32.totalorder %s343_s27, %s692_s0 }
  0x16   : > { %p346_p5 = pnand %p345_p3, %p344_p0 }
  0x18   : > { %p347_p7 = pneg %p346_p5 }
  0x1a   : > { %p352_p9 = pnand %p350_p10, %p347_p7 }
  0x1c   : > { %355 = shalt.err (!%p352_p9)
}
  0x1d   : > { %s356_s4 = scalar_lea.vmem %s111_s19, 128  ;;  %p364_p6 = scmp.lt.s32.totalorder %s111_s19, %s111_s19 }
  0x1e   : > { %p357_p1 = scmp.ne.s32.totalorder %s111_s19, %s356_s4  ;;  %p365_p4 = scmp.lt.s32.totalorder %s356_s4, %s356_s4 }
  0x20   : > { %p359_p2 = pnand %p357_p1, %p345_p3  ;;  %p366_p8 = por %p365_p4, %p364_p6 }
  0x22   : > { %p360_p13 = pneg %p359_p2 }
  0x24   : > { %p367_p12 = pnand %p366_p8, %p360_p13 }
  0x26   : > { %370 = shalt.err (!%p367_p12)
}
  0x27   : > { %297 = dma.hbm_to_vmem [thread:$0]  (!%p543_p11), %s692_s0, 128, %s111_s19, [#allocation3]  }
  0x28   : > { %p703_p1 = scmp.ne.s32.totalorder %s702_s23, 0  ;;  %p55_p2 = scmp.eq.s32.totalorder %s471_s12, 0 }
  0x29   : > { %p704_p4 = scmp.ne.s32.totalorder %s467_s11, %s463_s10  ;;  %p705_p6 = scmp.eq.s32.totalorder %s512_s13, 1 }
  0x2a   : > { %s575_s7 = scalar_select %p703_p1, %s467_s11, %s47_s24  }
  0x2b   : > { %p583_p8 = por %p705_p6, %p704_p4  ;;  %p307_p9 = scmp.lt.s32.totalorder %s471_s12, 2 }
  0x2c   : > { %s121_s14 = sand.u32 1, %s467_s11   ;;  %p707_p12 = pmov %p704_p4 }
  0x2d   : > { %s276_s18 = sshll.u32 %s121_s14, 3  ;;  %s277_s21 = sshll.u32 %s471_s12, 7 }
  0x2e   : > { %p56_p13 = por %p55_p2, %p707_p12  ;;  %s596_s19 = scalar_lea.hbm %s693_s1, %s277_s21 }
  0x2f   : > { %s125_s23 = scalar_lea.vmem [#allocation5], %s276_s18  ;;  %s122_s27 = scalar_lea.sflag [#allocation6], %s121_s14 }
  0x30   : > { %s132_s24 = sshll.u32 %s125_s23, 4  ;;  %p598_p11 = pnand %p307_p9, %p56_p13  ;;  %s602_s24 = int_to_ptr.vmem [resolvable:$true] %s132_s24 }
  0x31   : > { %s371_s28 = scalar_lea.hbm %s596_s19, 128  ;;  %s376_s3 = scalar_lea.hbm %s693_s1, 256 }
  0x32   : > { %p372_p0 = scmp.ne.s32.totalorder %s596_s19, %s371_s28  ;;  %p373_p3 = pneg %p598_p11 }
  0x33   : > { %p377_p10 = scmp.lt.u32.totalorder %s596_s19, %s693_s1  ;;  %p378_p1 = scmp.lt.u32.totalorder %s376_s3, %s371_s28 }
  0x34   : > { %p374_p5 = pnand %p373_p3, %p372_p0  ;;  %p380_p4 = scmp.lt.u32.totalorder %s371_s28, %s596_s19 }
  0x35   : > { %p379_p2 = por %p378_p1, %p377_p10 }
  0x36   : > { %p375_p7 = pneg %p374_p5 }
  0x37   : > { %p381_p6 = por %p380_p4, %p379_p2 }
  0x39   : > { %p382_p9 = pnand %p381_p6, %p375_p7 }
  0x3b   : > { %385 = shalt.err (!%p382_p9)
}
  0x3c   : > { %s386_s6 = scalar_lea.vmem %s602_s24, 128  ;;  %s474_s14 = smov [#allocation5]  }
  0x3d   : > { %p387_p12 = scmp.ne.s32.totalorder %s602_s24, %s386_s6  ;;  %s391_s18 = sshll.u32 %s474_s14, 4  ;;  %s392_s18 = int_to_ptr.vmem [resolvable:$false] %s391_s18 }
  0x3e   : > { %s393_s21 = scalar_lea.vmem %s392_s18, 256  ;;  %p394_p5 = scmp.lt.s32.totalorder %s602_s24, %s392_s18 }
  0x3f   : > { %p389_p13 = pnand %p387_p12, %p373_p3  ;;  %p395_p10 = scmp.lt.s32.totalorder %s393_s21, %s386_s6 }
  0x41   : > { %p390_p0 = pneg %p389_p13  ;;  %p396_p1 = por %p395_p10, %p394_p5 }
  0x43   : > { %p397_p2 = pnand %p396_p1, %p390_p0 }
  0x45   : > { %400 = shalt.err (!%p397_p2)
}
  0x46   : > { %301 = dma.hbm_to_vmem [thread:$0]  (!%p598_p11), %s596_s19, 128, %s602_s24, %s122_s27  }
  0x47   : > { %p709_p7 = scmp.ne.s32.totalorder %s700_s17, 0 }
  0x48   : > { %p710_p3 = scmp.eq.s32.totalorder (!%p709_p7), %s512_s13, 0 }
  0x49   : > { %141 = sbr.rel (%p709_p7) target bundleno = 110 (0x6e), region = 28 }
  0x50   : > { %446 = dma.done.wait (%p710_p3), [#allocation3], 128   ;;  %p711_p4 = pmov %p710_p3 }
  0x51   : > { %s636_s22 = sand.u32 1, %s463_s10   ;;  %p712_p6 = scmp.ne.s32.totalorder %s698_s15, 0 }
  0x52   : > { %448 = vsyncadd (%p711_p4), [#allocation3], 4294967168  ;;  %s280_s25 = sshll.u32 %s636_s22, 3  ;;  %s148_s23 = scalar_lea.sflag [#allocation6], %s636_s22 }
  0x53   : > { %s151_s26 = scalar_lea.vmem [#allocation5], %s280_s25 }
  0x54   : > { %450 = dma.done.wait (%p712_p6), %s148_s23, 128  }
  0x55   : > { %452 = vsyncadd (%p712_p6), %s148_s23, 4294967168  ;;  %s171_s17 = scalar_lea.vmem [#allocation7], %s280_s25  ;;  %s283_s24 = sshll.u32 %s512_s13, 7  ;;  %v172_v0 = vld [vmem:[%s151_s26] sm:$0xff]  ;;  %v173_v1 = vld [vmem:[#allocation2] sm:$0xff] }
  0x56   : > { %s190_s19 = sshll.u32 %s171_s17, 4  ;;  %v174_v2 = vadd.f32 %v173_v1, %v172_v0  ;;  %s650_s29 = scalar_lea.hbm %s694_s2, %s283_s24  ;;  %s645_s19 = int_to_ptr.vmem [resolvable:$true] %s190_s19 }
  0x57   : > { %s177_s15 = scalar_lea.sflag [#allocation4], %s636_s22  ;;  %s401_s30 = scalar_lea.vmem %s645_s19, 128 }
  0x58   : > { %175 = vst [vmem:[%s171_s17] sm:$0xff] %v174_v2  ;;  %p402_p11 = scmp.ne.s32.totalorder %s645_s19, %s401_s30  ;;  %s475_s13 = smov [#allocation7]  }
  0x59   : > { %s405_s3 = sshll.u32 %s475_s13, 4  ;;  %s406_s3 = int_to_ptr.vmem [resolvable:$false] %s405_s3 }
  0x5a   : > { %p403_p9 = pnand %p402_p11, %p583_p8  ;;  %s407_s4 = scalar_lea.vmem %s406_s3, 256 }
  0x5b   : > { %p408_p13 = scmp.lt.s32.totalorder %s645_s19, %s406_s3  ;;  %p409_p0 = scmp.lt.s32.totalorder %s407_s4, %s401_s30 }
  0x5c   : > { %p404_p12 = pneg %p403_p9 }
  0x5d   : > { %p410_p5 = por %p409_p0, %p408_p13 }
  0x5f   : > { %p411_p10 = pnand %p410_p5, %p404_p12 }
  0x61   : > { %414 = shalt.err (!%p411_p10)
}
  0x62   : > { %s415_s5 = scalar_lea.hbm %s650_s29, 128  ;;  %s419_s18 = scalar_lea.hbm %s694_s2, 256 }
  0x63   : > { %p416_p1 = scmp.ne.s32.totalorder %s650_s29, %s415_s5  ;;  %p420_p3 = scmp.lt.u32.totalorder %s650_s29, %s694_s2 }
  0x64   : > { %p421_p4 = scmp.lt.u32.totalorder %s419_s18, %s415_s5  ;;  %p423_p11 = scmp.lt.u32.totalorder %s415_s5, %s650_s29 }
  0x65   : > { %p417_p2 = pnand %p416_p1, %p583_p8 }
  0x66   : > { %p422_p6 = por %p421_p4, %p420_p3 }
  0x67   : > { %p418_p7 = pneg %p417_p2 }
  0x68   : > { %p424_p9 = por %p423_p11, %p422_p6 }
  0x6a   : > { %p425_p12 = pnand %p424_p9, %p418_p7 }
  0x6c   : > { %428 = shalt.err (!%p425_p12)
}
  0x6d   : > { %292 = dma.vmem_to_hbm [thread:$0]  (%p583_p8), %s645_s19, 128, %s650_s29, %s177_s15  }
  0x6e PF: > { %s202_s25 = sand.u32 1, %s459_s9   ;;  %p713_p13 = scmp.ne.s32.totalorder %s699_s16, 0 }
  0x6f   : > { %p714_p0 = scmp.ge.s32.totalorder %s471_s12, 2  ;;  %s203_s23 = scalar_lea.sflag [#allocation4], %s202_s25 }
  0x71   : > { %p303_p5 = pnand %p714_p0, %p713_p13 }
  0x73   : > { %454 = dma.done.wait (!%p303_p5), %s203_s23, 128  }
  0x74   : > { %456 = vsyncadd (!%p303_p5), %s203_s23, 4294967168  ;;  %p16_p10 = scmp.ge.s32.totalorder %s539_s20, 4   ;;  %s715_s9 = smov %s463_s10 }
  0x75   : > { %s716_s10 = smov %s467_s11  ;;  %s717_s11 = smov %s575_s7 }
  0x76   : > { %s718_s12 = smov %s539_s20  ;;  %18 = sbr.rel (!%p16_p10) target bundleno = 6 (0x6), region = 78 }
  0x7d   :  { %208 = vsyncpa [#allocation3], 1 }
  0x7e   :  { %210 = vsyncpa [#allocation3 + $0x1], 1 }
  0x7f   :  { %211 = vsyncpa [#allocation6], 1 }
  0x80   :  { %213 = vsyncpa [#allocation6 + $0x1], 1 }
  0x81   :  { %214 = vsyncpa [#allocation4], 1 }
  0x82   :  { %216 = vsyncpa [#allocation4 + $0x1], 1 }

// kernel: tpu_custom_call.1
= control target key start
LH: loop header
LB: loop body
LE: loop exit
PB: predicated region body
PF: predicated region fallthrough
CT: control target
= control target key end

     0   :  { %s2505_s0 = inlined_call_operand.vmem [shape: f32[2,8,32], index: 0, kind: input, shape index: {}]   ;;  %s2506_s1 = inlined_call_operand.hbm [shape: bf16[1,8,8], index: 1, kind: input, shape index: {}]   ;;  %s2507_s2 = inlined_call_operand.vmem [shape: f32[1,32], index: 2, kind: input, shape index: {}]   ;;  %s2508_s3 = inlined_call_operand.vmem [shape: f32[1,32], index: 3, kind: input, shape index: {}]   ;;  %s2509_s4 = inlined_call_operand.vmem [shape: bf16[32,96], index: 4, kind: input, shape index: {}]   ;;  %s2510_s5 = inlined_call_operand.hbm [shape: f32[1,96], index: 5, kind: input, shape index: {}]   ;;  %s2511_s6 = inlined_call_operand.vmem [shape: bf16[32,32], index: 6, kind: input, shape index: {}]   ;;  %s2512_s7 = inlined_call_operand.hbm [shape: f32[1,32], index: 7, kind: input, shape index: {}]   ;;  %s2513_s8 = inlined_call_operand.hbm [shape: f32[1,32], index: 8, kind: input, shape index: {}]   ;;  %s2514_s9 = inlined_call_operand.hbm [shape: f32[1,32], index: 9, kind: input, shape index: {}]   ;;  %s2515_s10 = inlined_call_operand.vmem [shape: bf16[32,64], index: 10, kind: input, shape index: {}]   ;;  %s2516_s11 = inlined_call_operand.vmem [shape: f32[1,64], index: 11, kind: input, shape index: {}]   ;;  %s2517_s12 = inlined_call_operand.vmem [shape: bf16[64,32], index: 12, kind: input, shape index: {}]   ;;  %s2518_s13 = inlined_call_operand.vmem [shape: f32[1,32], index: 13, kind: input, shape index: {}]   ;;  %s2519_s14 = inlined_call_operand.hbm [shape: f32[2,8,32], index: 14, kind: output, shape index: {}]  }
   0x1   :  { %2532 = sst [smem:[#allocation24_spill]] %s2510_s5 }
   0x2   :  { %2533 = sst [smem:[#allocation25_spill]] %s2519_s14 }
   0x3   :  { %19 = vsyncpa [#allocation4], 0 }
   0x4   :  { %20 = vsyncpa [#allocation7], 0 }
   0x5   :  { %21 = vsyncpa [#allocation10], 0 }
   0x6   :  { %22 = vsyncpa [#allocation5], 0 }
   0x7   :  { %24 = vsyncpa [#allocation5 + $0x1], 0  ;;  %s2132_s29 = smov 0   ;;  %s2134_s30 = smov 0  }
   0x8   :  { %s2136_s15 = smov 0   ;;  %s2138_s16 = smov 0  }
   0x9 LB: > { %2534 = sst [smem:[#allocation17_spill]] %s2020_s29  ;;  %s2153_s17 = sadd.s32 4294967295, %s2032_s16   ;;  %s2032_s16 = sphi %s2138_s16, %s2562_s16   ;;  %s2028_s15 = sphi %s2136_s15, %s2564_s15   ;;  %s2024_s30 = sphi %s2134_s30, %s2566_s30   ;;  %s2020_s29 = sphi %s2132_s29, %s2565_s29  }
   0xa   : > { %2535 = sst [smem:[#allocation18_spill]] %s2028_s15  ;;  %s1507_s18 = sadd.s32 4294967294, %s2032_s16  }
   0xb   : > { %2536 = sst [smem:[#allocation19_spill]] %s2032_s16  ;;  %s2157_s19 = sadd.s32 1, %s2032_s16  }
   0xc   : > { %2537 = sst [smem:[#allocation20_spill]] %s2157_s19  ;;  %s336_s20 = sadd.s32 1, %s2028_s15 }
   0xd   : > { %s333_s21 = ssub.s32 %s2032_s16, %s2157_s19  ;;  %p346_p0 = scmp.ne.s32.totalorder %s2028_s15, %s2024_s30 }
   0xe   : > { %p334_p1 = scmp.eq.s32.totalorder %s333_s21, 0  ;;  %p347_p2 = scmp.eq.s32.totalorder %s2153_s17, 1 }
   0xf   : > { %p352_p3 = scmp.ne.s32.totalorder %s2024_s30, %s2020_s29  ;;  %p353_p4 = scmp.eq.s32.totalorder %s1507_s18, 1 }
  0x10   : > { %s2168_s22 = scalar_select %p334_p1, %s2028_s15, %s336_s20  }
  0x11   : > { %p2170_p5 = por %p347_p2, %p346_p0  ;;  %p2174_p6 = por %p353_p4, %p352_p3 }
  0x12   : > { %2538 = sst [smem:[#allocation21_spill]] %s2168_s22  ;;  %p1508_p7 = scmp.ge.s32.totalorder %s2032_s16, 1 }
  0x13   : > { %s2539_s23 = scalar_select %p2170_p5, 1, 0 }
  0x14   : > { %s2541_s24 = scalar_select %p2174_p6, 1, 0 }
  0x15   : > { %2540 = sst [smem:[#allocation22_spill]] %s2539_s23  ;;  %p360_p8 = scmp.lt.s32.totalorder %s2032_s16, 3 }
  0x16   : > { %2542 = sst [smem:[#allocation23_spill]] %s2541_s24  ;;  %p2526_p9 = scmp.eq.s32.totalorder %s2153_s17, 0 }
  0x17   : > { %p2181_p10 = pnand %p1508_p7, %p360_p8  ;;  %s2034_s26 = smov [#allocation6]  }
  0x18   : > { %s393_s27 = sshll.u32 %s2034_s26, 4  ;;  %s2035_s28 = smov [#allocation9]   ;;  %s394_s27 = int_to_ptr.vmem [resolvable:$true] %s393_s27 }
  0x19   : > { %s2543_s25 = scalar_select %p2181_p10, 1, 0 }
  0x1a   : > { %p1699_p11 = pneg %p2181_p10  ;;  %s418_s18 = sshll.u32 %s2035_s28, 4  ;;  %s2193_s18 = int_to_ptr.vmem [resolvable:$true] %s418_s18 }
  0x1b   : > { %s2036_s21 = smov [#allocation3]   ;;  %s2545_s5 = sld [smem:[#allocation24_spill]] }
  0x1c   : > { %p2189_p12 = pnand %p2526_p9, %p1699_p11  ;;  %s373_s22 = sshll.u32 %s2036_s21, 4  ;;  %s2195_s22 = int_to_ptr.vmem [resolvable:$true] %s373_s22 }
  0x1e   : > { %p2205_p0 = pneg %p2189_p12 }
  0x21   : > { %s1818_s26 = scalar_lea.hbm %s2545_s5, 16 }
  0x22   : > { %p1819_p13 = scmp.ne.s32.totalorder %s2545_s5, %s1818_s26  ;;  %p1825_p3 = scmp.lt.u32.totalorder %s1818_s26, %s2545_s5 }
  0x24   : > { %p1821_p1 = pnand %p2205_p0, %p1819_p13 }
  0x26   : > { %p1822_p2 = pneg %p1821_p1 }
  0x28   : > { %p1827_p4 = pnand %p1825_p3, %p1822_p2 }
  0x2a   : > { %1830 = shalt.err (!%p1827_p4)
}
  0x2b   : > { %s1831_s15 = scalar_lea.vmem %s394_s27, 16  ;;  %s1838_s29 = scalar_lea.vmem %s394_s27, 32 }
  0x2c   : > { %p1832_p7 = scmp.ne.s32.totalorder %s394_s27, %s1831_s15  ;;  %p1839_p9 = scmp.lt.s32.totalorder %s394_s27, %s394_s27 }
  0x2d   : > { %p1840_p6 = scmp.lt.s32.totalorder %s1838_s29, %s1831_s15 }
  0x2e   : > { %p1834_p8 = pnand %p1832_p7, %p2205_p0 }
  0x2f   : > { %p1841_p5 = por %p1840_p6, %p1839_p9 }
  0x30   : > { %p1835_p11 = pneg %p1834_p8 }
  0x32   : > { %p1842_p10 = pnand %p1841_p5, %p1835_p11 }
  0x34   : > { %1845 = shalt.err (!%p1842_p10)
}
  0x35   : > { %1705 = dma.hbm_to_vmem [thread:$0]  (!%p2189_p12), %s2545_s5, 16, %s394_s27, [#allocation7]  }
  0x36   : > { %s1846_s21 = scalar_lea.hbm %s2513_s8, 16 }
  0x37   : > { %p1847_p13 = scmp.ne.s32.totalorder %s2513_s8, %s1846_s21  ;;  %p1853_p5 = scmp.lt.u32.totalorder %s1846_s21, %s2513_s8 }
  0x39   : > { %p1849_p1 = pnand %p1847_p13, %p2205_p0 }
  0x3b   : > { %p1850_p6 = pneg %p1849_p1 }
  0x3d   : > { %p1855_p9 = pnand %p1853_p5, %p1850_p6 }
  0x3f   : > { %1858 = shalt.err (!%p1855_p9)
}
  0x40   : > { %s1859_s27 = scalar_lea.vmem %s2193_s18, 16  ;;  %s1866_s14 = scalar_lea.vmem %s2193_s18, 32 }
  0x41   : > { %p1860_p10 = scmp.ne.s32.totalorder %s2193_s18, %s1859_s27  ;;  %p1867_p4 = scmp.lt.s32.totalorder %s2193_s18, %s2193_s18 }
  0x42   : > { %p1868_p7 = scmp.lt.s32.totalorder %s1866_s14, %s1859_s27 }
  0x43   : > { %p1862_p2 = pnand %p1860_p10, %p2205_p0 }
  0x44   : > { %p1869_p8 = por %p1868_p7, %p1867_p4 }
  0x45   : > { %p1863_p3 = pneg %p1862_p2 }
  0x47   : > { %p1870_p11 = pnand %p1869_p8, %p1863_p3 }
  0x49   : > { %1873 = shalt.err (!%p1870_p11)
}
  0x4a   : > { %1711 = dma.hbm_to_vmem [thread:$0]  (!%p2189_p12), %s2513_s8, 16, %s2193_s18, [#allocation10]  }
  0x4b   : > { %s1874_s26 = scalar_lea.hbm %s2506_s1, 64 }
  0x4c   : > { %p1875_p13 = scmp.ne.s32.totalorder %s2506_s1, %s1874_s26  ;;  %p1881_p5 = scmp.lt.u32.totalorder %s1874_s26, %s2506_s1 }
  0x4e   : > { %p1877_p1 = pnand %p1875_p13, %p2205_p0 }
  0x50   : > { %p1878_p6 = pneg %p1877_p1 }
  0x52   : > { %p1883_p9 = pnand %p1881_p5, %p1878_p6 }
  0x54   : > { %1886 = shalt.err (!%p1883_p9)
}
  0x55   : > { %s1887_s18 = scalar_lea.vmem %s2195_s22, 64  ;;  %p1895_p4 = scmp.lt.s32.totalorder %s2195_s22, %s2195_s22 }
  0x56   : > { %p1888_p10 = scmp.ne.s32.totalorder %s2195_s22, %s1887_s18  ;;  %p1896_p7 = scmp.lt.s32.totalorder %s1887_s18, %s1887_s18 }
  0x58   : > { %p1890_p2 = pnand %p1888_p10, %p2205_p0  ;;  %p1897_p8 = por %p1896_p7, %p1895_p4 }
  0x5a   : > { %p1891_p3 = pneg %p1890_p2 }
  0x5c   : > { %p1898_p11 = pnand %p1897_p8, %p1891_p3 }
  0x5e   : > { %1901 = shalt.err (!%p1898_p11)
}
  0x5f   : > { %1702 = dma.hbm_to_vmem [thread:$0]  (!%p2189_p12), %s2506_s1, 64, %s2195_s22, [#allocation4]  }
  0x60   : > { %s2037_s19 = smov [#allocation8]   ;;  %s2038_s16 = smov [#allocation11]  }
  0x61   : > { %s407_s24 = sshll.u32 %s2037_s19, 4  ;;  %s429_s26 = sshll.u32 %s2038_s16, 4  ;;  %s408_s24 = int_to_ptr.vmem [resolvable:$true] %s407_s24  ;;  %s430_s26 = int_to_ptr.vmem [resolvable:$true] %s429_s26 }
  0x62   : > { %s1902_s29 = scalar_lea.hbm %s2512_s7, 16 }
  0x63   : > { %p1903_p13 = scmp.ne.s32.totalorder %s2512_s7, %s1902_s29  ;;  %p1909_p5 = scmp.lt.u32.totalorder %s1902_s29, %s2512_s7 }
  0x65   : > { %p1905_p1 = pnand %p1903_p13, %p2205_p0 }
  0x67   : > { %p1906_p6 = pneg %p1905_p1 }
  0x69   : > { %p1911_p9 = pnand %p1909_p5, %p1906_p6 }
  0x6b   : > { %1914 = shalt.err (!%p1911_p9)
}
  0x6c   : > { %s1915_s22 = scalar_lea.vmem %s408_s24, 16  ;;  %s1922_s23 = scalar_lea.vmem %s408_s24, 32 }
  0x6d   : > { %p1916_p10 = scmp.ne.s32.totalorder %s408_s24, %s1915_s22  ;;  %p1923_p4 = scmp.lt.s32.totalorder %s408_s24, %s408_s24 }
  0x6e   : > { %p1924_p7 = scmp.lt.s32.totalorder %s1922_s23, %s1915_s22 }
  0x6f   : > { %p1918_p2 = pnand %p1916_p10, %p2205_p0 }
  0x70   : > { %p1925_p8 = por %p1924_p7, %p1923_p4 }
  0x71   : > { %p1919_p3 = pneg %p1918_p2 }
  0x73   : > { %p1926_p11 = pnand %p1925_p8, %p1919_p3 }
  0x75   : > { %1929 = shalt.err (!%p1926_p11)
}
  0x76   : > { %1708 = dma.hbm_to_vmem [thread:$0]  (!%p2189_p12), %s2512_s7, 16, %s408_s24, [#allocation7]  }
  0x77   : > { %s1930_s15 = scalar_lea.hbm %s2514_s9, 16 }
  0x78   : > { %p1931_p13 = scmp.ne.s32.totalorder %s2514_s9, %s1930_s15  ;;  %p1937_p5 = scmp.lt.u32.totalorder %s1930_s15, %s2514_s9 }
  0x7a   : > { %p1933_p1 = pnand %p1931_p13, %p2205_p0 }
  0x7c   : > { %p1934_p6 = pneg %p1933_p1 }
  0x7e   : > { %p1939_p9 = pnand %p1937_p5, %p1934_p6 }
  0x80   : > { %1942 = shalt.err (!%p1939_p9)
}
  0x81   : > { %s1943_s22 = scalar_lea.vmem %s430_s26, 16  ;;  %s1950_s24 = scalar_lea.vmem %s430_s26, 32 }
  0x82   : > { %p1944_p10 = scmp.ne.s32.totalorder %s430_s26, %s1943_s22  ;;  %p1951_p4 = scmp.lt.s32.totalorder %s430_s26, %s430_s26 }
  0x83   : > { %p1952_p7 = scmp.lt.s32.totalorder %s1950_s24, %s1943_s22 }
  0x84   : > { %p1946_p2 = pnand %p1944_p10, %p2205_p0 }
  0x85   : > { %p1953_p8 = por %p1952_p7, %p1951_p4 }
  0x86   : > { %p1947_p3 = pneg %p1946_p2 }
  0x88   : > { %p1954_p11 = pnand %p1953_p8, %p1947_p3 }
  0x8a   : > { %1957 = shalt.err (!%p1954_p11)
}
  0x8b   : > { %1714 = dma.hbm_to_vmem [thread:$0]  (!%p2189_p12), %s2514_s9, 16, %s430_s26, [#allocation10]  }
  0x8c   : > { %p2547_p13 = scmp.ne.s32.totalorder %s2543_s25, 0 }
  0x8d   : > { %p2548_p1 = scmp.eq.s32.totalorder (!%p2547_p13), %s2153_s17, 0 }
  0x8e   : > { %461 = sbr.rel (%p2547_p13) target bundleno = 2770 (0xad2), region = 76 }
  0x95   : > { %2003 = dma.done.wait (%p2548_p1), [#allocation4], 64   ;;  %p2549_p0 = pmov %p2548_p1 }
  0x97   : > { %2005 = vsyncadd (%p2549_p0), [#allocation4], 4294967232  ;;  %p2550_p6 = pmov %p2549_p0 }
  0x98   : > { %p2551_p5 = pmov %p2549_p0 }
  0x99   : > { %2007 = dma.done.wait (%p2550_p6), [#allocation7], 32  }
  0x9a   : > { %2009 = vsyncadd (%p2551_p5), [#allocation7], 4294967264  ;;  %p2552_p9 = pmov %p2549_p0 }
  0x9b   : > { %p2553_p12 = pmov %p2549_p0 }
  0x9c   : > { %2011 = dma.done.wait (%p2552_p9), [#allocation10], 32  }
  0x9d   : > { %2013 = vsyncadd (%p2553_p12), [#allocation10], 4294967264  ;;  %p522_p10 = scmp.lt.s32.totalorder %s2153_s17, 1  ;;  %vm530_vm0 = vcmask 261120   ;;  %v1784_v7 = vld [vmem:[%s2509_s4] sm:$0xff]   ;;  %v2039_v8 = vmov 0.0  }
  0x9e   : > { %1593 = vmatprep.subr.bf16.mxu0 %v2039_v8  ;;  %vm2040_vm1 = vmmov 0   ;;  %v1785_v9 = vld [vmem:[%s2509_s4 + $0x8] sm:$0xff]   ;;  %1601 = vmatprep.subr.bf16.mxu1 %v2039_v8  ;;  %v1523_v14 = vld [vmem:[%s2507_s2] ss:$0 sm:$0xff]  ;;  %s2041_s24 = smov 120   ;;  %s2042_s23 = smov 96  }
  0x9f   : > { %s523_s25 = scalar_select %p522_p10, %s2153_s17, 1  ;;  %1597 = vmatprep.mubr.msk.bf16.mxu0 %vm2040_vm1, %v2039_v8  ;;  %1594 = vmatpush3.bf16.msra.mxu0 %v1784_v7  ;;  %v1524_v16 = vld [vmem:[%s2508_s3] ss:$0 sm:$0xff]  ;;  %v1525_v20 = vld [vmem:[#allocation6] ss:$0 sm:$0xff]  ;;  %vm632_vm2 = vcmask 64512  }
  0xa0   : > { %1595 = vmatprep.subr.bf16.mxu0 %v2039_v8  ;;  %1603 = vmatprep.mubr.msk.bf16.mxu1 %vm2040_vm1, %v2039_v8  ;;  %s2043_s19 = smov 88   ;;  %s2046_s28 = smov 72   ;;  %v626_v38 = vld [vmem:[#allocation3] sm:$0xf]  ;;  %vm698_vm3 = vcmask 1043456   ;;  %vm743_vm4 = vcmask 60416  }
  0xa1   : > { %s1522_s20 = sshll.u32 %s523_s25, 3  ;;  %s2044_s25 = smov 80   ;;  %v627_v39 = vunpack.c.l.bf16 %v626_v38  ;;  %vm864_vm5 = vcmask 126016   ;;  %vm985_vm6 = vcmask 191616   ;;  %vm1106_vm7 = vcmask 257216  }
  0xa2   : > { %s525_s16 = scalar_lea.vmem %s2505_s0, %s1522_s20  ;;  %s2045_s20 = smov 112   ;;  %vm1338_vm9 = vcmask 523264  }
  0xa3   : > { %v527_v0 = vld [vmem:[%s525_s16] sm:$0xff]  ;;  %1596 = vmatpush3.bf16.msra.mxu0 %v1785_v9  ;;  %s2047_s26 = smov 104   ;;  %s2048_s16 = smov 64  }
  0xa4   : > { %v531_v1 = vsel %vm530_vm0, %v527_v0, 0.0  ;;  %1607 = vmatprep.subr.bf16.mxu0 %v2039_v8  ;;  %s2049_s5 = smov 56   ;;  %s2050_s21 = smov 48  }
  0xa5   : > { %532 = vadd.xlane.f32.xlu0 %v531_v1  ;;  %s2051_s15 = smov 40   ;;  %s2052_s29 = smov 8  }
  0xa6   : > { %s2056_s14 = smov [#allocation12]  }
  0xa7   : > { %s1962_s22 = sshll.u32 %s2056_s14, 4  ;;  %s1963_s22 = int_to_ptr.vmem [resolvable:$false] %s1962_s22 }
 0x132   : > { %v533_v2 = vpop.xlane.xlu0 %532 }
 0x133   : > { %v535_v3 = vmul.f32 0.03125, %v533_v2 }
 0x135   : > { %v536_v4 = vsub.f32 %v527_v0, %v535_v3 }
 0x137   : > { %v537_v5 = vmul.f32 %v536_v4, %v536_v4 }
 0x139   : > { %v538_v6 = vsel %vm530_vm0, %v537_v5, 0.0 }
 0x13a   : > { %539 = vadd.xlane.f32.xlu0 %v538_v6 }
 0x1c7   : > { %v540_v10 = vpop.xlane.xlu0 %539 }
 0x1c8   : > { %v541_v11 = vmul.f32 0.03125, %v540_v10 }
 0x1ca   : > { %v542_v12 = vadd.f32 1e-05, %v541_v11 }
 0x1cc   : > { %1794 = vrsqrt.f32 %v542_v12 }
 0x1d6   : > { %v1795_v13 = vpop.eup %1794 }
 0x1d7   : > { %v544_v15 = vmul.f32 %v1795_v13, %v536_v4 }
 0x1d9   : > { %v551_v17 = vmul.f32 %v1523_v14, %v544_v15 }
 0x1db   : > { %v558_v18 = vadd.f32 %v1524_v16, %v551_v17 }
 0x1dd   : > { %v559_v19 = vpack.c.bf16 %v558_v18, %v558_v18 }
 0x1df   : > { %1598 = vmatmul.mubr.msk.bf16.vlgmr.msra.gmra.mrb[0].mxu0 %vm530_vm0, %v559_v19 }
 0x1e0   : > { %1609 = vmatprep.mubr.msk.bf16.mxu0 %vm2040_vm1, %v2039_v8 }
 0x2b2   : > { %v620_v21 = vpop.f32.mrb[0].mxu0 }
 0x2b3   : > { %v621_v22 = vadd.f32 %v1525_v20, %v620_v21  ;;  %v1599_v23 = vpop.f32.mrb[1].mxu0 }
 0x2b4   : > { %v623_v24 = vpop.f32.mrb[2].mxu0 }
 0x2b5   : > { %v2348_v25 = vpack.c.bf16 %v621_v22, %v621_v22  ;;  %v1600_v26 = vpop.f32.mrb[3].mxu0 }
 0x2b7   : > { %745 = vrot.lane.b32.xlu0 %v2348_v25, %s2041_s24  ;;  %630 = vrot.lane.b32.xlu1 %v2348_v25, %s2042_s23  ;;  %s2053_s24 = smov 16   ;;  %s2054_s23 = smov 24  }
 0x2bb   : > { %747 = vrot.lane.b32.xlu1 %v2348_v25, %s2043_s19 }
 0x2bf   : > { %868 = vrot.lane.b32.xlu1 %v2348_v25, %s2044_s25 }
 0x2c3   : > { %866 = vrot.lane.b32.xlu1 %v2348_v25, %s2045_s20  ;;  %s2554_s20 = sld [smem:[#allocation22_spill]] }
 0x2c7   : > { %989 = vrot.lane.b32.xlu1 %v2348_v25, %s2046_s28  ;;  %s1557_s28 = sshll.u32 %s2153_s17, 7 }
 0x2c9   : > { %p2557_p3 = scmp.ne.s32.totalorder %s2554_s20, 0 }
 0x2cb   : > { %987 = vrot.lane.b32.xlu1 %v2348_v25, %s2047_s26 }
 0x329   : > { %v631_v27 = vpop.permute.xlu1 %630  ;;  %v746_v32 = vpop.permute.xlu0 %745 }
 0x32a   : > { %v637_v28 = vsel %vm632_vm2, %v631_v27, 0 }
 0x32b   : > { %1602 = vmatpush3.bf16.xpose.msra.mxu1 %v637_v28 }
 0x32c   : > { %1613 = vmatprep.subr.bf16.mxu1 %v2039_v8 }
 0x32d   : > { %v748_v29 = vpop.permute.xlu1 %747 }
 0x32e   : > { %v753_v30 = vsel %vm632_vm2, %v748_v29, 0 }
 0x331   : > { %v869_v31 = vpop.permute.xlu1 %868 }
 0x332   : > { %1604 = vmatmul.mubr.msk.bf16.vlgmr.msra.gmra.mrb[0].mxu1 %vm632_vm2, %v2348_v25  ;;  %v874_v34 = vsel %vm632_vm2, %v869_v31, 0 }
 0x333   : > { %1614 = vmatpush3.bf16.xpose.msra.mxu1 %v753_v30  ;;  %1615 = vmatprep.mubr.msk.bf16.mxu1 %vm2040_vm1, %v2039_v8 }
 0x334   : > { %1625 = vmatprep.subr.bf16.mxu1 %v2039_v8 }
 0x335   : > { %v867_v33 = vpop.permute.xlu1 %866 }
 0x339   : > { %v990_v35 = vpop.permute.xlu1 %989 }
 0x33a   : > { %1616 = vmatmul.mubr.msk.bf16.vlgmr.msra.gmra.mrb[4].mxu1 %vm632_vm2, %v746_v32  ;;  %v995_v36 = vsel %vm632_vm2, %v990_v35, 0 }
 0x33b   : > { %1626 = vmatpush3.bf16.xpose.msra.mxu1 %v874_v34  ;;  %1627 = vmatprep.mubr.msk.bf16.mxu1 %vm2040_vm1, %v2039_v8 }
 0x33c   : > { %1637 = vmatprep.subr.bf16.mxu1 %v2039_v8 }
 0x33d   : > { %v988_v37 = vpop.permute.xlu1 %987 }
 0x342   : > { %1628 = vmatmul.mubr.msk.bf16.vlgmr.msra.gmra.mrb[8].mxu1 %vm632_vm2, %v867_v33 }
 0x343   : > { %1638 = vmatpush3.bf16.xpose.msra.mxu1 %v995_v36  ;;  %1639 = vmatprep.mubr.msk.bf16.mxu1 %vm2040_vm1, %v2039_v8 }
 0x344   : > { %1649 = vmatprep.subr.bf16.mxu1 %v2039_v8 }
 0x34a   : > { %1640 = vmatmul.mubr.msk.bf16.vlgmr.msra.gmra.mrb[12].mxu1 %vm632_vm2, %v988_v37 }
 0x34b   : > { %1653 = vmatprep.mubr.msk.bf16.mxu1 %vm2040_vm1, %v2039_v8 }
 0x405   : > { %v673_v40 = vpop.f32.mrb[0].mxu1 }
 0x406   : > { %v679_v41 = vmul.f32 0.35355338, %v673_v40  ;;  %v1605_v42 = vpop.f32.mrb[1].mxu1 }
 0x407   : > { %v676_v43 = vpop.f32.mrb[2].mxu1 }
 0x408   : > { %v1606_v44 = vpop.f32.mrb[3].mxu1  ;;  %v680_v45 = vadd.f32 %v679_v41, %v627_v39 }
 0x40a   : > { %v681_v46 = vsel %vm632_vm2, %v680_v45, -inf }
 0x40b   : > { %682 = vmax.xlane.f32.xlu1 %v681_v46 }
 0x40d   : > { %v789_v47 = vpop.f32.mrb[4].mxu1 }
 0x40e   : > { %v795_v48 = vmul.f32 0.35355338, %v789_v47  ;;  %v1617_v49 = vpop.f32.mrb[5].mxu1 }
 0x40f   : > { %v792_v50 = vpop.f32.mrb[6].mxu1 }
 0x410   : > { %v1618_v51 = vpop.f32.mrb[7].mxu1  ;;  %v796_v52 = vadd.f32 %v795_v48, %v627_v39 }
 0x412   : > { %v797_v53 = vsel %vm632_vm2, %v796_v52, -inf }
 0x413   : > { %798 = vmax.xlane.f32.xlu0 %v797_v53 }
 0x415   : > { %v910_v54 = vpop.f32.mrb[8].mxu1 }
 0x416   : > { %v916_v55 = vmul.f32 0.35355338, %v910_v54  ;;  %v1629_v56 = vpop.f32.mrb[9].mxu1 }
 0x417   : > { %v913_v57 = vpop.f32.mrb[10].mxu1 }
 0x418   : > { %v1630_v58 = vpop.f32.mrb[11].mxu1  ;;  %v917_v59 = vadd.f32 %v916_v55, %v627_v39 }
 0x41a   : > { %v918_v60 = vsel %vm632_vm2, %v917_v59, -inf }
 0x41b   : > { %919 = vmax.xlane.f32.xlu1 %v918_v60 }
 0x41d   : > { %v1031_v61 = vpop.f32.mrb[12].mxu1 }
 0x41e   : > { %v1037_v62 = vmul.f32 0.35355338, %v1031_v61  ;;  %v1641_v63 = vpop.f32.mrb[13].mxu1  ;;  %v1787_v61 = vld [vmem:[%s2511_s6 + $0x8] sm:$0xff]  }
 0x41f   : > { %v1034_v0 = vpop.f32.mrb[14].mxu1 }
 0x420   : > { %v1642_v1 = vpop.f32.mrb[15].mxu1  ;;  %v1038_v2 = vadd.f32 %v1037_v62, %v627_v39 }
 0x422   : > { %v1039_v3 = vsel %vm632_vm2, %v1038_v2, -inf }
 0x423   : > { %1040 = vmax.xlane.f32.xlu0 %v1039_v3 }
 0x498   : > { %v683_v4 = vpop.xlane.xlu1 %682 }
 0x499   : > { %v684_v5 = vsub.f32 %v680_v45, %v683_v4 }
 0x49b   : > { %v685_v6 = vmul.f32 1.442695, %v684_v5 }
 0x49d   : > { %1796 = vpow2.f32 %v685_v6 }
 0x4a0   : > { %v799_v7 = vpop.xlane.xlu0 %798 }
 0x4a1   : > { %v800_v9 = vsub.f32 %v796_v52, %v799_v7 }
 0x4a3   : > { %v801_v10 = vmul.f32 1.442695, %v800_v9 }
 0x4a5   : > { %1798 = vpow2.f32 %v801_v10 }
 0x4a7   : > { %v1797_v11 = vpop.eup %1796 }
 0x4a8   : > { %v687_v12 = vsel %vm632_vm2, %v1797_v11, 0.0  ;;  %v920_v20 = vpop.xlane.xlu1 %919 }
 0x4a9   : > { %688 = vadd.xlane.f32.xlu1 %v687_v12  ;;  %v921_v21 = vsub.f32 %v917_v59, %v920_v20  ;;  %v1786_v59 = vld [vmem:[%s2511_s6] sm:$0xff]   ;;  %v1540_v12 = vld [vmem:[#allocation8] ss:$0 sm:$0xff] }
 0x4aa   : > { %1650 = vmatpush3.bf16.msra.mxu1 %v1786_v59 }
 0x4ab   : > { %v922_v22 = vmul.f32 1.442695, %v921_v21  ;;  %1651 = vmatprep.subr.bf16.mxu1 %v2039_v8 }
 0x4ae   : > { %1652 = vmatpush3.bf16.msra.mxu1 %v1787_v61 }
 0x4af   : > { %v1799_v13 = vpop.eup %1798  ;;  %1665 = vmatprep.subr.bf16.mxu1 %v2039_v8 }
 0x4b0   : > { %v1041_v14 = vpop.xlane.xlu0 %1040  ;;  %v803_v15 = vsel %vm632_vm2, %v1799_v13, 0.0 }
 0x4b1   : > { %v1042_v16 = vsub.f32 %v1038_v2, %v1041_v14  ;;  %804 = vadd.xlane.f32.xlu0 %v803_v15 }
 0x4b3   : > { %v1043_v17 = vmul.f32 1.442695, %v1042_v16 }
 0x4b5   : > { %1800 = vpow2.f32 %v1043_v17 }
 0x4b6   : > { %1802 = vpow2.f32 %v922_v22 }
 0x4ba   : > { %693 = vrot.lane.b32.xlu1 %v2348_v25, %s2048_s16 }
 0x4bf   : > { %v1801_v18 = vpop.eup %1800 }
 0x4c0   : > { %v1045_v19 = vsel %vm632_vm2, %v1801_v18, 0.0  ;;  %v1803_v23 = vpop.eup %1802 }
 0x4c1   : > { %1046 = vadd.xlane.f32.xlu0 %v1045_v19  ;;  %v924_v24 = vsel %vm632_vm2, %v1803_v23, 0.0 }
 0x4d7   : > { %809 = vrot.lane.b32.xlu0 %v2348_v25, %s2049_s5 }
 0x4de   : > { %925 = vadd.xlane.f32.xlu1 %v924_v24  ;;  %v1788_v24 = vld [vmem:[%s2515_s10] sm:$0xff]  }
 0x4ef   : > { %930 = vrot.lane.b32.xlu1 %v2348_v25, %s2050_s21 }
 0x4f3   : > { %1051 = vrot.lane.b32.xlu1 %v2348_v25, %s2051_s15  ;;  %s2555_s15 = sld [smem:[#allocation25_spill]] }
 0x4f9   : > { %s2556_s27 = smov %s2555_s15 }
 0x536   : > { %v689_v26 = vpop.xlane.xlu1 %688 }
 0x537   : > { %1804 = vrcp.f32 %v689_v26  ;;  %v1789_v26 = vld [vmem:[%s2515_s10 + $0x8] sm:$0xff]  }
 0x53a   : > { %v694_v27 = vpop.permute.xlu1 %693 }
 0x53b   : > { %v700_v28 = vsel %vm698_vm3, %v694_v27, 0 }
 0x53c   : > { %1608 = vmatpush3.bf16.msra.mxu0 %v700_v28 }
 0x53d   : > { %1619 = vmatprep.subr.bf16.mxu0 %v2039_v8 }
 0x53e   : > { %v805_v30 = vpop.xlane.xlu0 %804 }
 0x53f   : > { %1806 = vrcp.f32 %v805_v30 }
 0x541   : > { %v1805_v29 = vpop.eup %1804 }
 0x542   : > { %v691_v31 = vmul.f32 %v1805_v29, %v1797_v11 }
 0x544   : > { %v692_v32 = vpack.c.bf16 %v691_v31, %v691_v31  ;;  %v1544_v31 = vld [vmem:[#allocation9] ss:$0 sm:$0xff] }
 0x546   : > { %1610 = vmatmul.mubr.msk.bf16.vlgmr.msra.gmra.mrb[4].mxu0 %vm632_vm2, %v692_v32 }
 0x547   : > { %1621 = vmatprep.mubr.msk.bf16.mxu0 %vm2040_vm1, %v2039_v8 }
 0x549   : > { %v1807_v25 = vpop.eup %1806 }
 0x54a   : > { %v807_v34 = vmul.f32 %v1807_v25, %v1799_v13  ;;  %v1545_v25 = vld [vmem:[#allocation11] ss:$0 sm:$0xff] }
 0x54c   : > { %v808_v37 = vpack.c.bf16 %v807_v34, %v807_v34 }
 0x54e   : > { %v1047_v33 = vpop.xlane.xlu0 %1046 }
 0x552   : > { %v810_v35 = vpop.permute.xlu0 %809 }
 0x553   : > { %v815_v36 = vsel %vm698_vm3, %v810_v35, 0 }
 0x554   : > { %1620 = vmatpush3.bf16.msra.mxu0 %v815_v36  ;;  %v1790_v36 = vld [vmem:[%s2517_s12] sm:$0xff]  }
 0x555   : > { %1631 = vmatprep.subr.bf16.mxu0 %v2039_v8 }
 0x557   : > { %1622 = vmatmul.mubr.msk.bf16.vlgmr.msra.gmra.mrb[8].mxu0 %vm632_vm2, %v808_v37  ;;  %v1791_v37 = vld [vmem:[%s2517_s12 + $0x8] sm:$0xff]  }
 0x558   : > { %1633 = vmatprep.mubr.msk.bf16.mxu0 %vm2040_vm1, %v2039_v8 }
 0x56b   : > { %v926_v38 = vpop.xlane.xlu1 %925 }
 0x56c   : > { %1808 = vrcp.f32 %v926_v38  ;;  %v1792_v38 = vld [vmem:[%s2517_s12 + $0x10] sm:$0xff]  }
 0x56d   : > { %1810 = vrcp.f32 %v1047_v33 }
 0x56f   : > { %v931_v39 = vpop.permute.xlu1 %930 }
 0x570   : > { %v936_v40 = vsel %vm698_vm3, %v931_v39, 0  ;;  %v1793_v39 = vld [vmem:[%s2517_s12 + $0x18] sm:$0xff]  }
 0x571   : > { %1632 = vmatpush3.bf16.msra.mxu0 %v936_v40  ;;  %v1546_v40 = vld [vmem:[%s2516_s11] ss:$0 sm:$0xff] }
 0x572   : > { %1643 = vmatprep.subr.bf16.mxu0 %v2039_v8 }
 0x573   : > { %v1052_v43 = vpop.permute.xlu1 %1051 }
 0x574   : > { %v1057_v46 = vsel %vm698_vm3, %v1052_v43, 0 }
 0x576   : > { %v1809_v41 = vpop.eup %1808 }
 0x577   : > { %v928_v42 = vmul.f32 %v1809_v41, %v1803_v23  ;;  %v1811_v45 = vpop.eup %1810 }
 0x578   : > { %v1049_v47 = vmul.f32 %v1811_v45, %v1801_v18 }
 0x579   : > { %v929_v44 = vpack.c.bf16 %v928_v42, %v928_v42 }
 0x57a   : > { %v1050_v48 = vpack.c.bf16 %v1049_v47, %v1049_v47 }
 0x57b   : > { %1634 = vmatmul.mubr.msk.bf16.vlgmr.msra.gmra.mrb[12].mxu0 %vm632_vm2, %v929_v44 }
 0x57c   : > { %1644 = vmatpush3.bf16.msra.mxu0 %v1057_v46  ;;  %1645 = vmatprep.mubr.msk.bf16.mxu0 %vm2040_vm1, %v2039_v8 }
 0x57d   : > { %1657 = vmatprep.subr.bf16.mxu0 %v2039_v8 }
 0x583   : > { %1646 = vmatmul.mubr.msk.bf16.vlgmr.msra.gmra.mrb[16].mxu0 %vm632_vm2, %v1050_v48 }
 0x584   : > { %1661 = vmatprep.mubr.msk.bf16.mxu0 %vm2040_vm1, %v2039_v8  ;;  %1658 = vmatpush3.bf16.msra.mxu0 %v1788_v24 }
 0x585   : > { %1659 = vmatprep.subr.bf16.mxu0 %v2039_v8 }
 0x588   : > { %1660 = vmatpush3.bf16.msra.mxu0 %v1789_v26 }
 0x619   : > { %v736_v49 = vpop.f32.mrb[4].mxu0 }
 0x61a   : > { %v742_v50 = vpack.c.bf16 %v736_v49, %v736_v49  ;;  %v1611_v51 = vpop.f32.mrb[5].mxu0 }
 0x61b   : > { %v739_v52 = vpop.f32.mrb[6].mxu0 }
 0x61c   : > { %744 = vst.msk [vmem:[#allocation2] sm:$0xf] %vm743_vm4, %v742_v50  ;;  %v1612_v53 = vpop.f32.mrb[7].mxu0 }
 0x62a   : > { %v851_v54 = vpop.f32.mrb[8].mxu0 }
 0x62b   : > { %v1560_v55 = vpack.c.bf16 %v851_v54, %v851_v54  ;;  %v1623_v56 = vpop.f32.mrb[9].mxu0 }
 0x62c   : > { %v854_v57 = vpop.f32.mrb[10].mxu0 }
 0x62d   : > { %861 = vrot.lane.b32.xlu0 %v1560_v55, %s2052_s29  ;;  %v1624_v58 = vpop.f32.mrb[11].mxu0  ;;  %s2462_s29 = scalar_lea.hbm %s2555_s15, %s1557_s28 }
 0x64e   : > { %v972_v60 = vpop.f32.mrb[12].mxu0 }
 0x64f   : > { %v1561_v62 = vpack.c.bf16 %v972_v60, %v972_v60  ;;  %v1635_v63 = vpop.f32.mrb[13].mxu0 }
 0x650   : > { %v975_v0 = vpop.f32.mrb[14].mxu0 }
 0x651   : > { %982 = vrot.lane.b32.xlu1 %v1561_v62, %s2053_s24  ;;  %v1636_v1 = vpop.f32.mrb[15].mxu0  ;;  %s519_s24 = sand.u32 1, %s2024_s30  }
 0x652   : > { %v2055_v1 = vmov -1.0   ;;  %s1385_s17 = scalar_lea.sflag [#allocation5], %s519_s24 }
 0x656   : > { %v1093_v2 = vpop.f32.mrb[16].mxu0 }
 0x657   : > { %v1562_v3 = vpack.c.bf16 %v1093_v2, %v1093_v2  ;;  %v1647_v4 = vpop.f32.mrb[17].mxu0 }
 0x658   : > { %v1096_v5 = vpop.f32.mrb[18].mxu0 }
 0x659   : > { %1103 = vrot.lane.b32.xlu0 %v1562_v3, %s2054_s23  ;;  %v1648_v6 = vpop.f32.mrb[19].mxu0  ;;  %s1521_s23 = sshll.u32 %s519_s24, 3 }
 0x65a   : > { %s521_s26 = scalar_lea.vmem [#allocation12], %s1521_s23  ;;  %s1964_s23 = scalar_lea.vmem %s1963_s22, 256 }
 0x65b   : > { %s1398_s16 = sshll.u32 %s521_s26, 4  ;;  %s2464_s16 = int_to_ptr.vmem [resolvable:$true] %s1398_s16 }
 0x65c   : > { %s1958_s18 = scalar_lea.vmem %s2464_s16, 128  ;;  %p1965_p8 = scmp.lt.s32.totalorder %s2464_s16, %s1963_s22 }
 0x65d   : > { %p1959_p2 = scmp.ne.s32.totalorder %s2464_s16, %s1958_s18  ;;  %p1966_p11 = scmp.lt.s32.totalorder %s1964_s23, %s1958_s18 }
 0x65f   : > { %p1960_p4 = pnand %p1959_p2, %p2557_p3  ;;  %p1967_p13 = por %p1966_p11, %p1965_p8 }
 0x661   : > { %p1961_p7 = pneg %p1960_p4 }
 0x663   : > { %p1968_p1 = pnand %p1967_p13, %p1961_p7 }
 0x69f   : > { %v862_v7 = vpop.permute.xlu0 %861 }
 0x6a0   : > { %865 = vst.msk [vmem:[#allocation2] sm:$0xf] %vm864_vm5, %v862_v7 }
 0x6c3   : > { %v983_v9 = vpop.permute.xlu1 %982 }
 0x6c4   : > { %986 = vst.msk [vmem:[#allocation2] sm:$0xf] %vm985_vm6, %v983_v9  ;;  %v1550_v9 = vld [vmem:[%s2518_s13] ss:$0 sm:$0xff] }
 0x6cb   : > { %v1104_v10 = vpop.permute.xlu0 %1103 }
 0x6cc   : > { %1107 = vst.msk [vmem:[#allocation2] sm:$0xf] %vm1106_vm7, %v1104_v10 }
 0x6d3   : > { %v1108_v11 = vld [vmem:[#allocation2] sm:$0xf] }
 0x6d4   : > { %1654 = vmatmul.mubr.msk.bf16.vlgmr.msra.gmra.mrb[16].mxu1 %vm530_vm0, %v1108_v11 }
 0x6d5   : > { %1673 = vmatprep.mubr.msk.bf16.mxu1 %vm2040_vm1, %v2039_v8  ;;  %1666 = vmatpush3.bf16.msra.mxu1 %v1790_v36 }
 0x6d6   : > { %1667 = vmatprep.subr.bf16.mxu1 %v2039_v8 }
 0x6d9   : > { %1668 = vmatpush3.bf16.msra.mxu1 %v1791_v37 }
 0x6da   : > { %1669 = vmatprep.subr.bf16.mxu1 %v2039_v8 }
 0x6dd   : > { %1670 = vmatpush3.bf16.msra.mxu1 %v1792_v38 }
 0x6de   : > { %1671 = vmatprep.subr.bf16.mxu1 %v2039_v8 }
 0x6e1   : > { %1672 = vmatpush3.bf16.msra.mxu1 %v1793_v39 }
 0x7a7   : > { %v1169_v13 = vpop.f32.mrb[16].mxu1 }
 0x7a8   : > { %v2421_v14 = vadd.f32 %v1540_v12, %v1169_v13  ;;  %v1655_v15 = vpop.f32.mrb[17].mxu1 }
 0x7a9   : > { %v1172_v16 = vpop.f32.mrb[18].mxu1 }
 0x7aa   : > { %v1656_v17 = vpop.f32.mrb[19].mxu1  ;;  %v1177_v18 = vsel %vm530_vm0, %v2421_v14, 0.0 }
 0x7ab   : > { %1178 = vadd.xlane.f32.xlu1 %v1177_v18 }
 0x838   : > { %v1179_v19 = vpop.xlane.xlu1 %1178 }
 0x839   : > { %v1180_v20 = vmul.f32 0.03125, %v1179_v19 }
 0x83b   : > { %v1181_v21 = vsub.f32 %v2421_v14, %v1180_v20 }
 0x83d   : > { %v1182_v22 = vmul.f32 %v1181_v21, %v1181_v21 }
 0x83f   : > { %v1183_v23 = vsel %vm530_vm0, %v1182_v22, 0.0 }
 0x840   : > { %1184 = vadd.xlane.f32.xlu0 %v1183_v23 }
 0x8cd   : > { %v1185_v27 = vpop.xlane.xlu0 %1184 }
 0x8ce   : > { %v1186_v28 = vmul.f32 0.03125, %v1185_v27 }
 0x8d0   : > { %v1187_v29 = vadd.f32 1e-05, %v1186_v28 }
 0x8d2   : > { %1812 = vrsqrt.f32 %v1187_v29 }
 0x8dc   : > { %v1813_v30 = vpop.eup %1812 }
 0x8dd   : > { %v1189_v32 = vmul.f32 %v1813_v30, %v1181_v21 }
 0x8df   : > { %v1196_v33 = vmul.f32 %v1544_v31, %v1189_v32 }
 0x8e1   : > { %v1203_v34 = vadd.f32 %v1545_v25, %v1196_v33 }
 0x8e3   : > { %v1204_v35 = vpack.c.bf16 %v1203_v34, %v1203_v34 }
 0x8e5   : > { %1662 = vmatmul.mubr.msk.bf16.vlgmr.msra.gmra.mrb[20].mxu0 %vm530_vm0, %v1204_v35 }
 0x9b8   : > { %v1265_v41 = vpop.f32.mrb[20].mxu0 }
 0x9b9   : > { %v1266_v42 = vadd.f32 %v1546_v40, %v1265_v41  ;;  %v1663_v43 = vpop.f32.mrb[21].mxu0 }
 0x9ba   : > { %v1268_v44 = vpop.f32.mrb[22].mxu0 }
 0x9bb   : > { %v1272_v45 = vmul.f32 0.70710677, %v1266_v42  ;;  %v1664_v46 = vpop.f32.mrb[23].mxu0  ;;  %v1271_v4 = vmul.f32 0.5, %v1266_v42 }
 0x9bd   : > { %v1275_v47 = vand.u32 2147483647, %v1272_v45  ;;  %vm1273_vm8 = vcmp.ge.f32.partialorder %v1272_v45, 0.0 }
 0x9be   : > { %v1274_v2 = vsel %vm1273_vm8, 1.0, %v2055_v1 }
 0x9bf   : > { %v1276_v48 = vmul.f32 0.3275911, %v1275_v47  ;;  %v1289_v8 = vsub.f32 0.0, %v1275_v47 }
 0x9c1   : > { %v1277_v49 = vadd.f32 1.0, %v1276_v48  ;;  %v1290_v51 = vmul.f32 %v1289_v8, %v1275_v47 }
 0x9c3   : > { %1814 = vrcp.f32 %v1277_v49  ;;  %v1291_v54 = vmul.f32 1.442695, %v1290_v51 }
 0x9c5   : > { %1816 = vpow2.f32 %v1291_v54 }
 0x9cd   : > { %v1815_v50 = vpop.eup %1814 }
 0x9ce   : > { %v1280_v52 = vmul.f32 1.0614054, %v1815_v50 }
 0x9cf   : > { %v1817_v62 = vpop.eup %1816 }
 0x9d0   : > { %v1281_v53 = vadd.f32 -1.4531521, %v1280_v52 }
 0x9d2   : > { %v1282_v55 = vmul.f32 %v1815_v50, %v1281_v53 }
 0x9d4   : > { %v1283_v56 = vadd.f32 1.4214138, %v1282_v55 }
 0x9d6   : > { %v1284_v57 = vmul.f32 %v1815_v50, %v1283_v56 }
 0x9d8   : > { %v1285_v58 = vadd.f32 -0.28449672, %v1284_v57 }
 0x9da   : > { %v1286_v59 = vmul.f32 %v1815_v50, %v1285_v58 }
 0x9dc   : > { %v1287_v60 = vadd.f32 0.2548296, %v1286_v59 }
 0x9de   : > { %v1288_v61 = vmul.f32 %v1815_v50, %v1287_v60 }
 0x9e0   : > { %v1293_v63 = vmul.f32 %v1817_v62, %v1288_v61 }
 0x9e2   : > { %v1294_v0 = vsub.f32 1.0, %v1293_v63 }
 0x9e4   : > { %v1295_v3 = vmul.f32 %v1294_v0, %v1274_v2 }
 0x9e6   : > { %v1296_v5 = vadd.f32 1.0, %v1295_v3 }
 0x9e8   : > { %v1297_v6 = vmul.f32 %v1296_v5, %v1271_v4 }
 0x9ea   : > { %v1298_v7 = vpack.c.bf16 %v1297_v6, %v1297_v6 }
 0x9ec   : > { %1674 = vmatmul.mubr.msk.bf16.vlgmr.msra.gmra.mrb[20].mxu1 %vm1338_vm9, %v1298_v7 }
 0xabf   : > { %v1376_v10 = vpop.f32.mrb[20].mxu1 }
 0xac0   : > { %v1377_v11 = vadd.f32 %v1550_v9, %v1376_v10  ;;  %v1675_v12 = vpop.f32.mrb[21].mxu1 }
 0xac1   : > { %v1379_v13 = vpop.f32.mrb[22].mxu1 }
 0xac2   : > { %v1382_v15 = vadd.f32 %v1377_v11, %v2421_v14  ;;  %v1676_v16 = vpop.f32.mrb[23].mxu1 }
 0xac4   : > { %1383 = vst.msk [vmem:[%s521_s26] sm:$0xff] %vm530_vm0, %v1382_v15 }
 0xac5   : > { %1971 = shalt.err (!%p1968_p1)
}
 0xac6   : > { %s1972_s24 = scalar_lea.hbm %s2462_s29, 128  ;;  %s1976_s28 = scalar_lea.hbm %s2556_s27, 256 }
 0xac7   : > { %p1973_p0 = scmp.ne.s32.totalorder %s2462_s29, %s1972_s24  ;;  %p1977_p9 = scmp.lt.u32.totalorder %s2462_s29, %s2556_s27 }
 0xac8   : > { %p1978_p12 = scmp.lt.u32.totalorder %s1976_s28, %s1972_s24  ;;  %p1980_p2 = scmp.lt.u32.totalorder %s1972_s24, %s2462_s29 }
 0xac9   : > { %p1974_p6 = pnand %p1973_p0, %p2557_p3 }
 0xaca   : > { %p1979_p10 = por %p1978_p12, %p1977_p9 }
 0xacb   : > { %p1975_p5 = pneg %p1974_p6 }
 0xacc   : > { %p1981_p4 = por %p1980_p2, %p1979_p10 }
 0xace   : > { %p1982_p7 = pnand %p1981_p4, %p1975_p5 }
 0xad0   : > { %1985 = shalt.err (!%p1982_p7)
}
 0xad1   : > { %1697 = dma.vmem_to_hbm [thread:$0]  (%p2557_p3), %s2464_s16, 128, %s2462_s29, %s1385_s17  }
 0xad2 PF: > { %s2558_s21 = sld [smem:[#allocation19_spill]]  ;;  %s2559_s15 = sld [smem:[#allocation17_spill]] }
 0xad3   : > { %s2560_s18 = sld [smem:[#allocation23_spill]] }
 0xad8   : > { %p1729_p8 = scmp.ge.s32.totalorder %s2558_s21, 2  ;;  %s1410_s14 = sand.u32 1, %s2559_s15  }
 0xad9   : > { %p2561_p11 = scmp.ne.s32.totalorder %s2560_s18, 0  ;;  %s1411_s22 = scalar_lea.sflag [#allocation5], %s1410_s14 }
 0xadb   : > { %p1716_p13 = pnand %p1729_p8, %p2561_p11 }
 0xadd   : > { %2015 = dma.done.wait (!%p1716_p13), %s1411_s22, 128  }
 0xade   : > { %2017 = vsyncadd (!%p1716_p13), %s1411_s22, 4294967168  ;;  %s2562_s16 = sld [smem:[#allocation20_spill]]  ;;  %s2563_s23 = sld [smem:[#allocation18_spill]] }
 0xadf   : > { %s2564_s15 = sld [smem:[#allocation21_spill]]  ;;  %s2565_s29 = smov %s2024_s30 }
 0xae4   : > { %p27_p1 = scmp.ge.s32.totalorder %s2562_s16, 4   ;;  %s2566_s30 = smov %s2563_s23 }
 0xae6   :  { %29 = sbr.rel (!%p27_p1) target bundleno = 9 (0x9), region = 132 }
 0xaed   :  { %1416 = vsyncpa [#allocation4], 1 }
 0xaee   :  { %1418 = vsyncpa [#allocation4 + $0x1], 1 }
 0xaef   :  { %1419 = vsyncpa [#allocation7], 1 }
 0xaf0   :  { %1420 = vsyncpa [#allocation10], 1 }
 0xaf1   :  { %1421 = vsyncpa [#allocation5], 1 }
 0xaf2   :  { %1423 = vsyncpa [#allocation5 + $0x1], 1 }

// kernel: tpu_custom_call.1
= control target key start
LH: loop header
LB: loop body
LE: loop exit
PB: predicated region body
PF: predicated region fallthrough
CT: control target
= control target key end

     0   :  { %s2490_s0 = inlined_call_operand.vmem [shape: f32[2,8,32], index: 0, kind: input, shape index: {}]   ;;  %s2491_s1 = inlined_call_operand.hbm [shape: bf16[1,8,8], index: 1, kind: input, shape index: {}]   ;;  %s2492_s2 = inlined_call_operand.vmem [shape: f32[1,32], index: 2, kind: input, shape index: {}]   ;;  %s2493_s3 = inlined_call_operand.vmem [shape: f32[1,32], index: 3, kind: input, shape index: {}]   ;;  %s2494_s4 = inlined_call_operand.vmem [shape: bf16[32,96], index: 4, kind: input, shape index: {}]   ;;  %s2495_s5 = inlined_call_operand.hbm [shape: f32[1,96], index: 5, kind: input, shape index: {}]   ;;  %s2496_s6 = inlined_call_operand.vmem [shape: bf16[32,32], index: 6, kind: input, shape index: {}]   ;;  %s2497_s7 = inlined_call_operand.hbm [shape: f32[1,32], index: 7, kind: input, shape index: {}]   ;;  %s2498_s8 = inlined_call_operand.hbm [shape: f32[1,32], index: 8, kind: input, shape index: {}]   ;;  %s2499_s9 = inlined_call_operand.hbm [shape: f32[1,32], index: 9, kind: input, shape index: {}]   ;;  %s2500_s10 = inlined_call_operand.vmem [shape: bf16[32,64], index: 10, kind: input, shape index: {}]   ;;  %s2501_s11 = inlined_call_operand.vmem [shape: f32[1,64], index: 11, kind: input, shape index: {}]   ;;  %s2502_s12 = inlined_call_operand.vmem [shape: bf16[64,32], index: 12, kind: input, shape index: {}]   ;;  %s2503_s13 = inlined_call_operand.vmem [shape: f32[1,32], index: 13, kind: input, shape index: {}]   ;;  %s2504_s14 = inlined_call_operand.hbm [shape: f32[2,8,32], index: 14, kind: output, shape index: {}]  }
   0x1   :  { %2517 = sst [smem:[#allocation24_spill]] %s2495_s5 }
   0x2   :  { %2518 = sst [smem:[#allocation25_spill]] %s2504_s14 }
   0x3   :  { %19 = vsyncpa [#allocation4], 0 }
   0x4   :  { %20 = vsyncpa [#allocation7], 0 }
   0x5   :  { %21 = vsyncpa [#allocation10], 0 }
   0x6   :  { %22 = vsyncpa [#allocation5], 0 }
   0x7   :  { %24 = vsyncpa [#allocation5 + $0x1], 0  ;;  %s2116_s29 = smov 0   ;;  %s2118_s30 = smov 0  }
   0x8   :  { %s2120_s15 = smov 0   ;;  %s2122_s16 = smov 0  }
   0x9 LB: > { %2519 = sst [smem:[#allocation17_spill]] %s2004_s29  ;;  %s2137_s17 = sadd.s32 4294967295, %s2016_s16   ;;  %s2016_s16 = sphi %s2122_s16, %s2547_s16   ;;  %s2012_s15 = sphi %s2120_s15, %s2549_s15   ;;  %s2008_s30 = sphi %s2118_s30, %s2551_s30   ;;  %s2004_s29 = sphi %s2116_s29, %s2550_s29  }
   0xa   : > { %2520 = sst [smem:[#allocation18_spill]] %s2012_s15  ;;  %s1497_s18 = sadd.s32 4294967294, %s2016_s16  }
   0xb   : > { %2521 = sst [smem:[#allocation19_spill]] %s2016_s16  ;;  %s2141_s19 = sadd.s32 1, %s2016_s16  }
   0xc   : > { %2522 = sst [smem:[#allocation20_spill]] %s2141_s19  ;;  %s336_s20 = sadd.s32 1, %s2012_s15 }
   0xd   : > { %s333_s21 = ssub.s32 %s2016_s16, %s2141_s19  ;;  %p346_p0 = scmp.ne.s32.totalorder %s2012_s15, %s2008_s30 }
   0xe   : > { %p334_p1 = scmp.eq.s32.totalorder %s333_s21, 0  ;;  %p347_p2 = scmp.eq.s32.totalorder %s2137_s17, 1 }
   0xf   : > { %p352_p3 = scmp.ne.s32.totalorder %s2008_s30, %s2004_s29  ;;  %p353_p4 = scmp.eq.s32.totalorder %s1497_s18, 1 }
  0x10   : > { %s2152_s22 = scalar_select %p334_p1, %s2012_s15, %s336_s20  }
  0x11   : > { %p2154_p5 = por %p347_p2, %p346_p0  ;;  %p2158_p6 = por %p353_p4, %p352_p3 }
  0x12   : > { %2523 = sst [smem:[#allocation21_spill]] %s2152_s22  ;;  %p1498_p7 = scmp.ge.s32.totalorder %s2016_s16, 1 }
  0x13   : > { %s2524_s23 = scalar_select %p2154_p5, 1, 0 }
  0x14   : > { %s2526_s24 = scalar_select %p2158_p6, 1, 0 }
  0x15   : > { %2525 = sst [smem:[#allocation22_spill]] %s2524_s23  ;;  %p360_p8 = scmp.lt.s32.totalorder %s2016_s16, 3 }
  0x16   : > { %2527 = sst [smem:[#allocation23_spill]] %s2526_s24  ;;  %p2511_p9 = scmp.eq.s32.totalorder %s2137_s17, 0 }
  0x17   : > { %p2165_p10 = pnand %p1498_p7, %p360_p8  ;;  %s2018_s26 = smov [#allocation6]  }
  0x18   : > { %s393_s27 = sshll.u32 %s2018_s26, 4  ;;  %s2019_s28 = smov [#allocation9]   ;;  %s394_s27 = int_to_ptr.vmem [resolvable:$true] %s393_s27 }
  0x19   : > { %s2528_s25 = scalar_select %p2165_p10, 1, 0 }
  0x1a   : > { %p1683_p11 = pneg %p2165_p10  ;;  %s418_s18 = sshll.u32 %s2019_s28, 4  ;;  %s2177_s18 = int_to_ptr.vmem [resolvable:$true] %s418_s18 }
  0x1b   : > { %s2020_s21 = smov [#allocation3]   ;;  %s2530_s5 = sld [smem:[#allocation24_spill]] }
  0x1c   : > { %p2173_p12 = pnand %p2511_p9, %p1683_p11  ;;  %s373_s22 = sshll.u32 %s2020_s21, 4  ;;  %s2179_s22 = int_to_ptr.vmem [resolvable:$true] %s373_s22 }
  0x1e   : > { %p2189_p0 = pneg %p2173_p12 }
  0x21   : > { %s1802_s26 = scalar_lea.hbm %s2530_s5, 16 }
  0x22   : > { %p1803_p13 = scmp.ne.s32.totalorder %s2530_s5, %s1802_s26  ;;  %p1809_p3 = scmp.lt.u32.totalorder %s1802_s26, %s2530_s5 }
  0x24   : > { %p1805_p1 = pnand %p2189_p0, %p1803_p13 }
  0x26   : > { %p1806_p2 = pneg %p1805_p1 }
  0x28   : > { %p1811_p4 = pnand %p1809_p3, %p1806_p2 }
  0x2a   : > { %1814 = shalt.err (!%p1811_p4)
}
  0x2b   : > { %s1815_s15 = scalar_lea.vmem %s394_s27, 16  ;;  %s1822_s29 = scalar_lea.vmem %s394_s27, 32 }
  0x2c   : > { %p1816_p7 = scmp.ne.s32.totalorder %s394_s27, %s1815_s15  ;;  %p1823_p9 = scmp.lt.s32.totalorder %s394_s27, %s394_s27 }
  0x2d   : > { %p1824_p6 = scmp.lt.s32.totalorder %s1822_s29, %s1815_s15 }
  0x2e   : > { %p1818_p8 = pnand %p1816_p7, %p2189_p0 }
  0x2f   : > { %p1825_p5 = por %p1824_p6, %p1823_p9 }
  0x30   : > { %p1819_p11 = pneg %p1818_p8 }
  0x32   : > { %p1826_p10 = pnand %p1825_p5, %p1819_p11 }
  0x34   : > { %1829 = shalt.err (!%p1826_p10)
}
  0x35   : > { %1689 = dma.hbm_to_vmem [thread:$0]  (!%p2173_p12), %s2530_s5, 16, %s394_s27, [#allocation7]  }
  0x36   : > { %s1830_s21 = scalar_lea.hbm %s2498_s8, 16 }
  0x37   : > { %p1831_p13 = scmp.ne.s32.totalorder %s2498_s8, %s1830_s21  ;;  %p1837_p5 = scmp.lt.u32.totalorder %s1830_s21, %s2498_s8 }
  0x39   : > { %p1833_p1 = pnand %p1831_p13, %p2189_p0 }
  0x3b   : > { %p1834_p6 = pneg %p1833_p1 }
  0x3d   : > { %p1839_p9 = pnand %p1837_p5, %p1834_p6 }
  0x3f   : > { %1842 = shalt.err (!%p1839_p9)
}
  0x40   : > { %s1843_s27 = scalar_lea.vmem %s2177_s18, 16  ;;  %s1850_s14 = scalar_lea.vmem %s2177_s18, 32 }
  0x41   : > { %p1844_p10 = scmp.ne.s32.totalorder %s2177_s18, %s1843_s27  ;;  %p1851_p4 = scmp.lt.s32.totalorder %s2177_s18, %s2177_s18 }
  0x42   : > { %p1852_p7 = scmp.lt.s32.totalorder %s1850_s14, %s1843_s27 }
  0x43   : > { %p1846_p2 = pnand %p1844_p10, %p2189_p0 }
  0x44   : > { %p1853_p8 = por %p1852_p7, %p1851_p4 }
  0x45   : > { %p1847_p3 = pneg %p1846_p2 }
  0x47   : > { %p1854_p11 = pnand %p1853_p8, %p1847_p3 }
  0x49   : > { %1857 = shalt.err (!%p1854_p11)
}
  0x4a   : > { %1695 = dma.hbm_to_vmem [thread:$0]  (!%p2173_p12), %s2498_s8, 16, %s2177_s18, [#allocation10]  }
  0x4b   : > { %s1858_s26 = scalar_lea.hbm %s2491_s1, 64 }
  0x4c   : > { %p1859_p13 = scmp.ne.s32.totalorder %s2491_s1, %s1858_s26  ;;  %p1865_p5 = scmp.lt.u32.totalorder %s1858_s26, %s2491_s1 }
  0x4e   : > { %p1861_p1 = pnand %p1859_p13, %p2189_p0 }
  0x50   : > { %p1862_p6 = pneg %p1861_p1 }
  0x52   : > { %p1867_p9 = pnand %p1865_p5, %p1862_p6 }
  0x54   : > { %1870 = shalt.err (!%p1867_p9)
}
  0x55   : > { %s1871_s18 = scalar_lea.vmem %s2179_s22, 64  ;;  %p1879_p4 = scmp.lt.s32.totalorder %s2179_s22, %s2179_s22 }
  0x56   : > { %p1872_p10 = scmp.ne.s32.totalorder %s2179_s22, %s1871_s18  ;;  %p1880_p7 = scmp.lt.s32.totalorder %s1871_s18, %s1871_s18 }
  0x58   : > { %p1874_p2 = pnand %p1872_p10, %p2189_p0  ;;  %p1881_p8 = por %p1880_p7, %p1879_p4 }
  0x5a   : > { %p1875_p3 = pneg %p1874_p2 }
  0x5c   : > { %p1882_p11 = pnand %p1881_p8, %p1875_p3 }
  0x5e   : > { %1885 = shalt.err (!%p1882_p11)
}
  0x5f   : > { %1686 = dma.hbm_to_vmem [thread:$0]  (!%p2173_p12), %s2491_s1, 64, %s2179_s22, [#allocation4]  }
  0x60   : > { %s2021_s19 = smov [#allocation8]   ;;  %s2022_s16 = smov [#allocation11]  }
  0x61   : > { %s407_s24 = sshll.u32 %s2021_s19, 4  ;;  %s429_s26 = sshll.u32 %s2022_s16, 4  ;;  %s408_s24 = int_to_ptr.vmem [resolvable:$true] %s407_s24  ;;  %s430_s26 = int_to_ptr.vmem [resolvable:$true] %s429_s26 }
  0x62   : > { %s1886_s29 = scalar_lea.hbm %s2497_s7, 16 }
  0x63   : > { %p1887_p13 = scmp.ne.s32.totalorder %s2497_s7, %s1886_s29  ;;  %p1893_p5 = scmp.lt.u32.totalorder %s1886_s29, %s2497_s7 }
  0x65   : > { %p1889_p1 = pnand %p1887_p13, %p2189_p0 }
  0x67   : > { %p1890_p6 = pneg %p1889_p1 }
  0x69   : > { %p1895_p9 = pnand %p1893_p5, %p1890_p6 }
  0x6b   : > { %1898 = shalt.err (!%p1895_p9)
}
  0x6c   : > { %s1899_s22 = scalar_lea.vmem %s408_s24, 16  ;;  %s1906_s23 = scalar_lea.vmem %s408_s24, 32 }
  0x6d   : > { %p1900_p10 = scmp.ne.s32.totalorder %s408_s24, %s1899_s22  ;;  %p1907_p4 = scmp.lt.s32.totalorder %s408_s24, %s408_s24 }
  0x6e   : > { %p1908_p7 = scmp.lt.s32.totalorder %s1906_s23, %s1899_s22 }
  0x6f   : > { %p1902_p2 = pnand %p1900_p10, %p2189_p0 }
  0x70   : > { %p1909_p8 = por %p1908_p7, %p1907_p4 }
  0x71   : > { %p1903_p3 = pneg %p1902_p2 }
  0x73   : > { %p1910_p11 = pnand %p1909_p8, %p1903_p3 }
  0x75   : > { %1913 = shalt.err (!%p1910_p11)
}
  0x76   : > { %1692 = dma.hbm_to_vmem [thread:$0]  (!%p2173_p12), %s2497_s7, 16, %s408_s24, [#allocation7]  }
  0x77   : > { %s1914_s15 = scalar_lea.hbm %s2499_s9, 16 }
  0x78   : > { %p1915_p13 = scmp.ne.s32.totalorder %s2499_s9, %s1914_s15  ;;  %p1921_p5 = scmp.lt.u32.totalorder %s1914_s15, %s2499_s9 }
  0x7a   : > { %p1917_p1 = pnand %p1915_p13, %p2189_p0 }
  0x7c   : > { %p1918_p6 = pneg %p1917_p1 }
  0x7e   : > { %p1923_p9 = pnand %p1921_p5, %p1918_p6 }
  0x80   : > { %1926 = shalt.err (!%p1923_p9)
}
  0x81   : > { %s1927_s22 = scalar_lea.vmem %s430_s26, 16  ;;  %s1934_s24 = scalar_lea.vmem %s430_s26, 32 }
  0x82   : > { %p1928_p10 = scmp.ne.s32.totalorder %s430_s26, %s1927_s22  ;;  %p1935_p4 = scmp.lt.s32.totalorder %s430_s26, %s430_s26 }
  0x83   : > { %p1936_p7 = scmp.lt.s32.totalorder %s1934_s24, %s1927_s22 }
  0x84   : > { %p1930_p2 = pnand %p1928_p10, %p2189_p0 }
  0x85   : > { %p1937_p8 = por %p1936_p7, %p1935_p4 }
  0x86   : > { %p1931_p3 = pneg %p1930_p2 }
  0x88   : > { %p1938_p11 = pnand %p1937_p8, %p1931_p3 }
  0x8a   : > { %1941 = shalt.err (!%p1938_p11)
}
  0x8b   : > { %1698 = dma.hbm_to_vmem [thread:$0]  (!%p2173_p12), %s2499_s9, 16, %s430_s26, [#allocation10]  }
  0x8c   : > { %p2532_p13 = scmp.ne.s32.totalorder %s2528_s25, 0 }
  0x8d   : > { %p2533_p1 = scmp.eq.s32.totalorder (!%p2532_p13), %s2137_s17, 0 }
  0x8e   : > { %461 = sbr.rel (%p2532_p13) target bundleno = 2770 (0xad2), region = 76 }
  0x95   : > { %1987 = dma.done.wait (%p2533_p1), [#allocation4], 64   ;;  %p2534_p0 = pmov %p2533_p1 }
  0x97   : > { %1989 = vsyncadd (%p2534_p0), [#allocation4], 4294967232  ;;  %p2535_p6 = pmov %p2534_p0 }
  0x98   : > { %p2536_p5 = pmov %p2534_p0 }
  0x99   : > { %1991 = dma.done.wait (%p2535_p6), [#allocation7], 32  }
  0x9a   : > { %1993 = vsyncadd (%p2536_p5), [#allocation7], 4294967264  ;;  %p2537_p9 = pmov %p2534_p0 }
  0x9b   : > { %p2538_p12 = pmov %p2534_p0 }
  0x9c   : > { %1995 = dma.done.wait (%p2537_p9), [#allocation10], 32  }
  0x9d   : > { %1997 = vsyncadd (%p2538_p12), [#allocation10], 4294967264  ;;  %p522_p10 = scmp.lt.s32.totalorder %s2137_s17, 1  ;;  %vm530_vm0 = vcmask 261120   ;;  %v1768_v7 = vld [vmem:[%s2494_s4] sm:$0xff]   ;;  %v2023_v8 = vmov 0.0  }
  0x9e   : > { %1577 = vmatprep.subr.bf16.mxu0 %v2023_v8  ;;  %vm2024_vm1 = vmmov 0   ;;  %v1769_v9 = vld [vmem:[%s2494_s4 + $0x8] sm:$0xff]   ;;  %1585 = vmatprep.subr.bf16.mxu1 %v2023_v8  ;;  %v1513_v14 = vld [vmem:[%s2492_s2] ss:$0 sm:$0xff]  ;;  %s2025_s24 = smov 120   ;;  %s2026_s23 = smov 96  }
  0x9f   : > { %s523_s25 = scalar_select %p522_p10, %s2137_s17, 1  ;;  %1581 = vmatprep.mubr.msk.bf16.mxu0 %vm2024_vm1, %v2023_v8  ;;  %1578 = vmatpush3.bf16.msra.mxu0 %v1768_v7  ;;  %v1514_v16 = vld [vmem:[%s2493_s3] ss:$0 sm:$0xff]  ;;  %v1515_v20 = vld [vmem:[#allocation6] ss:$0 sm:$0xff]  ;;  %vm632_vm2 = vcmask 64512  }
  0xa0   : > { %1579 = vmatprep.subr.bf16.mxu0 %v2023_v8  ;;  %1587 = vmatprep.mubr.msk.bf16.mxu1 %vm2024_vm1, %v2023_v8  ;;  %s2027_s19 = smov 88   ;;  %s2030_s28 = smov 72   ;;  %v626_v38 = vld [vmem:[#allocation3] sm:$0xf]  ;;  %vm698_vm3 = vcmask 1043456   ;;  %vm859_vm4 = vcmask 130112  }
  0xa1   : > { %s1512_s20 = sshll.u32 %s523_s25, 3  ;;  %s2028_s25 = smov 80   ;;  %v627_v39 = vunpack.c.l.bf16 %v626_v38  ;;  %vm977_vm5 = vcmask 195712   ;;  %vm1095_vm6 = vcmask 261312   ;;  %vm1328_vm8 = vcmask 523264  }
  0xa2   : > { %s525_s16 = scalar_lea.vmem %s2490_s0, %s1512_s20  ;;  %s2029_s20 = smov 112  }
  0xa3   : > { %v527_v0 = vld [vmem:[%s525_s16] sm:$0xff]  ;;  %1580 = vmatpush3.bf16.msra.mxu0 %v1769_v9  ;;  %s2031_s26 = smov 104   ;;  %s2032_s16 = smov 64  }
  0xa4   : > { %v531_v1 = vsel %vm530_vm0, %v527_v0, 0.0  ;;  %1591 = vmatprep.subr.bf16.mxu0 %v2023_v8  ;;  %s2033_s5 = smov 56   ;;  %s2034_s21 = smov 48  }
  0xa5   : > { %532 = vadd.xlane.f32.xlu0 %v531_v1  ;;  %s2035_s15 = smov 40   ;;  %s2036_s29 = smov 8  }
  0xa6   : > { %s2040_s14 = smov [#allocation12]  }
  0xa7   : > { %s1946_s22 = sshll.u32 %s2040_s14, 4  ;;  %s1947_s22 = int_to_ptr.vmem [resolvable:$false] %s1946_s22 }
 0x132   : > { %v533_v2 = vpop.xlane.xlu0 %532 }
 0x133   : > { %v535_v3 = vmul.f32 0.03125, %v533_v2 }
 0x135   : > { %v536_v4 = vsub.f32 %v527_v0, %v535_v3 }
 0x137   : > { %v537_v5 = vmul.f32 %v536_v4, %v536_v4 }
 0x139   : > { %v538_v6 = vsel %vm530_vm0, %v537_v5, 0.0 }
 0x13a   : > { %539 = vadd.xlane.f32.xlu0 %v538_v6 }
 0x1c7   : > { %v540_v10 = vpop.xlane.xlu0 %539 }
 0x1c8   : > { %v541_v11 = vmul.f32 0.03125, %v540_v10 }
 0x1ca   : > { %v542_v12 = vadd.f32 1e-05, %v541_v11 }
 0x1cc   : > { %1778 = vrsqrt.f32 %v542_v12 }
 0x1d6   : > { %v1779_v13 = vpop.eup %1778 }
 0x1d7   : > { %v544_v15 = vmul.f32 %v1779_v13, %v536_v4 }
 0x1d9   : > { %v551_v17 = vmul.f32 %v1513_v14, %v544_v15 }
 0x1db   : > { %v558_v18 = vadd.f32 %v1514_v16, %v551_v17 }
 0x1dd   : > { %v559_v19 = vpack.c.bf16 %v558_v18, %v558_v18 }
 0x1df   : > { %1582 = vmatmul.mubr.msk.bf16.vlgmr.msra.gmra.mrb[0].mxu0 %vm530_vm0, %v559_v19 }
 0x1e0   : > { %1593 = vmatprep.mubr.msk.bf16.mxu0 %vm2024_vm1, %v2023_v8 }
 0x2b2   : > { %v620_v21 = vpop.f32.mrb[0].mxu0 }
 0x2b3   : > { %v621_v22 = vadd.f32 %v1515_v20, %v620_v21  ;;  %v1583_v23 = vpop.f32.mrb[1].mxu0 }
 0x2b4   : > { %v623_v24 = vpop.f32.mrb[2].mxu0 }
 0x2b5   : > { %v2332_v25 = vpack.c.bf16 %v621_v22, %v621_v22  ;;  %v1584_v26 = vpop.f32.mrb[3].mxu0 }
 0x2b7   : > { %743 = vrot.lane.b32.xlu0 %v2332_v25, %s2025_s24  ;;  %630 = vrot.lane.b32.xlu1 %v2332_v25, %s2026_s23  ;;  %s2037_s24 = smov 16   ;;  %s2038_s23 = smov 24  }
 0x2bb   : > { %745 = vrot.lane.b32.xlu1 %v2332_v25, %s2027_s19 }
 0x2bf   : > { %863 = vrot.lane.b32.xlu1 %v2332_v25, %s2028_s25 }
 0x2c3   : > { %861 = vrot.lane.b32.xlu1 %v2332_v25, %s2029_s20  ;;  %s2539_s20 = sld [smem:[#allocation22_spill]] }
 0x2c7   : > { %981 = vrot.lane.b32.xlu1 %v2332_v25, %s2030_s28  ;;  %s1544_s28 = sshll.u32 %s2137_s17, 7 }
 0x2c9   : > { %p2542_p3 = scmp.ne.s32.totalorder %s2539_s20, 0 }
 0x2cb   : > { %979 = vrot.lane.b32.xlu1 %v2332_v25, %s2031_s26 }
 0x329   : > { %v631_v27 = vpop.permute.xlu1 %630  ;;  %v744_v32 = vpop.permute.xlu0 %743 }
 0x32a   : > { %v637_v28 = vsel %vm632_vm2, %v631_v27, 0 }
 0x32b   : > { %1586 = vmatpush3.bf16.xpose.msra.mxu1 %v637_v28 }
 0x32c   : > { %1597 = vmatprep.subr.bf16.mxu1 %v2023_v8 }
 0x32d   : > { %v746_v29 = vpop.permute.xlu1 %745 }
 0x32e   : > { %v751_v30 = vsel %vm632_vm2, %v746_v29, 0 }
 0x331   : > { %v864_v31 = vpop.permute.xlu1 %863 }
 0x332   : > { %1588 = vmatmul.mubr.msk.bf16.vlgmr.msra.gmra.mrb[0].mxu1 %vm632_vm2, %v2332_v25  ;;  %v869_v34 = vsel %vm632_vm2, %v864_v31, 0 }
 0x333   : > { %1598 = vmatpush3.bf16.xpose.msra.mxu1 %v751_v30  ;;  %1599 = vmatprep.mubr.msk.bf16.mxu1 %vm2024_vm1, %v2023_v8 }
 0x334   : > { %1609 = vmatprep.subr.bf16.mxu1 %v2023_v8 }
 0x335   : > { %v862_v33 = vpop.permute.xlu1 %861 }
 0x339   : > { %v982_v35 = vpop.permute.xlu1 %981 }
 0x33a   : > { %1600 = vmatmul.mubr.msk.bf16.vlgmr.msra.gmra.mrb[4].mxu1 %vm632_vm2, %v744_v32  ;;  %v987_v36 = vsel %vm632_vm2, %v982_v35, 0 }
 0x33b   : > { %1610 = vmatpush3.bf16.xpose.msra.mxu1 %v869_v34  ;;  %1611 = vmatprep.mubr.msk.bf16.mxu1 %vm2024_vm1, %v2023_v8 }
 0x33c   : > { %1621 = vmatprep.subr.bf16.mxu1 %v2023_v8 }
 0x33d   : > { %v980_v37 = vpop.permute.xlu1 %979 }
 0x342   : > { %1612 = vmatmul.mubr.msk.bf16.vlgmr.msra.gmra.mrb[8].mxu1 %vm632_vm2, %v862_v33 }
 0x343   : > { %1622 = vmatpush3.bf16.xpose.msra.mxu1 %v987_v36  ;;  %1623 = vmatprep.mubr.msk.bf16.mxu1 %vm2024_vm1, %v2023_v8 }
 0x344   : > { %1633 = vmatprep.subr.bf16.mxu1 %v2023_v8 }
 0x34a   : > { %1624 = vmatmul.mubr.msk.bf16.vlgmr.msra.gmra.mrb[12].mxu1 %vm632_vm2, %v980_v37 }
 0x34b   : > { %1637 = vmatprep.mubr.msk.bf16.mxu1 %vm2024_vm1, %v2023_v8 }
 0x405   : > { %v673_v40 = vpop.f32.mrb[0].mxu1 }
 0x406   : > { %v679_v41 = vmul.f32 0.35355338, %v673_v40  ;;  %v1589_v42 = vpop.f32.mrb[1].mxu1 }
 0x407   : > { %v676_v43 = vpop.f32.mrb[2].mxu1 }
 0x408   : > { %v1590_v44 = vpop.f32.mrb[3].mxu1  ;;  %v680_v45 = vadd.f32 %v679_v41, %v627_v39 }
 0x40a   : > { %v681_v46 = vsel %vm632_vm2, %v680_v45, -inf }
 0x40b   : > { %682 = vmax.xlane.f32.xlu1 %v681_v46 }
 0x40d   : > { %v787_v47 = vpop.f32.mrb[4].mxu1 }
 0x40e   : > { %v793_v48 = vmul.f32 0.35355338, %v787_v47  ;;  %v1601_v49 = vpop.f32.mrb[5].mxu1 }
 0x40f   : > { %v790_v50 = vpop.f32.mrb[6].mxu1 }
 0x410   : > { %v1602_v51 = vpop.f32.mrb[7].mxu1  ;;  %v794_v52 = vadd.f32 %v793_v48, %v627_v39 }
 0x412   : > { %v795_v53 = vsel %vm632_vm2, %v794_v52, -inf }
 0x413   : > { %796 = vmax.xlane.f32.xlu0 %v795_v53 }
 0x415   : > { %v905_v54 = vpop.f32.mrb[8].mxu1 }
 0x416   : > { %v911_v55 = vmul.f32 0.35355338, %v905_v54  ;;  %v1613_v56 = vpop.f32.mrb[9].mxu1 }
 0x417   : > { %v908_v57 = vpop.f32.mrb[10].mxu1 }
 0x418   : > { %v1614_v58 = vpop.f32.mrb[11].mxu1  ;;  %v912_v59 = vadd.f32 %v911_v55, %v627_v39  ;;  %v1770_v57 = vld [vmem:[%s2496_s6] sm:$0xff]  }
 0x419   : > { %1634 = vmatpush3.bf16.msra.mxu1 %v1770_v57  ;;  %v1771_v58 = vld [vmem:[%s2496_s6 + $0x8] sm:$0xff]  }
 0x41a   : > { %v913_v60 = vsel %vm632_vm2, %v912_v59, -inf  ;;  %1635 = vmatprep.subr.bf16.mxu1 %v2023_v8 }
 0x41b   : > { %914 = vmax.xlane.f32.xlu1 %v913_v60 }
 0x41d   : > { %v1023_v61 = vpop.f32.mrb[12].mxu1  ;;  %1636 = vmatpush3.bf16.msra.mxu1 %v1771_v58 }
 0x41e   : > { %v1029_v62 = vmul.f32 0.35355338, %v1023_v61  ;;  %v1625_v63 = vpop.f32.mrb[13].mxu1  ;;  %1649 = vmatprep.subr.bf16.mxu1 %v2023_v8 }
 0x41f   : > { %v1026_v0 = vpop.f32.mrb[14].mxu1 }
 0x420   : > { %v1626_v1 = vpop.f32.mrb[15].mxu1  ;;  %v1030_v2 = vadd.f32 %v1029_v62, %v627_v39 }
 0x422   : > { %v1031_v3 = vsel %vm632_vm2, %v1030_v2, -inf }
 0x423   : > { %1032 = vmax.xlane.f32.xlu0 %v1031_v3 }
 0x498   : > { %v683_v4 = vpop.xlane.xlu1 %682 }
 0x499   : > { %v684_v5 = vsub.f32 %v680_v45, %v683_v4 }
 0x49b   : > { %v685_v6 = vmul.f32 1.442695, %v684_v5 }
 0x49d   : > { %1780 = vpow2.f32 %v685_v6 }
 0x4a0   : > { %v797_v7 = vpop.xlane.xlu0 %796 }
 0x4a1   : > { %v798_v9 = vsub.f32 %v794_v52, %v797_v7 }
 0x4a3   : > { %v799_v10 = vmul.f32 1.442695, %v798_v9  ;;  %v1527_v9 = vld [vmem:[#allocation8] ss:$0 sm:$0xff] }
 0x4a5   : > { %1782 = vpow2.f32 %v799_v10 }
 0x4a7   : > { %v1781_v11 = vpop.eup %1780 }
 0x4a8   : > { %v687_v12 = vsel %vm632_vm2, %v1781_v11, 0.0  ;;  %v915_v20 = vpop.xlane.xlu1 %914 }
 0x4a9   : > { %688 = vadd.xlane.f32.xlu1 %v687_v12  ;;  %v916_v21 = vsub.f32 %v912_v59, %v915_v20 }
 0x4ab   : > { %v917_v22 = vmul.f32 1.442695, %v916_v21  ;;  %v1772_v21 = vld [vmem:[%s2500_s10] sm:$0xff]  }
 0x4af   : > { %v1783_v13 = vpop.eup %1782 }
 0x4b0   : > { %v1033_v14 = vpop.xlane.xlu0 %1032  ;;  %v801_v15 = vsel %vm632_vm2, %v1783_v13, 0.0 }
 0x4b1   : > { %v1034_v16 = vsub.f32 %v1030_v2, %v1033_v14  ;;  %802 = vadd.xlane.f32.xlu0 %v801_v15 }
 0x4b3   : > { %v1035_v17 = vmul.f32 1.442695, %v1034_v16 }
 0x4b5   : > { %1784 = vpow2.f32 %v1035_v17 }
 0x4b6   : > { %1786 = vpow2.f32 %v917_v22  ;;  %v1773_v22 = vld [vmem:[%s2500_s10 + $0x8] sm:$0xff]  }
 0x4ba   : > { %693 = vrot.lane.b32.xlu1 %v2332_v25, %s2032_s16 }
 0x4bf   : > { %v1785_v18 = vpop.eup %1784 }
 0x4c0   : > { %v1037_v19 = vsel %vm632_vm2, %v1785_v18, 0.0  ;;  %v1787_v23 = vpop.eup %1786 }
 0x4c1   : > { %1038 = vadd.xlane.f32.xlu0 %v1037_v19  ;;  %v919_v24 = vsel %vm632_vm2, %v1787_v23, 0.0 }
 0x4d7   : > { %807 = vrot.lane.b32.xlu0 %v2332_v25, %s2033_s5 }
 0x4de   : > { %920 = vadd.xlane.f32.xlu1 %v919_v24 }
 0x4ef   : > { %925 = vrot.lane.b32.xlu1 %v2332_v25, %s2034_s21 }
 0x4f3   : > { %1043 = vrot.lane.b32.xlu1 %v2332_v25, %s2035_s15  ;;  %s2540_s15 = sld [smem:[#allocation25_spill]] }
 0x4f9   : > { %s2541_s27 = smov %s2540_s15 }
 0x536   : > { %v689_v26 = vpop.xlane.xlu1 %688 }
 0x537   : > { %1788 = vrcp.f32 %v689_v26 }
 0x53a   : > { %v694_v27 = vpop.permute.xlu1 %693 }
 0x53b   : > { %v700_v28 = vsel %vm698_vm3, %v694_v27, 0 }
 0x53c   : > { %1592 = vmatpush3.bf16.msra.mxu0 %v700_v28  ;;  %v1531_v28 = vld [vmem:[#allocation9] ss:$0 sm:$0xff] }
 0x53d   : > { %1603 = vmatprep.subr.bf16.mxu0 %v2023_v8 }
 0x53e   : > { %v803_v30 = vpop.xlane.xlu0 %802 }
 0x53f   : > { %1790 = vrcp.f32 %v803_v30  ;;  %v1532_v30 = vld [vmem:[#allocation11] ss:$0 sm:$0xff] }
 0x541   : > { %v1789_v29 = vpop.eup %1788 }
 0x542   : > { %v691_v31 = vmul.f32 %v1789_v29, %v1781_v11 }
 0x544   : > { %v692_v32 = vpack.c.bf16 %v691_v31, %v691_v31 }
 0x546   : > { %1594 = vmatmul.mubr.msk.bf16.vlgmr.msra.gmra.mrb[4].mxu0 %vm632_vm2, %v692_v32 }
 0x547   : > { %1605 = vmatprep.mubr.msk.bf16.mxu0 %vm2024_vm1, %v2023_v8 }
 0x549   : > { %v1791_v25 = vpop.eup %1790 }
 0x54a   : > { %v805_v34 = vmul.f32 %v1791_v25, %v1783_v13 }
 0x54c   : > { %v806_v37 = vpack.c.bf16 %v805_v34, %v805_v34  ;;  %v1775_v34 = vld [vmem:[%s2502_s12 + $0x8] sm:$0xff]  }
 0x54e   : > { %v1039_v33 = vpop.xlane.xlu0 %1038 }
 0x552   : > { %v808_v35 = vpop.permute.xlu0 %807 }
 0x553   : > { %v813_v36 = vsel %vm698_vm3, %v808_v35, 0  ;;  %v1776_v35 = vld [vmem:[%s2502_s12 + $0x10] sm:$0xff]  }
 0x554   : > { %1604 = vmatpush3.bf16.msra.mxu0 %v813_v36  ;;  %v1777_v36 = vld [vmem:[%s2502_s12 + $0x18] sm:$0xff]  }
 0x555   : > { %1615 = vmatprep.subr.bf16.mxu0 %v2023_v8 }
 0x557   : > { %1606 = vmatmul.mubr.msk.bf16.vlgmr.msra.gmra.mrb[8].mxu0 %vm632_vm2, %v806_v37  ;;  %v1533_v37 = vld [vmem:[%s2501_s11] ss:$0 sm:$0xff] }
 0x558   : > { %1617 = vmatprep.mubr.msk.bf16.mxu0 %vm2024_vm1, %v2023_v8 }
 0x56b   : > { %v921_v38 = vpop.xlane.xlu1 %920 }
 0x56c   : > { %1792 = vrcp.f32 %v921_v38 }
 0x56d   : > { %1794 = vrcp.f32 %v1039_v33  ;;  %v1774_v33 = vld [vmem:[%s2502_s12] sm:$0xff]  }
 0x56f   : > { %v926_v39 = vpop.permute.xlu1 %925 }
 0x570   : > { %v931_v40 = vsel %vm698_vm3, %v926_v39, 0 }
 0x571   : > { %1616 = vmatpush3.bf16.msra.mxu0 %v931_v40 }
 0x572   : > { %1627 = vmatprep.subr.bf16.mxu0 %v2023_v8 }
 0x573   : > { %v1044_v43 = vpop.permute.xlu1 %1043 }
 0x574   : > { %v1049_v46 = vsel %vm698_vm3, %v1044_v43, 0 }
 0x576   : > { %v1793_v41 = vpop.eup %1792 }
 0x577   : > { %v923_v42 = vmul.f32 %v1793_v41, %v1787_v23  ;;  %v1795_v45 = vpop.eup %1794 }
 0x578   : > { %v1041_v47 = vmul.f32 %v1795_v45, %v1785_v18 }
 0x579   : > { %v924_v44 = vpack.c.bf16 %v923_v42, %v923_v42 }
 0x57a   : > { %v1042_v48 = vpack.c.bf16 %v1041_v47, %v1041_v47 }
 0x57b   : > { %1618 = vmatmul.mubr.msk.bf16.vlgmr.msra.gmra.mrb[12].mxu0 %vm632_vm2, %v924_v44 }
 0x57c   : > { %1628 = vmatpush3.bf16.msra.mxu0 %v1049_v46  ;;  %1629 = vmatprep.mubr.msk.bf16.mxu0 %vm2024_vm1, %v2023_v8 }
 0x57d   : > { %1641 = vmatprep.subr.bf16.mxu0 %v2023_v8 }
 0x583   : > { %1630 = vmatmul.mubr.msk.bf16.vlgmr.msra.gmra.mrb[16].mxu0 %vm632_vm2, %v1042_v48 }
 0x584   : > { %1645 = vmatprep.mubr.msk.bf16.mxu0 %vm2024_vm1, %v2023_v8  ;;  %1642 = vmatpush3.bf16.msra.mxu0 %v1772_v21 }
 0x585   : > { %1643 = vmatprep.subr.bf16.mxu0 %v2023_v8 }
 0x588   : > { %1644 = vmatpush3.bf16.msra.mxu0 %v1773_v22 }
 0x619   : > { %v736_v49 = vpop.f32.mrb[4].mxu0 }
 0x61a   : > { %742 = vst.msk [vmem:[#allocation2] sm:$0xff] %vm632_vm2, %v736_v49  ;;  %v1595_v50 = vpop.f32.mrb[5].mxu0 }
 0x61b   : > { %v739_v51 = vpop.f32.mrb[6].mxu0 }
 0x61c   : > { %v1596_v52 = vpop.f32.mrb[7].mxu0 }
 0x62a   : > { %v849_v53 = vpop.f32.mrb[8].mxu0 }
 0x62b   : > { %856 = vrot.lane.b32.xlu0 %v849_v53, %s2036_s29  ;;  %v1607_v54 = vpop.f32.mrb[9].mxu0  ;;  %s2447_s29 = scalar_lea.hbm %s2540_s15, %s1544_s28 }
 0x62c   : > { %v852_v55 = vpop.f32.mrb[10].mxu0 }
 0x62d   : > { %v1608_v56 = vpop.f32.mrb[11].mxu0 }
 0x64e   : > { %v967_v59 = vpop.f32.mrb[12].mxu0 }
 0x64f   : > { %974 = vrot.lane.b32.xlu1 %v967_v59, %s2037_s24  ;;  %v1619_v60 = vpop.f32.mrb[13].mxu0  ;;  %s519_s24 = sand.u32 1, %s2008_s30  }
 0x650   : > { %v970_v61 = vpop.f32.mrb[14].mxu0  ;;  %s1375_s17 = scalar_lea.sflag [#allocation5], %s519_s24 }
 0x651   : > { %v1620_v62 = vpop.f32.mrb[15].mxu0 }
 0x652   : > { %v2039_v62 = vmov -1.0  }
 0x656   : > { %v1085_v63 = vpop.f32.mrb[16].mxu0 }
 0x657   : > { %1092 = vrot.lane.b32.xlu0 %v1085_v63, %s2038_s23  ;;  %v1631_v0 = vpop.f32.mrb[17].mxu0  ;;  %s1511_s23 = sshll.u32 %s519_s24, 3 }
 0x658   : > { %v1088_v1 = vpop.f32.mrb[18].mxu0  ;;  %s521_s26 = scalar_lea.vmem [#allocation12], %s1511_s23  ;;  %s1948_s23 = scalar_lea.vmem %s1947_s22, 256 }
 0x659   : > { %v1632_v2 = vpop.f32.mrb[19].mxu0  ;;  %s1388_s16 = sshll.u32 %s521_s26, 4  ;;  %s2449_s16 = int_to_ptr.vmem [resolvable:$true] %s1388_s16 }
 0x65a   : > { %s1942_s18 = scalar_lea.vmem %s2449_s16, 128  ;;  %p1949_p8 = scmp.lt.s32.totalorder %s2449_s16, %s1947_s22 }
 0x65b   : > { %p1943_p2 = scmp.ne.s32.totalorder %s2449_s16, %s1942_s18  ;;  %p1950_p11 = scmp.lt.s32.totalorder %s1948_s23, %s1942_s18 }
 0x65d   : > { %p1944_p4 = pnand %p1943_p2, %p2542_p3  ;;  %p1951_p13 = por %p1950_p11, %p1949_p8 }
 0x65f   : > { %p1945_p7 = pneg %p1944_p4 }
 0x661   : > { %p1952_p1 = pnand %p1951_p13, %p1945_p7 }
 0x69d   : > { %v857_v3 = vpop.permute.xlu0 %856 }
 0x69e   : > { %860 = vst.msk [vmem:[#allocation2] sm:$0xff] %vm859_vm4, %v857_v3 }
 0x6c1   : > { %v975_v4 = vpop.permute.xlu1 %974 }
 0x6c2   : > { %978 = vst.msk [vmem:[#allocation2] sm:$0xff] %vm977_vm5, %v975_v4 }
 0x6c9   : > { %v1093_v5 = vpop.permute.xlu0 %1092 }
 0x6ca   : > { %1096 = vst.msk [vmem:[#allocation2] sm:$0xff] %vm1095_vm6, %v1093_v5  ;;  %v1537_v5 = vld [vmem:[%s2503_s13] ss:$0 sm:$0xff] }
 0x6d1   : > { %v1097_v6 = vld [vmem:[#allocation2] sm:$0xff] }
 0x6d2   : > { %v1098_v7 = vpack.c.bf16 %v1097_v6, %v1097_v6 }
 0x6d4   : > { %1638 = vmatmul.mubr.msk.bf16.vlgmr.msra.gmra.mrb[16].mxu1 %vm530_vm0, %v1098_v7 }
 0x6d5   : > { %1657 = vmatprep.mubr.msk.bf16.mxu1 %vm2024_vm1, %v2023_v8  ;;  %1650 = vmatpush3.bf16.msra.mxu1 %v1774_v33 }
 0x6d6   : > { %1651 = vmatprep.subr.bf16.mxu1 %v2023_v8 }
 0x6d9   : > { %1652 = vmatpush3.bf16.msra.mxu1 %v1775_v34 }
 0x6da   : > { %1653 = vmatprep.subr.bf16.mxu1 %v2023_v8 }
 0x6dd   : > { %1654 = vmatpush3.bf16.msra.mxu1 %v1776_v35 }
 0x6de   : > { %1655 = vmatprep.subr.bf16.mxu1 %v2023_v8 }
 0x6e1   : > { %1656 = vmatpush3.bf16.msra.mxu1 %v1777_v36 }
 0x7a7   : > { %v1159_v10 = vpop.f32.mrb[16].mxu1 }
 0x7a8   : > { %v2406_v11 = vadd.f32 %v1527_v9, %v1159_v10  ;;  %v1639_v12 = vpop.f32.mrb[17].mxu1 }
 0x7a9   : > { %v1162_v13 = vpop.f32.mrb[18].mxu1 }
 0x7aa   : > { %v1640_v14 = vpop.f32.mrb[19].mxu1  ;;  %v1167_v15 = vsel %vm530_vm0, %v2406_v11, 0.0 }
 0x7ab   : > { %1168 = vadd.xlane.f32.xlu1 %v1167_v15 }
 0x838   : > { %v1169_v16 = vpop.xlane.xlu1 %1168 }
 0x839   : > { %v1170_v17 = vmul.f32 0.03125, %v1169_v16 }
 0x83b   : > { %v1171_v18 = vsub.f32 %v2406_v11, %v1170_v17 }
 0x83d   : > { %v1172_v19 = vmul.f32 %v1171_v18, %v1171_v18 }
 0x83f   : > { %v1173_v20 = vsel %vm530_vm0, %v1172_v19, 0.0 }
 0x840   : > { %1174 = vadd.xlane.f32.xlu0 %v1173_v20 }
 0x8cd   : > { %v1175_v23 = vpop.xlane.xlu0 %1174 }
 0x8ce   : > { %v1176_v24 = vmul.f32 0.03125, %v1175_v23 }
 0x8d0   : > { %v1177_v26 = vadd.f32 1e-05, %v1176_v24 }
 0x8d2   : > { %1796 = vrsqrt.f32 %v1177_v26 }
 0x8dc   : > { %v1797_v27 = vpop.eup %1796 }
 0x8dd   : > { %v1179_v29 = vmul.f32 %v1797_v27, %v1171_v18 }
 0x8df   : > { %v1186_v31 = vmul.f32 %v1531_v28, %v1179_v29 }
 0x8e1   : > { %v1193_v32 = vadd.f32 %v1532_v30, %v1186_v31 }
 0x8e3   : > { %v1194_v25 = vpack.c.bf16 %v1193_v32, %v1193_v32 }
 0x8e5   : > { %1646 = vmatmul.mubr.msk.bf16.vlgmr.msra.gmra.mrb[20].mxu0 %vm530_vm0, %v1194_v25 }
 0x9b8   : > { %v1255_v38 = vpop.f32.mrb[20].mxu0 }
 0x9b9   : > { %v1256_v39 = vadd.f32 %v1533_v37, %v1255_v38  ;;  %v1647_v40 = vpop.f32.mrb[21].mxu0 }
 0x9ba   : > { %v1258_v41 = vpop.f32.mrb[22].mxu0 }
 0x9bb   : > { %v1262_v42 = vmul.f32 0.70710677, %v1256_v39  ;;  %v1648_v43 = vpop.f32.mrb[23].mxu0  ;;  %v1261_v1 = vmul.f32 0.5, %v1256_v39 }
 0x9bd   : > { %v1265_v44 = vand.u32 2147483647, %v1262_v42  ;;  %vm1263_vm7 = vcmp.ge.f32.partialorder %v1262_v42, 0.0 }
 0x9be   : > { %v1264_v63 = vsel %vm1263_vm7, 1.0, %v2039_v62 }
 0x9bf   : > { %v1266_v45 = vmul.f32 0.3275911, %v1265_v44  ;;  %v1279_v8 = vsub.f32 0.0, %v1265_v44 }
 0x9c1   : > { %v1267_v46 = vadd.f32 1.0, %v1266_v45  ;;  %v1280_v48 = vmul.f32 %v1279_v8, %v1265_v44 }
 0x9c3   : > { %1798 = vrcp.f32 %v1267_v46  ;;  %v1281_v51 = vmul.f32 1.442695, %v1280_v48 }
 0x9c5   : > { %1800 = vpow2.f32 %v1281_v51 }
 0x9cd   : > { %v1799_v47 = vpop.eup %1798 }
 0x9ce   : > { %v1270_v49 = vmul.f32 1.0614054, %v1799_v47 }
 0x9cf   : > { %v1801_v59 = vpop.eup %1800 }
 0x9d0   : > { %v1271_v50 = vadd.f32 -1.4531521, %v1270_v49 }
 0x9d2   : > { %v1272_v52 = vmul.f32 %v1799_v47, %v1271_v50 }
 0x9d4   : > { %v1273_v53 = vadd.f32 1.4214138, %v1272_v52 }
 0x9d6   : > { %v1274_v54 = vmul.f32 %v1799_v47, %v1273_v53 }
 0x9d8   : > { %v1275_v55 = vadd.f32 -0.28449672, %v1274_v54 }
 0x9da   : > { %v1276_v56 = vmul.f32 %v1799_v47, %v1275_v55 }
 0x9dc   : > { %v1277_v57 = vadd.f32 0.2548296, %v1276_v56 }
 0x9de   : > { %v1278_v58 = vmul.f32 %v1799_v47, %v1277_v57 }
 0x9e0   : > { %v1283_v60 = vmul.f32 %v1801_v59, %v1278_v58 }
 0x9e2   : > { %v1284_v61 = vsub.f32 1.0, %v1283_v60 }
 0x9e4   : > { %v1285_v0 = vmul.f32 %v1284_v61, %v1264_v63 }
 0x9e6   : > { %v1286_v2 = vadd.f32 1.0, %v1285_v0 }
 0x9e8   : > { %v1287_v3 = vmul.f32 %v1286_v2, %v1261_v1 }
 0x9ea   : > { %v1288_v4 = vpack.c.bf16 %v1287_v3, %v1287_v3 }
 0x9ec   : > { %1658 = vmatmul.mubr.msk.bf16.vlgmr.msra.gmra.mrb[20].mxu1 %vm1328_vm8, %v1288_v4 }
 0xabf   : > { %v1366_v6 = vpop.f32.mrb[20].mxu1 }
 0xac0   : > { %v1367_v7 = vadd.f32 %v1537_v5, %v1366_v6  ;;  %v1659_v9 = vpop.f32.mrb[21].mxu1 }
 0xac1   : > { %v1369_v10 = vpop.f32.mrb[22].mxu1 }
 0xac2   : > { %v1372_v12 = vadd.f32 %v1367_v7, %v2406_v11  ;;  %v1660_v13 = vpop.f32.mrb[23].mxu1 }
 0xac4   : > { %1373 = vst.msk [vmem:[%s521_s26] sm:$0xff] %vm530_vm0, %v1372_v12 }
 0xac5   : > { %1955 = shalt.err (!%p1952_p1)
}
 0xac6   : > { %s1956_s24 = scalar_lea.hbm %s2447_s29, 128  ;;  %s1960_s28 = scalar_lea.hbm %s2541_s27, 256 }
 0xac7   : > { %p1957_p0 = scmp.ne.s32.totalorder %s2447_s29, %s1956_s24  ;;  %p1961_p9 = scmp.lt.u32.totalorder %s2447_s29, %s2541_s27 }
 0xac8   : > { %p1962_p12 = scmp.lt.u32.totalorder %s1960_s28, %s1956_s24  ;;  %p1964_p2 = scmp.lt.u32.totalorder %s1956_s24, %s2447_s29 }
 0xac9   : > { %p1958_p6 = pnand %p1957_p0, %p2542_p3 }
 0xaca   : > { %p1963_p10 = por %p1962_p12, %p1961_p9 }
 0xacb   : > { %p1959_p5 = pneg %p1958_p6 }
 0xacc   : > { %p1965_p4 = por %p1964_p2, %p1963_p10 }
 0xace   : > { %p1966_p7 = pnand %p1965_p4, %p1959_p5 }
 0xad0   : > { %1969 = shalt.err (!%p1966_p7)
}
 0xad1   : > { %1681 = dma.vmem_to_hbm [thread:$0]  (%p2542_p3), %s2449_s16, 128, %s2447_s29, %s1375_s17  }
 0xad2 PF: > { %s2543_s21 = sld [smem:[#allocation19_spill]]  ;;  %s2544_s15 = sld [smem:[#allocation17_spill]] }
 0xad3   : > { %s2545_s18 = sld [smem:[#allocation23_spill]] }
 0xad8   : > { %p1713_p8 = scmp.ge.s32.totalorder %s2543_s21, 2  ;;  %s1400_s14 = sand.u32 1, %s2544_s15  }
 0xad9   : > { %p2546_p11 = scmp.ne.s32.totalorder %s2545_s18, 0  ;;  %s1401_s22 = scalar_lea.sflag [#allocation5], %s1400_s14 }
 0xadb   : > { %p1700_p13 = pnand %p1713_p8, %p2546_p11 }
 0xadd   : > { %1999 = dma.done.wait (!%p1700_p13), %s1401_s22, 128  }
 0xade   : > { %2001 = vsyncadd (!%p1700_p13), %s1401_s22, 4294967168  ;;  %s2547_s16 = sld [smem:[#allocation20_spill]]  ;;  %s2548_s23 = sld [smem:[#allocation18_spill]] }
 0xadf   : > { %s2549_s15 = sld [smem:[#allocation21_spill]]  ;;  %s2550_s29 = smov %s2008_s30 }
 0xae4   : > { %p27_p1 = scmp.ge.s32.totalorder %s2547_s16, 4   ;;  %s2551_s30 = smov %s2548_s23 }
 0xae6   :  { %29 = sbr.rel (!%p27_p1) target bundleno = 9 (0x9), region = 132 }
 0xaed   :  { %1406 = vsyncpa [#allocation4], 1 }
 0xaee   :  { %1408 = vsyncpa [#allocation4 + $0x1], 1 }
 0xaef   :  { %1409 = vsyncpa [#allocation7], 1 }
 0xaf0   :  { %1410 = vsyncpa [#allocation10], 1 }
 0xaf1   :  { %1411 = vsyncpa [#allocation5], 1 }
 0xaf2   :  { %1413 = vsyncpa [#allocation5 + $0x1], 1 }

</bundles_post_ra>
